<compile_context>
chip_gen: v7x
topology: tpu7x:2x2x1
jax: 0.10.0
libtpu: 0.0.40
codegen_flags: <defaults>
</compile_context>

<pallas_src>
import functools

import jax
import jax.numpy as jnp
import numpy as np
from jax.experimental import pallas as pl
from jax.experimental.pallas import tpu as pltpu

# ---------------- problem sizes (small, consistent with the module) ----------------
B = 8             # number of graphs
N = 16            # nodes per graph
DIM = 32          # feature dim
HEADS = 4
C = DIM // HEADS  # out_channels per head (dim // 4)
NEG_SLOPE = 0.2   # GATConv default LeakyReLU slope
LN_EPS = 1e-5     # nn.LayerNorm default eps

# Parameter-pack row layout (single [P_ROWS, DIM] tile fed through one BlockSpec):
_ROW_W = 0                     # rows [0, DIM):        projection weight W           [D, D]
_ROW_WA = DIM                  # rows [DIM, 2*DIM):    folded attn weights, lanes 0..2H-1 = [w_src | w_dst]
_ROW_HM = 2 * DIM              # rows [2D, 2D+H):      per-head output-column masks  [H, D]
_ROW_BIAS = 2 * DIM + HEADS    # GATConv bias (after head concat)
_ROW_GAMMA = _ROW_BIAS + 1     # LayerNorm gamma
_ROW_BETA = _ROW_GAMMA + 1     # LayerNorm beta
P_ROWS = ((_ROW_BETA + 1 + 7) // 8) * 8   # pad to a multiple of 8 sublanes -> 72


# --------------------------------- Pallas kernel -----------------------------------
def _gat_layer_kernel(x_ref, adj_ref, p_ref, out_ref, e_scr, hs_scr, *, heads, gn, dim):
    x = x_ref[...]                                   # [GN, D]  f32
    mask = adj_ref[...] > 0.0                        # [GN, GN] hoisted once, reused by all heads

    # Packed parameters (static row slices of the single parameter tile).
    w = p_ref[_ROW_W:_ROW_W + dim, :]                # [D, D]
    wa = p_ref[_ROW_WA:_ROW_WA + dim, :]             # [D, D] (only lanes < 2H are meaningful)
    hmask = p_ref[_ROW_HM:_ROW_HM + heads, :]        # [H, D] per-head output-column masks
    bias = p_ref[_ROW_BIAS:_ROW_BIAS + 1, :]         # [1, D]
    gamma = p_ref[_ROW_GAMMA:_ROW_GAMMA + 1, :]      # [1, D]
    beta = p_ref[_ROW_BETA:_ROW_BETA + 1, :]         # [1, D]

    # Fused projection (MXU): node features and all per-head attention logits.
    h = jnp.dot(x, w, preferred_element_type=jnp.float32)        # [GN, D]
    alpha = jnp.dot(x, wa, preferred_element_type=jnp.float32)   # [GN, D], lanes 0..2H-1 valid
    a_dst = alpha[:, heads:2 * heads]                            # [GN, H]
    a_src_t = jnp.transpose(alpha[:, :heads])                    # [H, GN] one XLU transpose for all heads

    neg_big = jnp.float32(-1e30)
    denoms = []
    for hh in range(heads):
        # score[i, j] = leaky_relu(alpha_dst[i] + alpha_src[j]); masked softmax over sources j.
        s = a_dst[:, hh:hh + 1] + a_src_t[hh:hh + 1, :]          # [GN, GN]
        s = jnp.where(s > 0, s, NEG_SLOPE * s)
        s = jnp.where(mask, s, neg_big)
        s = s - jnp.max(s, axis=-1, keepdims=True)
        e = jnp.exp(s)                                           # masked entries underflow to 0
        denoms.append(jnp.sum(e, axis=-1, keepdims=True))        # [GN, 1]
        # Stack the blocks in VMEM scratch for ONE fused aggregation matmul (K = H*GN).
        e_scr[:, hh * gn:(hh + 1) * gn] = e                      # [GN, H*GN] lanes
        hs_scr[hh * gn:(hh + 1) * gn, :] = h * hmask[hh:hh + 1, :]  # [H*GN, D] sublanes

    # Single fused, *unnormalized* aggregation matmul (K = H*GN).
    acc = jnp.dot(e_scr[...], hs_scr[...], preferred_element_type=jnp.float32)   # [GN, D]

    # Deferred softmax normalization: (e * r) @ h == r * (e @ h) exactly.
    denom = jnp.concatenate(denoms, axis=1)                      # [GN, H]
    r = pl.reciprocal(denom, approx=True)                        # EUP vrcp
    r = r * (2.0 - denom * r)                                    # one Newton step -> full f32 accuracy
    scale = jnp.dot(r, hmask, preferred_element_type=jnp.float32)  # [GN, D]: per-head r broadcast

    gat_out = acc * scale + bias                                 # GATConv bias (after concat)

    # residual + LayerNorm (f32)
    y = x + gat_out
    mu = jnp.mean(y, axis=-1, keepdims=True)
    var = jnp.mean((y - mu) * (y - mu), axis=-1, keepdims=True)
    y_n = (y - mu) * jax.lax.rsqrt(var + LN_EPS)
    out_ref[...] = (y_n * gamma + beta).astype(out_ref.dtype)


# -------------------------- one-time parameter packing ------------------------------
def prepare_params(w, att_src, att_dst, bias, gamma, beta):
    """Fold attention vectors into the projection and pack everything into one [P_ROWS, D] tile."""
    d = w.shape[0]
    heads, c = att_src.shape
    w3 = w.reshape(d, heads, c)
    w_src = jnp.einsum("dhc,hc->dh", w3, att_src)                # [D, H]  alpha_src = x @ w_src
    w_dst = jnp.einsum("dhc,hc->dh", w3, att_dst)                # [D, H]  alpha_dst = x @ w_dst
    wa = jnp.zeros((d, d), jnp.float32)
    wa = wa.at[:, :heads].set(w_src).at[:, heads:2 * heads].set(w_dst)

    lane = jnp.arange(d)[None, :]
    head_id = jnp.arange(heads)[:, None]
    hmask = ((lane >= head_id * c) & (lane < (head_id + 1) * c)).astype(jnp.float32)  # [H, D]

    pack = jnp.zeros((P_ROWS, d), jnp.float32)
    pack = pack.at[_ROW_W:_ROW_W + d, :].set(w.astype(jnp.float32))
    pack = pack.at[_ROW_WA:_ROW_WA + d, :].set(wa)
    pack = pack.at[_ROW_HM:_ROW_HM + heads, :].set(hmask)
    pack = pack.at[_ROW_BIAS, :].set(bias.reshape(d).astype(jnp.float32))
    pack = pack.at[_ROW_GAMMA, :].set(gamma.reshape(d).astype(jnp.float32))
    pack = pack.at[_ROW_BETA, :].set(beta.reshape(d).astype(jnp.float32))
    return pack


# ----------------------------------- wrapper ----------------------------------------
@functools.partial(jax.jit, static_argnames=("graphs_per_step",))
def graph_attention_layer(x, adj, params, *, graphs_per_step=B):
    """x: [B, N, D], adj: [B, N, N] (adj[b, i, j] = 1 <=> edge j -> i, self loops included),
    params: output of prepare_params()."""
    b, n, d = x.shape
    heads = HEADS
    assert b % graphs_per_step == 0
    steps = b // graphs_per_step
    gn = graphs_per_step * n

    x2 = x.reshape(b * n, d)                                     # [B*N, D]

    # Block-diagonal super-graph adjacency per grid step, built with a single einsum.
    eye = jnp.eye(graphs_per_step, dtype=adj.dtype)
    adj_bd = jnp.einsum("sgij,gh->sgihj", adj.reshape(steps, graphs_per_step, n, n), eye)
    adj_bd = adj_bd.reshape(steps * gn, gn)                      # [steps*GN, GN]

    out2 = pl.pallas_call(
        functools.partial(_gat_layer_kernel, heads=heads, gn=gn, dim=d),
        out_shape=jax.ShapeDtypeStruct((b * n, d), jnp.float32),
        grid=(steps,),
        in_specs=[
            pl.BlockSpec((gn, d), lambda s: (s, 0)),             # x
            pl.BlockSpec((gn, gn), lambda s: (s, 0)),            # block-diagonal adjacency
            pl.BlockSpec((P_ROWS, d), lambda s: (0, 0)),         # packed parameters (one DMA)
        ],
        out_specs=pl.BlockSpec((gn, d), lambda s: (s, 0)),
        scratch_shapes=[
            pltpu.VMEM((gn, heads * gn), jnp.float32),           # stacked exp-score blocks
            pltpu.VMEM((heads * gn, d), jnp.float32),            # stacked head-masked h blocks
        ],
        compiler_params=pltpu.CompilerParams(dimension_semantics=("parallel",)),
    )(x2, adj_bd, params)
    return out2.reshape(b, n, d)


# ------------------------------ pure-JAX reference ---------------------------------
def _reference(x, adj, w, att_src, att_dst, bias, gamma, beta):
    h = jnp.einsum("bnd,de->bne", x, w)                          # [B, N, H*C]
    hh = h.reshape(B, N, HEADS, C)
    a_s = jnp.einsum("bnhc,hc->bnh", hh, att_src)                # [B, N, H]
    a_d = jnp.einsum("bnhc,hc->bnh", hh, att_dst)                # [B, N, H]
    s = a_d[:, :, None, :] + a_s[:, None, :, :]                  # [B, Ndst, Nsrc, H]
    s = jnp.where(s > 0, s, NEG_SLOPE * s)
    m = adj[:, :, :, None] > 0
    s = jnp.where(m, s, -1e30)
    s = s - jnp.max(s, axis=2, keepdims=True)
    e = jnp.where(m, jnp.exp(s), 0.0)
    attn = e / jnp.sum(e, axis=2, keepdims=True)
    out = jnp.einsum("bijh,bjhc->bihc", attn, hh).reshape(B, N, DIM) + bias[0]
    y = x + out
    mu = jnp.mean(y, axis=-1, keepdims=True)
    var = jnp.mean((y - mu) ** 2, axis=-1, keepdims=True)
    return (y - mu) / jnp.sqrt(var + LN_EPS) * gamma[0] + beta[0]


# --------------------------------------- main ---------------------------------------
if __name__ == "__main__":
    key = jax.random.PRNGKey(0)
    k_x, k_e1, k_e2, k_w, k_as, k_ad, k_b, k_g, k_bt = jax.random.split(key, 9)

    # node features: B graphs of N nodes, D features
    x = jax.random.normal(k_x, (B, N, DIM), dtype=jnp.float32)

    # deterministic sparse graphs: ring edges + a few random ones per graph; dense mask glue
    src = jnp.arange(N, dtype=jnp.int32)
    dst = (src + 1) % N
    extra_src = jax.random.randint(k_e1, (B, 8), 0, N, dtype=jnp.int32)
    extra_off = jax.random.randint(k_e2, (B, 8), 1, N, dtype=jnp.int32)
    extra_dst = (extra_src + extra_off) % N

    adj = jnp.zeros((B, N, N), dtype=jnp.float32)
    adj = adj.at[:, dst, src].set(1.0)                                   # ring: src -> dst
    adj = adj.at[jnp.arange(B)[:, None], extra_dst, extra_src].set(1.0)  # random extras
    adj = adj.at[:, jnp.arange(N), jnp.arange(N)].set(1.0)               # self loops (GATConv)

    # GATConv parameters (PyG: lin has no bias; att_src/att_dst are [1, H, C]; bias is [H*C])
    w = jax.random.normal(k_w, (DIM, HEADS * C), dtype=jnp.float32) * 0.1
    att_src = jax.random.normal(k_as, (HEADS, C), dtype=jnp.float32) * 0.1
    att_dst = jax.random.normal(k_ad, (HEADS, C), dtype=jnp.float32) * 0.1
    bias = jax.random.normal(k_b, (1, DIM), dtype=jnp.float32) * 0.05

    # LayerNorm parameters (non-trivial, to exercise the affine part)
    gamma = 1.0 + 0.1 * jax.random.normal(k_g, (1, DIM), dtype=jnp.float32)
    beta = 0.1 * jax.random.normal(k_bt, (1, DIM), dtype=jnp.float32)

    # one-time parameter packing (static per layer), then the jitted Pallas forward
    params = prepare_params(w, att_src, att_dst, bias, gamma, beta)
    out = graph_attention_layer(x, adj, params)
    out = jax.block_until_ready(out)

    ref = _reference(x, adj, w, att_src, att_dst, bias, gamma, beta)
    np.testing.assert_allclose(np.asarray(out), np.asarray(ref), rtol=1e-4, atol=1e-4)

    print("KERNEL_OK")
</pallas_src>

<mosaic_0001>
module attributes {stable_mosaic.version = 11 : i64} {
  func.func @_gat_layer_kernel(%arg0: i32, %arg1: memref<128x32xf32, #tpu.memory_space<vmem>>, %arg2: memref<128x128xf32, #tpu.memory_space<vmem>>, %arg3: memref<72x32xf32, #tpu.memory_space<vmem>>, %arg4: memref<128x32xf32, #tpu.memory_space<vmem>>, %arg5: memref<128x512xf32, #tpu.memory_space<vmem>>, %arg6: memref<512x32xf32, #tpu.memory_space<vmem>>) attributes {dimension_semantics = [#tpu.dimension_semantics<parallel>], iteration_bounds = array<i64: 1>, scalar_prefetch = 0 : i64, scratch_operands = 2 : i64, tpu.core_type = #tpu.core_type<tc>, window_params = [{transform_indices = @transform_0, window_bounds = array<i64: 128, 32>}, {transform_indices = @transform_1, window_bounds = array<i64: 128, 128>}, {pipeline_mode = #tpu.pipeline_mode<synchronous>, transform_indices = @transform_2, window_bounds = array<i64: 72, 32>}, {transform_indices = @transform_3, window_bounds = array<i64: 128, 32>}]} {
    %c0 = arith.constant 0 : index
    %c0_0 = arith.constant 0 : index
    %0 = vector.load %arg1[%c0, %c0_0] : memref<128x32xf32, #tpu.memory_space<vmem>>, vector<128x32xf32>
    %c0_1 = arith.constant 0 : index
    %c0_2 = arith.constant 0 : index
    %1 = vector.load %arg2[%c0_1, %c0_2] : memref<128x128xf32, #tpu.memory_space<vmem>>, vector<128x128xf32>
    %cst = arith.constant 0.000000e+00 : f32
    %2 = vector.broadcast %cst : f32 to vector<128x128xf32>
    %3 = arith.cmpf ogt, %1, %2 : vector<128x128xf32>
    %c0_3 = arith.constant 0 : index
    %c0_4 = arith.constant 0 : index
    %4 = vector.load %arg3[%c0_3, %c0_4] : memref<72x32xf32, #tpu.memory_space<vmem>>, vector<32x32xf32>
    %c32 = arith.constant 32 : index
    %c0_5 = arith.constant 0 : index
    %5 = vector.load %arg3[%c32, %c0_5] : memref<72x32xf32, #tpu.memory_space<vmem>>, vector<32x32xf32>
    %c64 = arith.constant 64 : index
    %c0_6 = arith.constant 0 : index
    %6 = vector.load %arg3[%c64, %c0_6] : memref<72x32xf32, #tpu.memory_space<vmem>>, vector<4x32xf32>
    %c68 = arith.constant 68 : index
    %c0_7 = arith.constant 0 : index
    %7 = vector.load %arg3[%c68, %c0_7] : memref<72x32xf32, #tpu.memory_space<vmem>>, vector<1x32xf32>
    %c69 = arith.constant 69 : index
    %c0_8 = arith.constant 0 : index
    %8 = vector.load %arg3[%c69, %c0_8] : memref<72x32xf32, #tpu.memory_space<vmem>>, vector<1x32xf32>
    %c70 = arith.constant 70 : index
    %c0_9 = arith.constant 0 : index
    %9 = vector.load %arg3[%c70, %c0_9] : memref<72x32xf32, #tpu.memory_space<vmem>>, vector<1x32xf32>
    %cst_10 = arith.constant dense<0.000000e+00> : vector<128x32xf32>
    %10 = tpu.matmul %0, %4, %cst_10 {dimension_numbers = #tpu.dot_dimension_numbers<[1], [0], [0], [1], [0, 0, 1, 1], [], []>} : vector<128x32xf32>, vector<32x32xf32>, vector<128x32xf32> -> vector<128x32xf32>
    %cst_11 = arith.constant dense<0.000000e+00> : vector<128x32xf32>
    %11 = tpu.matmul %0, %5, %cst_11 {dimension_numbers = #tpu.dot_dimension_numbers<[1], [0], [0], [1], [0, 0, 1, 1], [], []>} : vector<128x32xf32>, vector<32x32xf32>, vector<128x32xf32> -> vector<128x32xf32>
    %12 = vector.extract_strided_slice %11 {offsets = [0, 4], sizes = [128, 4], strides = [1, 1]} : vector<128x32xf32> to vector<128x4xf32>
    %13 = vector.extract_strided_slice %11 {offsets = [0, 0], sizes = [128, 4], strides = [1, 1]} : vector<128x32xf32> to vector<128x4xf32>
    %14 = tpu.transpose %13, [1, 0] : vector<128x4xf32> -> vector<4x128xf32>
    %15 = vector.extract_strided_slice %12 {offsets = [0, 0], sizes = [128, 1], strides = [1, 1]} : vector<128x4xf32> to vector<128x1xf32>
    %16 = vector.extract_strided_slice %14 {offsets = [0, 0], sizes = [1, 128], strides = [1, 1]} : vector<4x128xf32> to vector<1x128xf32>
    %17 = vector.broadcast %15 : vector<128x1xf32> to vector<128x128xf32>
    %18 = vector.broadcast %16 : vector<1x128xf32> to vector<128x128xf32>
    %19 = arith.addf %17, %18 : vector<128x128xf32>
    %cst_12 = arith.constant 0.000000e+00 : f32
    %20 = vector.broadcast %cst_12 : f32 to vector<128x128xf32>
    %21 = arith.cmpf ogt, %19, %20 : vector<128x128xf32>
    %cst_13 = arith.constant 2.000000e-01 : f32
    %22 = vector.broadcast %cst_13 : f32 to vector<128x128xf32>
    %23 = arith.mulf %22, %19 : vector<128x128xf32>
    %24 = arith.select %21, %19, %23 : vector<128x128xi1>, vector<128x128xf32>
    %cst_14 = arith.constant -1.000000e+30 : f32
    %25 = vector.broadcast %cst_14 : f32 to vector<128x128xf32>
    %26 = arith.select %3, %24, %25 : vector<128x128xi1>, vector<128x128xf32>
    %cst_15 = arith.constant dense<0xFF800000> : vector<128xf32>
    %27 = vector.multi_reduction <maximumf>, %26, %cst_15 [1] : vector<128x128xf32> to vector<128xf32>
    %28 = vector.shape_cast %27 : vector<128xf32> to vector<128x1xf32>
    %29 = vector.broadcast %28 : vector<128x1xf32> to vector<128x128xf32>
    %30 = arith.subf %26, %29 : vector<128x128xf32>
    %31 = math.exp %30 : vector<128x128xf32>
    %cst_16 = arith.constant dense<0.000000e+00> : vector<128xf32>
    %32 = vector.multi_reduction <add>, %31, %cst_16 [1] : vector<128x128xf32> to vector<128xf32>
    %33 = vector.shape_cast %32 : vector<128xf32> to vector<128x1xf32>
    %c0_17 = arith.constant 0 : index
    %c0_18 = arith.constant 0 : index
    %34 = vector.load %arg5[%c0_17, %c0_18] : memref<128x512xf32, #tpu.memory_space<vmem>>, vector<128x128xf32>
    tpu.vector_store %arg5[%c0_17, %c0_18], %31 {strides = array<i32>} : memref<128x512xf32, #tpu.memory_space<vmem>>, vector<128x128xf32>,
    %35 = vector.extract_strided_slice %6 {offsets = [0, 0], sizes = [1, 32], strides = [1, 1]} : vector<4x32xf32> to vector<1x32xf32>
    %36 = vector.broadcast %35 : vector<1x32xf32> to vector<128x32xf32>
    %37 = arith.mulf %10, %36 : vector<128x32xf32>
    %c0_19 = arith.constant 0 : index
    %c0_20 = arith.constant 0 : index
    %38 = vector.load %arg6[%c0_19, %c0_20] : memref<512x32xf32, #tpu.memory_space<vmem>>, vector<128x32xf32>
    tpu.vector_store %arg6[%c0_19, %c0_20], %37 {strides = array<i32>} : memref<512x32xf32, #tpu.memory_space<vmem>>, vector<128x32xf32>,
    %39 = vector.extract_strided_slice %12 {offsets = [0, 1], sizes = [128, 1], strides = [1, 1]} : vector<128x4xf32> to vector<128x1xf32>
    %40 = vector.extract_strided_slice %14 {offsets = [1, 0], sizes = [1, 128], strides = [1, 1]} : vector<4x128xf32> to vector<1x128xf32>
    %41 = vector.broadcast %39 : vector<128x1xf32> to vector<128x128xf32>
    %42 = vector.broadcast %40 : vector<1x128xf32> to vector<128x128xf32>
    %43 = arith.addf %41, %42 : vector<128x128xf32>
    %cst_21 = arith.constant 0.000000e+00 : f32
    %44 = vector.broadcast %cst_21 : f32 to vector<128x128xf32>
    %45 = arith.cmpf ogt, %43, %44 : vector<128x128xf32>
    %cst_22 = arith.constant 2.000000e-01 : f32
    %46 = vector.broadcast %cst_22 : f32 to vector<128x128xf32>
    %47 = arith.mulf %46, %43 : vector<128x128xf32>
    %48 = arith.select %45, %43, %47 : vector<128x128xi1>, vector<128x128xf32>
    %cst_23 = arith.constant -1.000000e+30 : f32
    %49 = vector.broadcast %cst_23 : f32 to vector<128x128xf32>
    %50 = arith.select %3, %48, %49 : vector<128x128xi1>, vector<128x128xf32>
    %cst_24 = arith.constant dense<0xFF800000> : vector<128xf32>
    %51 = vector.multi_reduction <maximumf>, %50, %cst_24 [1] : vector<128x128xf32> to vector<128xf32>
    %52 = vector.shape_cast %51 : vector<128xf32> to vector<128x1xf32>
    %53 = vector.broadcast %52 : vector<128x1xf32> to vector<128x128xf32>
    %54 = arith.subf %50, %53 : vector<128x128xf32>
    %55 = math.exp %54 : vector<128x128xf32>
    %cst_25 = arith.constant dense<0.000000e+00> : vector<128xf32>
    %56 = vector.multi_reduction <add>, %55, %cst_25 [1] : vector<128x128xf32> to vector<128xf32>
    %57 = vector.shape_cast %56 : vector<128xf32> to vector<128x1xf32>
    %c0_26 = arith.constant 0 : index
    %c128 = arith.constant 128 : index
    %58 = vector.load %arg5[%c0_26, %c128] : memref<128x512xf32, #tpu.memory_space<vmem>>, vector<128x128xf32>
    tpu.vector_store %arg5[%c0_26, %c128], %55 {strides = array<i32>} : memref<128x512xf32, #tpu.memory_space<vmem>>, vector<128x128xf32>,
    %59 = vector.extract_strided_slice %6 {offsets = [1, 0], sizes = [1, 32], strides = [1, 1]} : vector<4x32xf32> to vector<1x32xf32>
    %60 = vector.broadcast %59 : vector<1x32xf32> to vector<128x32xf32>
    %61 = arith.mulf %10, %60 : vector<128x32xf32>
    %c128_27 = arith.constant 128 : index
    %c0_28 = arith.constant 0 : index
    %62 = vector.load %arg6[%c128_27, %c0_28] : memref<512x32xf32, #tpu.memory_space<vmem>>, vector<128x32xf32>
    tpu.vector_store %arg6[%c128_27, %c0_28], %61 {strides = array<i32>} : memref<512x32xf32, #tpu.memory_space<vmem>>, vector<128x32xf32>,
    %63 = vector.extract_strided_slice %12 {offsets = [0, 2], sizes = [128, 1], strides = [1, 1]} : vector<128x4xf32> to vector<128x1xf32>
    %64 = vector.extract_strided_slice %14 {offsets = [2, 0], sizes = [1, 128], strides = [1, 1]} : vector<4x128xf32> to vector<1x128xf32>
    %65 = vector.broadcast %63 : vector<128x1xf32> to vector<128x128xf32>
    %66 = vector.broadcast %64 : vector<1x128xf32> to vector<128x128xf32>
    %67 = arith.addf %65, %66 : vector<128x128xf32>
    %cst_29 = arith.constant 0.000000e+00 : f32
    %68 = vector.broadcast %cst_29 : f32 to vector<128x128xf32>
    %69 = arith.cmpf ogt, %67, %68 : vector<128x128xf32>
    %cst_30 = arith.constant 2.000000e-01 : f32
    %70 = vector.broadcast %cst_30 : f32 to vector<128x128xf32>
    %71 = arith.mulf %70, %67 : vector<128x128xf32>
    %72 = arith.select %69, %67, %71 : vector<128x128xi1>, vector<128x128xf32>
    %cst_31 = arith.constant -1.000000e+30 : f32
    %73 = vector.broadcast %cst_31 : f32 to vector<128x128xf32>
    %74 = arith.select %3, %72, %73 : vector<128x128xi1>, vector<128x128xf32>
    %cst_32 = arith.constant dense<0xFF800000> : vector<128xf32>
    %75 = vector.multi_reduction <maximumf>, %74, %cst_32 [1] : vector<128x128xf32> to vector<128xf32>
    %76 = vector.shape_cast %75 : vector<128xf32> to vector<128x1xf32>
    %77 = vector.broadcast %76 : vector<128x1xf32> to vector<128x128xf32>
    %78 = arith.subf %74, %77 : vector<128x128xf32>
    %79 = math.exp %78 : vector<128x128xf32>
    %cst_33 = arith.constant dense<0.000000e+00> : vector<128xf32>
    %80 = vector.multi_reduction <add>, %79, %cst_33 [1] : vector<128x128xf32> to vector<128xf32>
    %81 = vector.shape_cast %80 : vector<128xf32> to vector<128x1xf32>
    %c0_34 = arith.constant 0 : index
    %c256 = arith.constant 256 : index
    %82 = vector.load %arg5[%c0_34, %c256] : memref<128x512xf32, #tpu.memory_space<vmem>>, vector<128x128xf32>
    tpu.vector_store %arg5[%c0_34, %c256], %79 {strides = array<i32>} : memref<128x512xf32, #tpu.memory_space<vmem>>, vector<128x128xf32>,
    %83 = vector.extract_strided_slice %6 {offsets = [2, 0], sizes = [1, 32], strides = [1, 1]} : vector<4x32xf32> to vector<1x32xf32>
    %84 = vector.broadcast %83 : vector<1x32xf32> to vector<128x32xf32>
    %85 = arith.mulf %10, %84 : vector<128x32xf32>
    %c256_35 = arith.constant 256 : index
    %c0_36 = arith.constant 0 : index
    %86 = vector.load %arg6[%c256_35, %c0_36] : memref<512x32xf32, #tpu.memory_space<vmem>>, vector<128x32xf32>
    tpu.vector_store %arg6[%c256_35, %c0_36], %85 {strides = array<i32>} : memref<512x32xf32, #tpu.memory_space<vmem>>, vector<128x32xf32>,
    %87 = vector.extract_strided_slice %12 {offsets = [0, 3], sizes = [128, 1], strides = [1, 1]} : vector<128x4xf32> to vector<128x1xf32>
    %88 = vector.extract_strided_slice %14 {offsets = [3, 0], sizes = [1, 128], strides = [1, 1]} : vector<4x128xf32> to vector<1x128xf32>
    %89 = vector.broadcast %87 : vector<128x1xf32> to vector<128x128xf32>
    %90 = vector.broadcast %88 : vector<1x128xf32> to vector<128x128xf32>
    %91 = arith.addf %89, %90 : vector<128x128xf32>
    %cst_37 = arith.constant 0.000000e+00 : f32
    %92 = vector.broadcast %cst_37 : f32 to vector<128x128xf32>
    %93 = arith.cmpf ogt, %91, %92 : vector<128x128xf32>
    %cst_38 = arith.constant 2.000000e-01 : f32
    %94 = vector.broadcast %cst_38 : f32 to vector<128x128xf32>
    %95 = arith.mulf %94, %91 : vector<128x128xf32>
    %96 = arith.select %93, %91, %95 : vector<128x128xi1>, vector<128x128xf32>
    %cst_39 = arith.constant -1.000000e+30 : f32
    %97 = vector.broadcast %cst_39 : f32 to vector<128x128xf32>
    %98 = arith.select %3, %96, %97 : vector<128x128xi1>, vector<128x128xf32>
    %cst_40 = arith.constant dense<0xFF800000> : vector<128xf32>
    %99 = vector.multi_reduction <maximumf>, %98, %cst_40 [1] : vector<128x128xf32> to vector<128xf32>
    %100 = vector.shape_cast %99 : vector<128xf32> to vector<128x1xf32>
    %101 = vector.broadcast %100 : vector<128x1xf32> to vector<128x128xf32>
    %102 = arith.subf %98, %101 : vector<128x128xf32>
    %103 = math.exp %102 : vector<128x128xf32>
    %cst_41 = arith.constant dense<0.000000e+00> : vector<128xf32>
    %104 = vector.multi_reduction <add>, %103, %cst_41 [1] : vector<128x128xf32> to vector<128xf32>
    %105 = vector.shape_cast %104 : vector<128xf32> to vector<128x1xf32>
    %c0_42 = arith.constant 0 : index
    %c384 = arith.constant 384 : index
    %106 = vector.load %arg5[%c0_42, %c384] : memref<128x512xf32, #tpu.memory_space<vmem>>, vector<128x128xf32>
    tpu.vector_store %arg5[%c0_42, %c384], %103 {strides = array<i32>} : memref<128x512xf32, #tpu.memory_space<vmem>>, vector<128x128xf32>,
    %107 = vector.extract_strided_slice %6 {offsets = [3, 0], sizes = [1, 32], strides = [1, 1]} : vector<4x32xf32> to vector<1x32xf32>
    %108 = vector.broadcast %107 : vector<1x32xf32> to vector<128x32xf32>
    %109 = arith.mulf %10, %108 : vector<128x32xf32>
    %c384_43 = arith.constant 384 : index
    %c0_44 = arith.constant 0 : index
    %110 = vector.load %arg6[%c384_43, %c0_44] : memref<512x32xf32, #tpu.memory_space<vmem>>, vector<128x32xf32>
    tpu.vector_store %arg6[%c384_43, %c0_44], %109 {strides = array<i32>} : memref<512x32xf32, #tpu.memory_space<vmem>>, vector<128x32xf32>,
    %c0_45 = arith.constant 0 : index
    %c0_46 = arith.constant 0 : index
    %111 = vector.load %arg5[%c0_45, %c0_46] : memref<128x512xf32, #tpu.memory_space<vmem>>, vector<128x512xf32>
    %c0_47 = arith.constant 0 : index
    %c0_48 = arith.constant 0 : index
    %112 = vector.load %arg6[%c0_47, %c0_48] : memref<512x32xf32, #tpu.memory_space<vmem>>, vector<512x32xf32>
    %cst_49 = arith.constant dense<0.000000e+00> : vector<128x32xf32>
    %113 = tpu.matmul %111, %112, %cst_49 {dimension_numbers = #tpu.dot_dimension_numbers<[1], [0], [0], [1], [0, 0, 1, 1], [], []>} : vector<128x512xf32>, vector<512x32xf32>, vector<128x32xf32> -> vector<128x32xf32>
    %114 = tpu.concatenate %33, %57, %81, %105 in 1 : vector<128x1xf32>, vector<128x1xf32>, vector<128x1xf32>, vector<128x1xf32> -> vector<128x4xf32>
    %115 = tpu.reciprocal %114 {approx = true} : vector<128x4xf32> -> vector<128x4xf32>
    %116 = arith.mulf %114, %115 : vector<128x4xf32>
    %cst_50 = arith.constant 2.000000e+00 : f32
    %117 = vector.broadcast %cst_50 : f32 to vector<128x4xf32>
    %118 = arith.subf %117, %116 : vector<128x4xf32>
    %119 = arith.mulf %115, %118 : vector<128x4xf32>
    %cst_51 = arith.constant dense<0.000000e+00> : vector<128x32xf32>
    %120 = tpu.matmul %119, %6, %cst_51 {dimension_numbers = #tpu.dot_dimension_numbers<[1], [0], [0], [1], [0, 0, 1, 1], [], []>} : vector<128x4xf32>, vector<4x32xf32>, vector<128x32xf32> -> vector<128x32xf32>
    %121 = arith.mulf %113, %120 : vector<128x32xf32>
    %122 = vector.broadcast %7 : vector<1x32xf32> to vector<128x32xf32>
    %123 = arith.addf %121, %122 : vector<128x32xf32>
    %124 = arith.addf %0, %123 : vector<128x32xf32>
    %cst_52 = arith.constant dense<0.000000e+00> : vector<128xf32>
    %125 = vector.multi_reduction <add>, %124, %cst_52 [1] : vector<128x32xf32> to vector<128xf32>
    %126 = vector.shape_cast %125 : vector<128xf32> to vector<128x1xf32>
    %cst_53 = arith.constant 3.200000e+01 : f32
    %127 = vector.broadcast %cst_53 : f32 to vector<128x1xf32>
    %128 = arith.divf %126, %127 : vector<128x1xf32>
    %129 = vector.broadcast %128 : vector<128x1xf32> to vector<128x32xf32>
    %130 = arith.subf %124, %129 : vector<128x32xf32>
    %131 = vector.broadcast %128 : vector<128x1xf32> to vector<128x32xf32>
    %132 = arith.subf %124, %131 : vector<128x32xf32>
    %133 = arith.mulf %130, %132 : vector<128x32xf32>
    %cst_54 = arith.constant dense<0.000000e+00> : vector<128xf32>
    %134 = vector.multi_reduction <add>, %133, %cst_54 [1] : vector<128x32xf32> to vector<128xf32>
    %135 = vector.shape_cast %134 : vector<128xf32> to vector<128x1xf32>
    %cst_55 = arith.constant 3.200000e+01 : f32
    %136 = vector.broadcast %cst_55 : f32 to vector<128x1xf32>
    %137 = arith.divf %135, %136 : vector<128x1xf32>
    %138 = vector.broadcast %128 : vector<128x1xf32> to vector<128x32xf32>
    %139 = arith.subf %124, %138 : vector<128x32xf32>
    %cst_56 = arith.constant 9.99999974E-6 : f32
    %140 = vector.broadcast %cst_56 : f32 to vector<128x1xf32>
    %141 = arith.addf %137, %140 : vector<128x1xf32>
    %142 = math.rsqrt %141 : vector<128x1xf32>
    %143 = vector.broadcast %142 : vector<128x1xf32> to vector<128x32xf32>
    %144 = arith.mulf %139, %143 : vector<128x32xf32>
    %145 = vector.broadcast %8 : vector<1x32xf32> to vector<128x32xf32>
    %146 = arith.mulf %144, %145 : vector<128x32xf32>
    %147 = vector.broadcast %9 : vector<1x32xf32> to vector<128x32xf32>
    %148 = arith.addf %146, %147 : vector<128x32xf32>
    %c0_57 = arith.constant 0 : index
    %c0_58 = arith.constant 0 : index
    %149 = vector.load %arg4[%c0_57, %c0_58] : memref<128x32xf32, #tpu.memory_space<vmem>>, vector<128x32xf32>
    tpu.vector_store %arg4[%c0_57, %c0_58], %148 {strides = array<i32>} : memref<128x32xf32, #tpu.memory_space<vmem>>, vector<128x32xf32>,
    return
  }
  func.func @transform_0(%arg0: i32) -> (i32, i32) {
    %c0_i32 = arith.constant 0 : i32
    %c0_i32_0 = arith.constant 0 : i32
    return %arg0, %c0_i32 : i32, i32
  }
  func.func @transform_1(%arg0: i32) -> (i32, i32) {
    %c0_i32 = arith.constant 0 : i32
    %c0_i32_0 = arith.constant 0 : i32
    return %arg0, %c0_i32 : i32, i32
  }
  func.func @transform_2(%arg0: i32) -> (i32, i32) {
    %c0_i32 = arith.constant 0 : i32
    %c0_i32_0 = arith.constant 0 : i32
    %c0_i32_1 = arith.constant 0 : i32
    return %c0_i32, %c0_i32_0 : i32, i32
  }
  func.func @transform_3(%arg0: i32) -> (i32, i32) {
    %c0_i32 = arith.constant 0 : i32
    %c0_i32_0 = arith.constant 0 : i32
    return %arg0, %c0_i32 : i32, i32
  }
}

</mosaic_0001>

<bundles_post_ra>
// kernel: graph_attention_layer.1
= control target key start
LH: loop header
LB: loop body
LE: loop exit
PB: predicated region body
PF: predicated region fallthrough
CT: control target
= control target key end

     0   :  { %vm75_vm0 = vcmask 261120   ;;  %v3514_v6 = vmov 6   ;;  %v3515_v7 = vmov 4   ;;  %s5419_s0 = inlined_call_operand.vmem [shape: f32[128,32], index: 0, kind: input, shape index: {}]   ;;  %s5420_s1 = inlined_call_operand.vmem [shape: f32[128,128], index: 1, kind: input, shape index: {}]   ;;  %s5421_s2 = inlined_call_operand.vmem [shape: f32[72,32], index: 2, kind: input, shape index: {}]   ;;  %s5422_s3 = inlined_call_operand.hbm [shape: f32[128,32], index: 3, kind: output, shape index: {}]  }
   0x1   :  { %v67_v0 = vld [vmem:[%s5421_s2 + $0x20] sm:$0xff]  ;;  %v68_v1 = vld [vmem:[%s5421_s2 + $0x28] sm:$0xff]  ;;  %v69_v2 = vld [vmem:[%s5421_s2 + $0x30] sm:$0xff]  ;;  %3224 = vset.pattern.permute.xlu0 %v3514_v6  ;;  %3222 = vset.pattern.permute.xlu1 %v3515_v7 }
   0x2   :  { %v3141_v3 = vpack.c.bf16 %v68_v1, %v67_v0  ;;  %v70_v4 = vld [vmem:[%s5421_s2 + $0x38] sm:$0xff]  ;;  %v15_v5 = vld [vmem:[%s5419_s0] sm:$0xff] }
   0x3   :  { %v3145_v8 = vpack.c.bf16 %v70_v4, %v69_v2  ;;  %3083 = vmatprep.mubr.msk.f32.mxu1 %vm75_vm0, %v15_v5  ;;  %3051 = vmatprep.mubr.msk.f32.mxu0 %vm75_vm0, %v15_v5 }
   0x4   :  { %3142 = vmatprep.subr.bf16.mxu1 %v3141_v3 }
   0x5   :  { %3144 = vmatpush3.bf16.msra.mxu1 %v3141_v3 }
   0x6   :  { %3146 = vmatprep.subr.bf16.mxu1 %v3145_v8 }
   0x7   :  { %8 = vsyncpa [#allocation5], 0  ;;  %v16_v9 = vld [vmem:[%s5419_s0 + $0x8] sm:$0xff]  ;;  %v17_v10 = vld [vmem:[%s5419_s0 + $0x10] sm:$0xff]  ;;  %v3516_v32 = vmov 5   ;;  %v3517_v37 = vmov 7  }
   0x8   :  { %v18_v11 = vld [vmem:[%s5419_s0 + $0x18] sm:$0xff]  ;;  %v19_v12 = vld [vmem:[%s5419_s0 + $0x20] sm:$0xff]  ;;  %v20_v13 = vld [vmem:[%s5419_s0 + $0x28] sm:$0xff] }
   0x9   :  { %3148 = vmatpush3.bf16.msra.mxu1 %v3145_v8  ;;  %v3582_v14 = vld [vmem:[%s5419_s0 + $0x30] sm:$0xff]  ;;  %v3590_v15 = vld [vmem:[%s5419_s0 + $0x38] sm:$0xff]  ;;  %v3595_v16 = vld [vmem:[%s5419_s0 + $0x40] sm:$0xff] }
   0xa   :  { %v3604_v17 = vld [vmem:[%s5419_s0 + $0x48] sm:$0xff]  ;;  %v3609_v18 = vld [vmem:[%s5419_s0 + $0x50] sm:$0xff]  ;;  %v3618_v19 = vld [vmem:[%s5419_s0 + $0x58] sm:$0xff] }
   0xb   :  { %v3623_v20 = vld [vmem:[%s5419_s0 + $0x60] sm:$0xff]  ;;  %v3632_v21 = vld [vmem:[%s5419_s0 + $0x68] sm:$0xff]  ;;  %v3637_v22 = vld [vmem:[%s5419_s0 + $0x70] sm:$0xff] }
   0xc   :  { %3084 = vmatmul.mubr.msk.f32.vlgmr.msra.gmra.mrb[0].mxu1 %vm75_vm0, %v16_v9  ;;  %v3646_v23 = vld [vmem:[%s5419_s0 + $0x78] sm:$0xff]  ;;  %v63_v25 = vld [vmem:[%s5421_s2] sm:$0xff]  ;;  %v64_v26 = vld [vmem:[%s5421_s2 + $0x8] sm:$0xff] }
   0xd   :  { %3086 = vmatprep.mubr.msk.f32.mxu1 %vm75_vm0, %v17_v10  ;;  %v3133_v28 = vpack.c.bf16 %v64_v26, %v63_v25  ;;  %v65_v30 = vld [vmem:[%s5421_s2 + $0x10] sm:$0xff]  ;;  %v66_v31 = vld [vmem:[%s5421_s2 + $0x18] sm:$0xff] }
   0xe   :  { %v3137_v34 = vpack.c.bf16 %v66_v31, %v65_v30 }
   0xf   :  { %3134 = vmatprep.subr.bf16.mxu0 %v3133_v28 }
  0x10   :  { %3087 = vmatmul.mubr.msk.f32.gmra.mrb[2].mxu1 %vm75_vm0, %v18_v11  ;;  %3136 = vmatpush3.bf16.msra.mxu0 %v3133_v28 }
  0x11   :  { %3089 = vmatprep.mubr.msk.f32.mxu1 %vm75_vm0, %v19_v12  ;;  %3138 = vmatprep.subr.bf16.mxu0 %v3137_v34 }
  0x14   :  { %3090 = vmatmul.mubr.msk.f32.gmra.mrb[4].mxu1 %vm75_vm0, %v20_v13  ;;  %3140 = vmatpush3.bf16.msra.mxu0 %v3137_v34 }
  0x15   :  { %3092 = vmatprep.mubr.msk.f32.mxu1 %vm75_vm0, %v3582_v14 }
  0x17   :  { %3052 = vmatmul.mubr.msk.f32.vlgmr.msra.gmra.mrb[0].mxu0 %vm75_vm0, %v16_v9 }
  0x18   :  { %3093 = vmatmul.mubr.msk.f32.gmra.mrb[6].mxu1 %vm75_vm0, %v3590_v15  ;;  %3054 = vmatprep.mubr.msk.f32.mxu0 %vm75_vm0, %v17_v10 }
  0x19   :  { %3095 = vmatprep.mubr.msk.f32.mxu1 %vm75_vm0, %v3595_v16 }
  0x1b   :  { %3055 = vmatmul.mubr.msk.f32.gmra.mrb[2].mxu0 %vm75_vm0, %v18_v11 }
  0x1c   :  { %3096 = vmatmul.mubr.msk.f32.gmra.mrb[8].mxu1 %vm75_vm0, %v3604_v17  ;;  %3057 = vmatprep.mubr.msk.f32.mxu0 %vm75_vm0, %v19_v12 }
  0x1d   :  { %3098 = vmatprep.mubr.msk.f32.mxu1 %vm75_vm0, %v3609_v18 }
  0x1f   :  { %3058 = vmatmul.mubr.msk.f32.gmra.mrb[4].mxu0 %vm75_vm0, %v20_v13 }
  0x20   :  { %3099 = vmatmul.mubr.msk.f32.gmra.mrb[10].mxu1 %vm75_vm0, %v3618_v19  ;;  %3060 = vmatprep.mubr.msk.f32.mxu0 %vm75_vm0, %v3582_v14 }
  0x21   :  { %3101 = vmatprep.mubr.msk.f32.mxu1 %vm75_vm0, %v3623_v20 }
  0x23   :  { %3061 = vmatmul.mubr.msk.f32.gmra.mrb[6].mxu0 %vm75_vm0, %v3590_v15 }
  0x24   :  { %3102 = vmatmul.mubr.msk.f32.gmra.mrb[12].mxu1 %vm75_vm0, %v3632_v21  ;;  %3063 = vmatprep.mubr.msk.f32.mxu0 %vm75_vm0, %v3595_v16  ;;  %v526_v16 = vlaneseq }
  0x25   :  { %3104 = vmatprep.mubr.msk.f32.mxu1 %vm75_vm0, %v3637_v22 }
  0x27   :  { %3064 = vmatmul.mubr.msk.f32.gmra.mrb[8].mxu0 %vm75_vm0, %v3604_v17 }
  0x28   :  { %3105 = vmatmul.mubr.msk.f32.gmra.mrb[14].mxu1 %vm75_vm0, %v3646_v23  ;;  %3066 = vmatprep.mubr.msk.f32.mxu0 %vm75_vm0, %v3609_v18  ;;  %v3907_v18 = vshrl.u32 %v526_v16, 7  ;;  %v3954_v16 = vld [vmem:[%s5420_s1] sm:$0xff] }
  0x29   :  { %vm47_vm1 = vcmp.gt.f32.partialorder %v3954_v16, 0.0 }
  0x2b   :  { %3067 = vmatmul.mubr.msk.f32.gmra.mrb[10].mxu0 %vm75_vm0, %v3618_v19 }
  0x2c   :  { %3069 = vmatprep.mubr.msk.f32.mxu0 %vm75_vm0, %v3623_v20  ;;  %v71_v20 = vld [vmem:[%s5421_s2 + $0x40] sm:$0xf] }
  0x2f   :  { %3070 = vmatmul.mubr.msk.f32.gmra.mrb[12].mxu0 %vm75_vm0, %v3632_v21 }
  0x30   :  { %3072 = vmatprep.mubr.msk.f32.mxu0 %vm75_vm0, %v3637_v22  ;;  %v840_v22 = vsub.s32 1, %v3907_v18 }
  0x32   :  { %v3925_v26 = vrot.slane %v71_v20, %v840_v22 }
  0x33   :  { %3073 = vmatmul.mubr.msk.f32.gmra.mrb[14].mxu0 %vm75_vm0, %v3646_v23  ;;  %v1152_v23 = vsub.s32 2, %v3907_v18 }
  0xdf   :  { %v3650_v24 = vpop.f32.mrb[0].mxu1 }
  0xe0   :  { %1091 = vperm.xlu0 %3224, %v3650_v24   ;;  %453 = vperm.xlu1 %3222, %v3650_v24   ;;  %v3660_v27 = vpop.f32.mrb[1].mxu1 }
  0xe3   :  { %v3662_v29 = vpop.f32.mrb[2].mxu1 }
  0xe4   :  { %3223 = vset.pattern.permute.xlu1 %v3516_v32  ;;  %1099 = vperm.xlu0 %3224, %v3662_v29   ;;  %v3672_v33 = vpop.f32.mrb[3].mxu1 }
  0xe5   :  { %779 = vperm.xlu1 %3223, %v3650_v24  }
  0xe7   :  { %v3675_v35 = vpop.f32.mrb[4].mxu1 }
  0xe8   :  { %1095 = vperm.xlu0 %3224, %v3672_v33   ;;  %v3678_v36 = vpop.f32.mrb[5].mxu1 }
  0xe9   :  { %3225 = vset.pattern.permute.xlu1 %v3517_v37 }
  0xea   :  { %1403 = vperm.xlu1 %3225, %v3650_v24   ;;  %v3053_v31 = vpop.f32.mrb[0].mxu0 }
  0xeb   :  { %v3683_v38 = vpop.f32.mrb[6].mxu1  ;;  %v1055_v34 = vmul.f32 %v3053_v31, %v3925_v26 }
  0xec   :  { %3235 = vset.pattern.permute.xlu0 %v3517_v37  ;;  %v3687_v39 = vpop.f32.mrb[7].mxu1 }
  0xed   :  { %1407 = vperm.xlu0 %3235, %v3672_v33   ;;  %1071 = vst.msk [vmem:[#allocation3 + $0x88] sm:$0xff] %vm75_vm0, %v1055_v34 }
  0xee   :  { %3226 = vset.pattern.permute.xlu1 %v3515_v7 }
  0xef   :  { %448 = vperm.xlu1 %3226, %v3660_v27   ;;  %v3693_v40 = vpop.f32.mrb[8].mxu1 }
  0xf0   :  { %v3696_v41 = vpop.f32.mrb[9].mxu1 }
  0xf1   :  { %3237 = vset.pattern.permute.xlu0 %v3516_v32 }
  0xf2   :  { %795 = vperm.xlu0 %3237, %v3675_v35  }
  0xf3   :  { %3227 = vset.pattern.permute.xlu1 %v3516_v32  ;;  %v3702_v42 = vpop.f32.mrb[10].mxu1 }
  0xf4   :  { %775 = vperm.xlu1 %3227, %v3660_v27   ;;  %v3707_v43 = vpop.f32.mrb[11].mxu1 }
  0xf6   :  { %791 = vperm.xlu0 %3237, %v3678_v36  }
  0xf7   :  { %v3712_v44 = vpop.f32.mrb[12].mxu1 }
  0xf8   :  { %3228 = vset.pattern.permute.xlu1 %v3514_v6  ;;  %v3717_v45 = vpop.f32.mrb[13].mxu1 }
  0xf9   :  { %1087 = vperm.xlu1 %3228, %v3660_v27  }
  0xfa   :  { %3241 = vset.pattern.permute.xlu0 %v3514_v6 }
  0xfb   :  { %1103 = vperm.xlu0 %3241, %v3678_v36   ;;  %v3724_v46 = vpop.f32.mrb[14].mxu1 }
  0xfc   :  { %v3728_v47 = vpop.f32.mrb[15].mxu1 }
  0xfd   :  { %3229 = vset.pattern.permute.xlu1 %v3517_v37 }
  0xfe   :  { %1399 = vperm.xlu1 %3229, %v3660_v27  }
  0xff   :  { %1115 = vperm.xlu0 %3241, %v3683_v38  }
 0x102   :  { %3230 = vset.pattern.permute.xlu1 %v3515_v7 }
 0x103   :  { %463 = vperm.xlu1 %3230, %v3662_v29   ;;  %3261 = vset.pattern.permute.xlu0 %v3517_v37 }
 0x104   :  { %1443 = vperm.xlu0 %3261, %v3702_v42  }
 0x107   :  { %3231 = vset.pattern.permute.xlu1 %v3516_v32 }
 0x108   :  { %787 = vperm.xlu1 %3231, %v3662_v29   ;;  %3268 = vset.pattern.permute.xlu0 %v3514_v6 }
 0x109   :  { %1139 = vperm.xlu0 %3268, %v3712_v44  }
 0x10c   :  { %3232 = vset.pattern.permute.xlu1 %v3517_v37 }
 0x10d   :  { %1411 = vperm.xlu1 %3232, %v3662_v29   ;;  %3273 = vset.pattern.permute.xlu0 %v3517_v37 }
 0x10e   :  { %1447 = vperm.xlu0 %3273, %v3717_v45  }
 0x111   :  { %3233 = vset.pattern.permute.xlu1 %v3515_v7 }
 0x112   :  { %458 = vperm.xlu1 %3233, %v3672_v33   ;;  %3274 = vset.pattern.permute.xlu0 %v3515_v7 }
 0x113   :  { %523 = vperm.xlu0 %3274, %v3724_v46  }
 0x116   :  { %3234 = vset.pattern.permute.xlu1 %v3516_v32 }
 0x117   :  { %783 = vperm.xlu1 %3234, %v3672_v33   ;;  %3275 = vset.pattern.permute.xlu0 %v3516_v32 }
 0x118   :  { %835 = vperm.xlu0 %3275, %v3724_v46  }
 0x11b   :  { %3236 = vset.pattern.permute.xlu1 %v3515_v7 }
 0x11c   :  { %473 = vperm.xlu1 %3236, %v3675_v35   ;;  %3277 = vset.pattern.permute.xlu0 %v3515_v7 }
 0x11d   :  { %518 = vperm.xlu0 %3277, %v3728_v47  }
 0x120   :  { %3238 = vset.pattern.permute.xlu1 %v3514_v6 }
 0x121   :  { %1107 = vperm.xlu1 %3238, %v3675_v35   ;;  %3280 = vset.pattern.permute.xlu0 %v3517_v37 }
 0x122   :  { %1455 = vperm.xlu0 %3280, %v3728_v47  }
 0x125   :  { %3239 = vset.pattern.permute.xlu1 %v3517_v37 }
 0x126   :  { %1419 = vperm.xlu1 %3239, %v3675_v35  }
 0x12a   :  { %3240 = vset.pattern.permute.xlu1 %v3515_v7 }
 0x12b   :  { %468 = vperm.xlu1 %3240, %v3678_v36  }
 0x12f   :  { %3242 = vset.pattern.permute.xlu1 %v3517_v37 }
 0x130   :  { %1415 = vperm.xlu1 %3242, %v3678_v36  }
 0x134   :  { %3243 = vset.pattern.permute.xlu1 %v3515_v7 }
 0x135   :  { %483 = vperm.xlu1 %3243, %v3683_v38  }
 0x139   :  { %3244 = vset.pattern.permute.xlu1 %v3516_v32 }
 0x13a   :  { %803 = vperm.xlu1 %3244, %v3683_v38  }
 0x13e   :  { %3245 = vset.pattern.permute.xlu1 %v3517_v37 }
 0x13f   :  { %1427 = vperm.xlu1 %3245, %v3683_v38  }
 0x140   :  { %414 = vxpose.xlu0.b32.start [1/16] (narrow) %v3660_v27, 8  ;;  %v3927_v27 = vrot.slane %v71_v20, %v1152_v23 }
 0x143   :  { %3246 = vset.pattern.permute.xlu1 %v3515_v7 }
 0x144   :  { %478 = vperm.xlu1 %3246, %v3687_v39   ;;  %415 = vxpose.xlu0.b32.cont [2/16] (narrow) %v3650_v24, 8  ;;  %v1464_v24 = vsub.s32 3, %v3907_v18 }
 0x146   :  { %v3931_v28 = vrot.slane %v71_v20, %v1464_v24 }
 0x148   :  { %3247 = vset.pattern.permute.xlu1 %v3516_v32  ;;  %416 = vxpose.xlu0.b32.cont [3/16] (narrow) %v3672_v33, 8 }
 0x149   :  { %799 = vperm.xlu1 %3247, %v3687_v39  }
 0x14c   :  { %417 = vxpose.xlu0.b32.cont [4/16] (narrow) %v3662_v29, 8 }
 0x14d   :  { %3248 = vset.pattern.permute.xlu1 %v3514_v6 }
 0x14e   :  { %1111 = vperm.xlu1 %3248, %v3687_v39  }
 0x150   :  { %418 = vxpose.xlu0.b32.cont [5/16] (narrow) %v3678_v36, 8  ;;  %v1679_v36 = vmul.f32 %v3053_v31, %v3931_v28 }
 0x152   :  { %3249 = vset.pattern.permute.xlu1 %v3517_v37  ;;  %1695 = vst.msk [vmem:[#allocation3 + $0x188] sm:$0xff] %vm75_vm0, %v1679_v36 }
 0x153   :  { %1423 = vperm.xlu1 %3249, %v3687_v39  }
 0x154   :  { %419 = vxpose.xlu0.b32.cont [6/16] (narrow) %v3675_v35, 8  ;;  %v1367_v35 = vmul.f32 %v3053_v31, %v3927_v27 }
 0x156   :  { %1383 = vst.msk [vmem:[#allocation3 + $0x108] sm:$0xff] %vm75_vm0, %v1367_v35 }
 0x157   :  { %3250 = vset.pattern.permute.xlu1 %v3515_v7 }
 0x158   :  { %493 = vperm.xlu1 %3250, %v3693_v40   ;;  %420 = vxpose.xlu0.b32.cont [7/16] (narrow) %v3687_v39, 8 }
 0x15c   :  { %3251 = vset.pattern.permute.xlu1 %v3516_v32  ;;  %421 = vxpose.xlu0.b32.cont [8/16] (narrow) %v3683_v38, 8  ;;  %v190_v38 = vpop.f32.mrb[1].mxu0 }
 0x15d   :  { %811 = vperm.xlu1 %3251, %v3693_v40  }
 0x15f   :  { %v3803_v48 = vpop.permute.xlu1 %453  ;;  %v3813_v50 = vpop.permute.xlu0 %1091 }
 0x160   :  { %422 = vxpose.xlu0.b32.cont [9/16] (narrow) %v3696_v41, 8 }
 0x161   :  { %3252 = vset.pattern.permute.xlu1 %v3514_v6 }
 0x162   :  { %1123 = vperm.xlu1 %3252, %v3693_v40  }
 0x163   :  { %v3821_v52 = vpop.permute.xlu0 %1099 }
 0x164   :  { %v3808_v49 = vpop.permute.xlu1 %779  ;;  %423 = vxpose.xlu0.b32.cont [10/16] (narrow) %v3693_v40, 8 }
 0x166   :  { %3253 = vset.pattern.permute.xlu1 %v3517_v37 }
 0x167   :  { %1435 = vperm.xlu1 %3253, %v3693_v40   ;;  %v3830_v55 = vpop.permute.xlu0 %1095 }
 0x168   :  { %424 = vxpose.xlu0.b32.cont [11/16] (narrow) %v3707_v43, 8 }
 0x169   :  { %v3816_v51 = vpop.permute.xlu1 %1403 }
 0x16b   :  { %3254 = vset.pattern.permute.xlu1 %v3515_v7 }
 0x16c   :  { %488 = vperm.xlu1 %3254, %v3696_v41   ;;  %425 = vxpose.xlu0.b32.cont [12/16] (narrow) %v3702_v42, 8  ;;  %v3838_v57 = vpop.permute.xlu0 %1407 }
 0x16e   :  { %v3823_v53 = vpop.permute.xlu1 %448 }
 0x170   :  { %3255 = vset.pattern.permute.xlu1 %v3516_v32  ;;  %426 = vxpose.xlu0.b32.cont [13/16] (narrow) %v3717_v45, 8 }
 0x171   :  { %807 = vperm.xlu1 %3255, %v3696_v41   ;;  %v3846_v59 = vpop.permute.xlu0 %795 }
 0x173   :  { %v3828_v54 = vpop.permute.xlu1 %775 }
 0x174   :  { %427 = vxpose.xlu0.b32.cont [14/16] (narrow) %v3712_v44, 8 }
 0x175   :  { %3256 = vset.pattern.permute.xlu1 %v3514_v6  ;;  %v3853_v61 = vpop.permute.xlu0 %791 }
 0x176   :  { %1119 = vperm.xlu1 %3256, %v3696_v41  }
 0x178   :  { %v3835_v56 = vpop.permute.xlu1 %1087  ;;  %428 = vxpose.xlu0.b32.cont [15/16] (narrow) %v3728_v47, 8 }
 0x17a   :  { %3257 = vset.pattern.permute.xlu1 %v3517_v37  ;;  %v3859_v63 = vpop.permute.xlu0 %1103 }
 0x17b   :  { %1431 = vperm.xlu1 %3257, %v3696_v41   ;;  %v1054_v41 = vmul.f32 %v3925_v26, %v190_v38 }
 0x17c   :  { %429 = vxpose.xlu0.b32.end [16/16] (narrow) %v3724_v46, 8 }
 0x17d   :  { %v3843_v58 = vpop.permute.xlu1 %1399  ;;  %1070 = vst.msk [vmem:[#allocation3 + $0x80] sm:$0xff] %vm75_vm0, %v1054_v41 }
 0x17e   :  { %v3867_v2 = vpop.permute.xlu0 %1115 }
 0x17f   :  { %3258 = vset.pattern.permute.xlu1 %v3515_v7 }
 0x180   :  { %503 = vperm.xlu1 %3258, %v3702_v42  }
 0x182   :  { %v3849_v60 = vpop.permute.xlu1 %463 }
 0x183   :  { %v3873_v4 = vpop.permute.xlu0 %1443 }
 0x184   :  { %3259 = vset.pattern.permute.xlu1 %v3516_v32 }
 0x185   :  { %819 = vperm.xlu1 %3259, %v3702_v42  }
 0x187   :  { %v3855_v62 = vpop.permute.xlu1 %787 }
 0x188   :  { %v3880_v8 = vpop.permute.xlu0 %1139 }
 0x189   :  { %3260 = vset.pattern.permute.xlu1 %v3514_v6 }
 0x18a   :  { %1131 = vperm.xlu1 %3260, %v3702_v42   ;;  %v1366_v42 = vmul.f32 %v3927_v27, %v190_v38 }
 0x18c   :  { %v3861_v0 = vpop.permute.xlu1 %1411  ;;  %1382 = vst.msk [vmem:[#allocation3 + $0x100] sm:$0xff] %vm75_vm0, %v1366_v42 }
 0x18d   :  { %v3887_v10 = vpop.permute.xlu0 %1447 }
 0x18e   :  { %3262 = vset.pattern.permute.xlu1 %v3515_v7  ;;  %5440 = vst [vmem:[#allocation7_spill] sm:$0xff] %v3887_v10 }
 0x18f   :  { %498 = vperm.xlu1 %3262, %v3707_v43  }
 0x191   :  { %v3865_v1 = vpop.permute.xlu1 %458 }
 0x192   :  { %v3893_v12 = vpop.permute.xlu0 %523 }
 0x193   :  { %3263 = vset.pattern.permute.xlu1 %v3516_v32  ;;  %5441 = vst [vmem:[#allocation8_spill] sm:$0xff] %v3893_v12 }
 0x194   :  { %815 = vperm.xlu1 %3263, %v3707_v43  }
 0x196   :  { %v3871_v3 = vpop.permute.xlu1 %783 }
 0x197   :  { %v3901_v15 = vpop.permute.xlu0 %835 }
 0x198   :  { %3264 = vset.pattern.permute.xlu1 %v3514_v6  ;;  %5442 = vst [vmem:[#allocation9_spill] sm:$0xff] %v3901_v15 }
 0x199   :  { %1127 = vperm.xlu1 %3264, %v3707_v43  }
 0x19b   :  { %v3877_v5 = vpop.permute.xlu1 %473 }
 0x19c   :  { %v3909_v19 = vpop.permute.xlu0 %518 }
 0x19d   :  { %3265 = vset.pattern.permute.xlu1 %v3517_v37  ;;  %5443 = vst [vmem:[#allocation10_spill] sm:$0xff] %v3909_v19 }
 0x19e   :  { %1439 = vperm.xlu1 %3265, %v3707_v43   ;;  %v1678_v43 = vmul.f32 %v3931_v28, %v190_v38 }
 0x1a0   :  { %v3883_v9 = vpop.permute.xlu1 %1107  ;;  %1694 = vst.msk [vmem:[#allocation3 + $0x180] sm:$0xff] %vm75_vm0, %v1678_v43  ;;  %v32_v43 = vld [vmem:[%s5420_s1 + $0x8] sm:$0xff] }
 0x1a1   :  { %v3933_v29 = vpop.permute.xlu0 %1455  ;;  %vm48_vm5 = vcmp.gt.f32.partialorder %v32_v43, 0.0 }
 0x1a2   :  { %3266 = vset.pattern.permute.xlu1 %v3515_v7  ;;  %5444 = vst [vmem:[#allocation11_spill] sm:$0xff] %v3933_v29 }
 0x1a3   :  { %513 = vperm.xlu1 %3266, %v3712_v44  }
 0x1a5   :  { %v3889_v11 = vpop.permute.xlu1 %1419 }
 0x1a7   :  { %3267 = vset.pattern.permute.xlu1 %v3516_v32 }
 0x1a8   :  { %827 = vperm.xlu1 %3267, %v3712_v44  }
 0x1aa   :  { %v3895_v13 = vpop.permute.xlu1 %468 }
 0x1ac   :  { %3269 = vset.pattern.permute.xlu1 %v3517_v37 }
 0x1ad   :  { %1451 = vperm.xlu1 %3269, %v3712_v44  }
 0x1af   :  { %v3899_v14 = vpop.permute.xlu1 %1415 }
 0x1b1   :  { %3270 = vset.pattern.permute.xlu1 %v3515_v7  ;;  %v528_v7 = vsub.s32 0, %v3907_v18 }
 0x1b2   :  { %508 = vperm.xlu1 %3270, %v3717_v45  }
 0x1b3   :  { %v3923_v25 = vrot.slane %v71_v20, %v528_v7  ;;  %v3964_v20 = vpop.f32.mrb[2].mxu0 }
 0x1b4   :  { %v3905_v17 = vpop.permute.xlu1 %483 }
 0x1b5   :  { %v743_v33 = vmul.f32 %v3053_v31, %v3923_v25  ;;  %v742_v40 = vmul.f32 %v3923_v25, %v190_v38 }
 0x1b6   :  { %3271 = vset.pattern.permute.xlu1 %v3516_v32 }
 0x1b7   :  { %823 = vperm.xlu1 %3271, %v3717_v45   ;;  %759 = vst.msk [vmem:[#allocation3 + $0x8] sm:$0xff] %vm75_vm0, %v743_v33  ;;  %758 = vst.msk [vmem:[#allocation3] sm:$0xff] %vm75_vm0, %v742_v40  ;;  %v3972_v33 = vpop.f32.mrb[3].mxu0 }
 0x1b9   :  { %v3916_v21 = vpop.permute.xlu1 %803 }
 0x1bb   :  { %3272 = vset.pattern.permute.xlu1 %v3514_v6 }
 0x1bc   :  { %1135 = vperm.xlu1 %3272, %v3717_v45  }
 0x1be   :  { %v3936_v30 = vpop.permute.xlu1 %1427 }
 0x1c0   :  { %1147 = vperm.xlu1 %3272, %v3724_v46   ;;  %v430_v39 = vpop.trf.xlu0 }
 0x1c1   :  { %v3947_v44 = vrot.slane %v430_v39, %v528_v7  ;;  %v3949_v45 = vrot.slane %v430_v39, %v840_v22  ;;  %v3989_v41 = vrot.slane %v430_v39, %v1152_v23  ;;  %v4021_v29 = vrot.slane %v430_v39, %v1464_v24 }
 0x1c3   :  { %v3966_v7 = vpop.permute.xlu1 %478  ;;  %v530_v22 = vadd.f32 %v3947_v44, %v3823_v53  ;;  %v842_v31 = vadd.f32 %v3949_v45, %v3828_v54  ;;  %v531_v36 = vadd.f32 %v3947_v44, %v3803_v48  ;;  %v3979_v53 = vpop.f32.mrb[4].mxu0  ;;  %v843_v42 = vadd.f32 %v3949_v45, %v3808_v49 }
 0x1c4   :  { %3276 = vset.pattern.permute.xlu1 %v3517_v37  ;;  %v3987_v37 = vpop.f32.mrb[5].mxu0  ;;  %v1469_v16 = vadd.f32 %v4021_v29, %v3861_v0  ;;  %v844_v0 = vadd.f32 %v3949_v45, %v3871_v3  ;;  %v1156_v3 = vadd.f32 %v3989_v41, %v3830_v55 }
 0x1c5   :  { %1459 = vperm.xlu1 %3276, %v3724_v46   ;;  %vm546_vm2 = vcmp.gt.f32.partialorder %v530_v22, 0.0  ;;  %v562_v34 = vmul.f32 0.2, %v530_v22  ;;  %v874_v35 = vmul.f32 0.2, %v842_v31  ;;  %vm858_vm3 = vcmp.gt.f32.partialorder %v842_v31, 0.0 }
 0x1c6   :  { %v563_v48 = vmul.f32 0.2, %v531_v36  ;;  %vm547_vm4 = vcmp.gt.f32.partialorder %v531_v36, 0.0  ;;  %v875_v49 = vmul.f32 0.2, %v843_v42  ;;  %vm859_vm6 = vcmp.gt.f32.partialorder %v843_v42, 0.0 }
 0x1c7   :  { %v578_v38 = vsel %vm546_vm2, %v530_v22, %v562_v34  ;;  %v890_v46 = vsel %vm858_vm3, %v842_v31, %v874_v35  ;;  %v4003_v22 = vpop.f32.mrb[6].mxu0  ;;  %v1154_v34 = vadd.f32 %v3989_v41, %v3835_v56  ;;  %v1501_v10 = vmul.f32 0.2, %v1469_v16 }
 0x1c8   :  { %v3981_v40 = vpop.permute.xlu1 %799  ;;  %v3985_v54 = vsel %vm47_vm1, %v578_v38, -1e+30  ;;  %v4001_v23 = vsel %vm47_vm1, %v890_v46, -1e+30  ;;  %v579_v31 = vsel %vm547_vm4, %v531_v36, %v563_v48  ;;  %v4010_v35 = vpop.f32.mrb[7].mxu0  ;;  %v891_v36 = vsel %vm859_vm6, %v843_v42, %v875_v49 }
 0x1c9   :  { %5445 = vst [vmem:[#allocation12_spill] sm:$0xff] %v3981_v40  ;;  %5446 = vst [vmem:[#allocation13_spill] sm:$0xff] %v3985_v54  ;;  %3278 = vset.pattern.permute.xlu1 %v3516_v32  ;;  %610 = vmax.xlane.f32.xlu0 %v3985_v54  ;;  %v4014_v38 = vpop.f32.mrb[8].mxu0  ;;  %v4017_v46 = vsel %vm48_vm5, %v579_v31, -1e+30  ;;  %v1155_v48 = vadd.f32 %v3989_v41, %v3813_v50  ;;  %vm1170_vm7 = vcmp.gt.f32.partialorder %v1154_v34, 0.0 }
 0x1ca   :  { %831 = vperm.xlu1 %3278, %v3728_v47   ;;  %5447 = vst [vmem:[#allocation14_spill] sm:$0xff] %v4001_v23  ;;  %5449 = vst [vmem:[#allocation16_spill] sm:$0xff] %v4017_v46  ;;  %v1186_v56 = vmul.f32 0.2, %v1154_v34  ;;  %v4035_v18 = vsel %vm48_vm5, %v891_v36, -1e+30  ;;  %v1466_v42 = vadd.f32 %v4021_v29, %v3843_v58 }
 0x1cb   :  { %5451 = vst [vmem:[#allocation18_spill] sm:$0xff] %v4035_v18  ;;  %v1187_v39 = vmul.f32 0.2, %v1155_v48  ;;  %vm1171_vm8 = vcmp.gt.f32.partialorder %v1155_v48, 0.0  ;;  %vm1485_vm15 = vcmp.gt.f32.partialorder %v1469_v16, 0.0  ;;  %vm860_vm3 = vcmp.gt.f32.partialorder %v844_v0, 0.0 }
 0x1cc   :  { %v1202_v24 = vsel %vm1170_vm7, %v1154_v34, %v1186_v56  ;;  %v1498_v36 = vmul.f32 0.2, %v1466_v42  ;;  %vm1482_vm9 = vcmp.gt.f32.partialorder %v1466_v42, 0.0  ;;  %vm1172_vm6 = vcmp.gt.f32.partialorder %v1156_v3, 0.0 }
 0x1cd   :  { %v4005_v32 = vpop.permute.xlu1 %1111  ;;  %922 = vmax.xlane.f32.xlu0 %v4001_v23  ;;  %v1203_v54 = vsel %vm1171_vm8, %v1155_v48, %v1187_v39  ;;  %v533_v48 = vadd.f32 %v3947_v44, %v3849_v60  ;;  %v1157_v60 = vadd.f32 %v3989_v41, %v3821_v52  ;;  %v4084_v52 = vld [vmem:[%s5420_s1 + $0x10] sm:$0xff] }
 0x1ce   :  { %5448 = vst [vmem:[#allocation15_spill] sm:$0xff] %v4005_v32  ;;  %3279 = vset.pattern.permute.xlu1 %v3514_v6  ;;  %v4026_v6 = vpop.f32.mrb[9].mxu0  ;;  %v4052_v58 = vsel %vm48_vm5, %v1203_v54, -1e+30  ;;  %vm49_vm2 = vcmp.gt.f32.partialorder %v4084_v52, 0.0 }
 0x1cf   :  { %1143 = vperm.xlu1 %3279, %v3728_v47   ;;  %v4030_v47 = vpop.f32.mrb[10].mxu0  ;;  %5453 = vst [vmem:[#allocation20_spill] sm:$0xff] %v4052_v58  ;;  %v565_v12 = vmul.f32 0.2, %v533_v48  ;;  %vm549_vm11 = vcmp.gt.f32.partialorder %v533_v48, 0.0  ;;  %vm1173_vm14 = vcmp.gt.f32.partialorder %v1157_v60, 0.0 }
 0x1d0   :  { %v4032_v31 = vpop.f32.mrb[11].mxu0 }
 0x1d1   :  { %612 = vmax.xlane.f32.xlu0 %v4017_v46  ;;  %v4040_v50 = vpop.f32.mrb[12].mxu0  ;;  %v4044_v46 = vsel %vm47_vm1, %v1202_v24, -1e+30  ;;  %v1514_v24 = vsel %vm1482_vm9, %v1466_v42, %v1498_v36  ;;  %v34_v42 = vld [vmem:[%s5420_s1 + $0x18] sm:$0xff]  ;;  %v532_v36 = vadd.f32 %v3947_v44, %v3865_v1 }
 0x1d2   :  { %v4028_v23 = vpop.permute.xlu1 %1423  ;;  %5452 = vst [vmem:[#allocation19_spill] sm:$0xff] %v4044_v46  ;;  %v4049_v34 = vpop.f32.mrb[13].mxu0  ;;  %vm50_vm12 = vcmp.gt.f32.partialorder %v34_v42, 0.0 }
 0x1d3   :  { %5450 = vst [vmem:[#allocation17_spill] sm:$0xff] %v4028_v23  ;;  %v4054_v19 = vpop.f32.mrb[14].mxu0  ;;  %v564_v43 = vmul.f32 0.2, %v532_v36  ;;  %v1517_v23 = vsel %vm1485_vm15, %v1469_v16, %v1501_v10 }
 0x1d4   :  { %v4059_v39 = vpop.f32.mrb[15].mxu0  ;;  %v4112_v10 = vsel %vm50_vm12, %v1517_v23, -1e+30  ;;  %v4127_v23 = vadd.f32 %v3947_v44, %v3877_v5  ;;  %v4143_v5 = vadd.f32 %v3989_v41, %v3883_v9 }
 0x1d5   :  { %924 = vmax.xlane.f32.xlu0 %v4035_v18  ;;  %v1467_v18 = vadd.f32 %v4021_v29, %v3816_v51  ;;  %v4063_v51 = vsel %vm47_vm1, %v1514_v24, -1e+30  ;;  %vm548_vm1 = vcmp.gt.f32.partialorder %v532_v36, 0.0 }
 0x1d6   :  { %5454 = vst [vmem:[#allocation21_spill] sm:$0xff] %v4063_v51 }
 0x1d7   :  { %v494_v49 = vpop.permute.xlu1 %493  ;;  %v1499_v15 = vmul.f32 0.2, %v1467_v18  ;;  %vm1483_vm10 = vcmp.gt.f32.partialorder %v1467_v18, 0.0 }
 0x1d8   :  { %v539_v1 = vadd.f32 %v3947_v44, %v494_v49 }
 0x1d9   :  { %1234 = vmax.xlane.f32.xlu0 %v4044_v46  ;;  %v1515_v54 = vsel %vm1483_vm10, %v1467_v18, %v1499_v15 }
 0x1da   :  { %v4078_v15 = vsel %vm48_vm5, %v1515_v54, -1e+30  ;;  %v4096_v54 = vld [vmem:[%s5420_s1 + $0x48] sm:$0xff]  ;;  %v571_v32 = vmul.f32 0.2, %v539_v1  ;;  %vm555_vm5 = vcmp.gt.f32.partialorder %v539_v1, 0.0 }
 0x1db   :  { %5455 = vst [vmem:[#allocation22_spill] sm:$0xff] %v4078_v15  ;;  %vm56_vm4 = vcmp.gt.f32.partialorder %v4096_v54, 0.0  ;;  %v1063_v54 = vmul.f32 %v4014_v38, %v3925_v26 }
 0x1dc   :  { %v812_v56 = vpop.permute.xlu1 %811 }
 0x1dd   :  { %1236 = vmax.xlane.f32.xlu0 %v4052_v58  ;;  %v845_v58 = vadd.f32 %v3949_v45, %v3855_v62  ;;  %v581_v62 = vsel %vm549_vm11, %v533_v48, %v565_v12  ;;  %v851_v49 = vadd.f32 %v3949_v45, %v812_v56  ;;  %v1188_v56 = vmul.f32 0.2, %v1156_v3  ;;  %1079 = vst.msk [vmem:[#allocation3 + $0xc8] sm:$0xff] %vm75_vm0, %v1063_v54 }
 0x1de   :  { %v4090_v12 = vsel %vm50_vm12, %v581_v62, -1e+30  ;;  %v876_v62 = vmul.f32 0.2, %v844_v0 }
 0x1df   :  { %v877_v18 = vmul.f32 0.2, %v845_v58  ;;  %vm861_vm13 = vcmp.gt.f32.partialorder %v845_v58, 0.0  ;;  %5456 = vst [vmem:[#allocation23_spill] sm:$0xff] %v4090_v12  ;;  %vm867_vm7 = vcmp.gt.f32.partialorder %v851_v49, 0.0 }
 0x1e0   :  { %v892_v16 = vsel %vm860_vm3, %v844_v0, %v876_v62  ;;  %v745_v0 = vmul.f32 %v3964_v20, %v3923_v25  ;;  %v4155_v62 = vld [vmem:[%s5420_s1 + $0x28] sm:$0xff] }
 0x1e1   :  { %v1124_v46 = vpop.permute.xlu1 %1123  ;;  %1546 = vmax.xlane.f32.xlu0 %v4063_v51  ;;  %v1189_v51 = vmul.f32 0.2, %v1157_v60  ;;  %v893_v48 = vsel %vm861_vm13, %v845_v58, %v877_v18  ;;  %v580_v58 = vsel %vm548_vm1, %v532_v36, %v564_v43  ;;  %vm52_vm11 = vcmp.gt.f32.partialorder %v4155_v62, 0.0 }
 0x1e2   :  { %v1163_v40 = vadd.f32 %v3989_v41, %v1124_v46  ;;  %v4104_v18 = vsel %vm50_vm12, %v893_v48, -1e+30  ;;  %v4116_v46 = vadd.f32 %v4021_v29, %v3838_v57  ;;  %v4131_v57 = vadd.f32 %v3949_v45, %v3846_v59  ;;  %761 = vst.msk [vmem:[#allocation3 + $0x18] sm:$0xff] %vm75_vm0, %v745_v0 }
 0x1e3   :  { %vm551_vm13 = vcmp.gt.f32.partialorder %v4127_v23, 0.0  ;;  %vm1175_vm1 = vcmp.gt.f32.partialorder %v4143_v5, 0.0 }
 0x1e4   :  { %v1195_v36 = vmul.f32 0.2, %v1163_v40  ;;  %vm1179_vm8 = vcmp.gt.f32.partialorder %v1163_v40, 0.0  ;;  %vm1484_vm9 = vcmp.gt.f32.partialorder %v4116_v46, 0.0  ;;  %v4150_v48 = vmul.f32 0.2, %v4116_v46 }
 0x1e5   :  { %1548 = vmax.xlane.f32.xlu0 %v4078_v15  ;;  %v1205_v15 = vsel %vm1173_vm14, %v1157_v60, %v1189_v51  ;;  %v883_v51 = vmul.f32 0.2, %v851_v49  ;;  %v4120_v60 = vsel %vm49_vm2, %v580_v58, -1e+30  ;;  %vm863_vm15 = vcmp.gt.f32.partialorder %v4131_v57, 0.0 }
 0x1e6   :  { %v1436_v24 = vpop.permute.xlu1 %1435  ;;  %v4109_v55 = vsel %vm50_vm12, %v1205_v15, -1e+30  ;;  %5457 = vst [vmem:[#allocation24_spill] sm:$0xff] %v4120_v60  ;;  %v587_v15 = vsel %vm555_vm5, %v539_v1, %v571_v32  ;;  %v4138_v32 = vsel %vm49_vm2, %v892_v16, -1e+30  ;;  %v1211_v58 = vsel %vm1179_vm8, %v1163_v40, %v1195_v36 }
 0x1e7   :  { %v1475_v43 = vadd.f32 %v4021_v29, %v1436_v24  ;;  %v1204_v24 = vsel %vm1172_vm6, %v1156_v3, %v1188_v56  ;;  %v4147_v59 = vsel %vm56_vm4, %v587_v15, -1e+30  ;;  %v899_v1 = vsel %vm867_vm7, %v851_v49, %v883_v51  ;;  %v4165_v49 = vld [vmem:[%s5420_s1 + $0x40] sm:$0xff] }
 0x1e8   :  { %5458 = vst [vmem:[#allocation25_spill] sm:$0xff] %v4147_v59  ;;  %v1057_v3 = vmul.f32 %v3964_v20, %v3925_v26  ;;  %v1369_v56 = vmul.f32 %v3964_v20, %v3927_v27  ;;  %v1681_v51 = vmul.f32 %v3964_v20, %v3931_v28  ;;  %v744_v16 = vmul.f32 %v3923_v25, %v3972_v33 }
 0x1e9   :  { %616 = vmax.xlane.f32.xlu0 %v4090_v12  ;;  %v1507_v9 = vmul.f32 0.2, %v1475_v43  ;;  %v1056_v15 = vmul.f32 %v3925_v26, %v3972_v33  ;;  %v1368_v40 = vmul.f32 %v3927_v27, %v3972_v33  ;;  %v1680_v36 = vmul.f32 %v3931_v28, %v3972_v33 }
 0x1ea   :  { %1073 = vst.msk [vmem:[#allocation3 + $0x98] sm:$0xff] %vm75_vm0, %v1057_v3  ;;  %vm1491_vm10 = vcmp.gt.f32.partialorder %v1475_v43, 0.0  ;;  %1385 = vst.msk [vmem:[#allocation3 + $0x118] sm:$0xff] %vm75_vm0, %v1369_v56  ;;  %v747_v20 = vmul.f32 %v3979_v53, %v3923_v25  ;;  %v1059_v3 = vmul.f32 %v3979_v53, %v3925_v26  ;;  %v4193_v33 = vsel %vm56_vm4, %v899_v1, -1e+30 }
 0x1eb   :  { %v489_v12 = vpop.permute.xlu1 %488  ;;  %1697 = vst.msk [vmem:[#allocation3 + $0x198] sm:$0xff] %vm75_vm0, %v1681_v51  ;;  %vm55_vm12 = vcmp.gt.f32.partialorder %v4165_v49, 0.0  ;;  %760 = vst.msk [vmem:[#allocation3 + $0x10] sm:$0xff] %vm75_vm0, %v744_v16  ;;  %v1683_v56 = vmul.f32 %v3979_v53, %v3931_v28  ;;  %v746_v1 = vmul.f32 %v3923_v25, %v3987_v37  ;;  %v4209_v51 = vsel %vm49_vm2, %v1204_v24, -1e+30 }
 0x1ec   :  { %v4181_v0 = vadd.f32 %v3947_v44, %v489_v12  ;;  %1072 = vst.msk [vmem:[#allocation3 + $0x90] sm:$0xff] %vm75_vm0, %v1056_v15  ;;  %1384 = vst.msk [vmem:[#allocation3 + $0x110] sm:$0xff] %vm75_vm0, %v1368_v40  ;;  %v1371_v12 = vmul.f32 %v3979_v53, %v3927_v27  ;;  %v1058_v16 = vmul.f32 %v3925_v26, %v3987_v37  ;;  %v4221_v40 = vsel %vm56_vm4, %v1211_v58, -1e+30  ;;  %v1790_v58 = vld [vmem:[#allocation3 + $0x80] sm:$0xff] }
 0x1ed   :  { %928 = vmax.xlane.f32.xlu0 %v4104_v18  ;;  %1696 = vst.msk [vmem:[#allocation3 + $0x190] sm:$0xff] %vm75_vm0, %v1680_v36  ;;  %763 = vst.msk [vmem:[#allocation3 + $0x28] sm:$0xff] %vm75_vm0, %v747_v20  ;;  %v1370_v15 = vmul.f32 %v3927_v27, %v3987_v37  ;;  %v1682_v53 = vmul.f32 %v3931_v28, %v3987_v37  ;;  %v1523_v24 = vsel %vm1491_vm10, %v1475_v43, %v1507_v9 }
 0x1ee   :  { %1075 = vst.msk [vmem:[#allocation3 + $0xa8] sm:$0xff] %vm75_vm0, %v1059_v3  ;;  %5459 = vst [vmem:[#allocation26_spill] sm:$0xff] %v4221_v40  ;;  %v567_v36 = vmul.f32 0.2, %v4127_v23  ;;  %v570_v20 = vmul.f32 0.2, %v4181_v0  ;;  %v749_v37 = vmul.f32 %v4003_v22, %v3923_v25  ;;  %v1061_v43 = vmul.f32 %v4003_v22, %v3925_v26 }
 0x1ef   :  { %1387 = vst.msk [vmem:[#allocation3 + $0x128] sm:$0xff] %vm75_vm0, %v1371_v12  ;;  %1699 = vst.msk [vmem:[#allocation3 + $0x1a8] sm:$0xff] %vm75_vm0, %v1683_v56  ;;  %v1373_v9 = vmul.f32 %v4003_v22, %v3927_v27  ;;  %v1791_v3 = vld [vmem:[#allocation3 + $0x88] sm:$0xff]  ;;  %vm554_vm14 = vcmp.gt.f32.partialorder %v4181_v0, 0.0 }
 0x1f0   :  { %v4123_v42 = vpop.permute.xlu1 %807  ;;  %762 = vst.msk [vmem:[#allocation3 + $0x20] sm:$0xff] %vm75_vm0, %v746_v1  ;;  %1074 = vst.msk [vmem:[#allocation3 + $0xa0] sm:$0xff] %vm75_vm0, %v1058_v16  ;;  %v1685_v1 = vmul.f32 %v4003_v22, %v3931_v28  ;;  %v748_v16 = vmul.f32 %v3923_v25, %v4010_v35  ;;  %v1372_v22 = vmul.f32 %v3927_v27, %v4010_v35 }
 0x1f1   :  { %1240 = vmax.xlane.f32.xlu0 %v4109_v55  ;;  %1386 = vst.msk [vmem:[#allocation3 + $0x120] sm:$0xff] %vm75_vm0, %v1370_v15  ;;  %1698 = vst.msk [vmem:[#allocation3 + $0x1a0] sm:$0xff] %vm75_vm0, %v1682_v53  ;;  %v1060_v15 = vmul.f32 %v3925_v26, %v4010_v35  ;;  %v1774_v53 = vld [vmem:[#allocation3] sm:$0xff] }
 0x1f2   :  { %765 = vst.msk [vmem:[#allocation3 + $0x38] sm:$0xff] %vm75_vm0, %v749_v37  ;;  %1077 = vst.msk [vmem:[#allocation3 + $0xb8] sm:$0xff] %vm75_vm0, %v1061_v43  ;;  %v4269_v37 = vsel %vm56_vm4, %v1523_v24, -1e+30  ;;  %v583_v43 = vsel %vm551_vm13, %v4127_v23, %v567_v36  ;;  %v1375_v23 = vmul.f32 %v4014_v38, %v3927_v27  ;;  %v1777_v24 = vld [vmem:[#allocation3 + $0x18] sm:$0xff] }
 0x1f3   :  { %628 = vmax.xlane.f32.xlu1 %v4147_v59  ;;  %1389 = vst.msk [vmem:[#allocation3 + $0x138] sm:$0xff] %vm75_vm0, %v1373_v9  ;;  %1701 = vst.msk [vmem:[#allocation3 + $0x1b8] sm:$0xff] %vm75_vm0, %v1685_v1  ;;  %v751_v1 = vmul.f32 %v4014_v38, %v3923_v25 }
 0x1f4   :  { %764 = vst.msk [vmem:[#allocation3 + $0x30] sm:$0xff] %vm75_vm0, %v748_v16  ;;  %1076 = vst.msk [vmem:[#allocation3 + $0xb0] sm:$0xff] %vm75_vm0, %v1060_v15  ;;  %v1776_v15 = vld [vmem:[#allocation3 + $0x10] sm:$0xff] }
 0x1f5   :  { %v1120_v59 = vpop.permute.xlu1 %1119  ;;  %1552 = vmax.xlane.f32.xlu0 %v4112_v10  ;;  %1388 = vst.msk [vmem:[#allocation3 + $0x130] sm:$0xff] %vm75_vm0, %v1372_v22  ;;  %767 = vst.msk [vmem:[#allocation3 + $0x48] sm:$0xff] %vm75_vm0, %v751_v1  ;;  %v3155_v1 = vpack.c.bf16 %v1777_v24, %v1776_v15  ;;  %v1795_v54 = vld [vmem:[#allocation3 + $0xa8] sm:$0xff]  ;;  %v1377_v24 = vmul.f32 %v4030_v47, %v3927_v27 }
 0x1f6   :  { %v1162_v12 = vadd.f32 %v3989_v41, %v1120_v59  ;;  %v1516_v59 = vsel %vm1484_vm9, %v4116_v46, %v4150_v48  ;;  %v1684_v46 = vmul.f32 %v3931_v28, %v4010_v35  ;;  %v3149_v48 = vpack.c.bf16 %v1791_v3, %v1790_v58  ;;  %v1792_v58 = vld [vmem:[#allocation3 + $0x90] sm:$0xff]  ;;  %v1793_v3 = vld [vmem:[#allocation3 + $0x98] sm:$0xff]  ;;  %1391 = vst.msk [vmem:[#allocation3 + $0x148] sm:$0xff] %vm75_vm0, %v1375_v23 }
 0x1f7   :  { %940 = vmax.xlane.f32.xlu1 %v4193_v33  ;;  %v586_v35 = vsel %vm554_vm14, %v4181_v0, %v570_v20  ;;  %v1687_v0 = vmul.f32 %v4014_v38, %v3931_v28  ;;  %v750_v20 = vmul.f32 %v3923_v25, %v4026_v6  ;;  %v1062_v38 = vmul.f32 %v3925_v26, %v4026_v6 }
 0x1f8   :  { %v1194_v16 = vmul.f32 0.2, %v1162_v12  ;;  %1700 = vst.msk [vmem:[#allocation3 + $0x1b0] sm:$0xff] %vm75_vm0, %v1684_v46  ;;  %3150 = vmatprep.subr.bf16.mxu0 %v3149_v48  ;;  %vm1178_vm3 = vcmp.gt.f32.partialorder %v1162_v12, 0.0  ;;  %v4312_v52 = vsel %vm55_vm12, %v586_v35, -1e+30 }
 0x1f9   :  { %614 = vmax.xlane.f32.xlu0 %v4120_v60  ;;  %v1775_v60 = vld [vmem:[#allocation3 + $0x8] sm:$0xff]  ;;  %1703 = vst.msk [vmem:[#allocation3 + $0x1c8] sm:$0xff] %vm75_vm0, %v1687_v0  ;;  %766 = vst.msk [vmem:[#allocation3 + $0x40] sm:$0xff] %vm75_vm0, %v750_v20  ;;  %v1794_v0 = vld [vmem:[#allocation3 + $0xa0] sm:$0xff] }
 0x1fa   :  { %v1432_v56 = vpop.permute.xlu1 %1431  ;;  %v3151_v9 = vpack.c.bf16 %v1775_v60, %v1774_v53  ;;  %v4300_v53 = vsel %vm52_vm11, %v583_v43, -1e+30  ;;  %v1210_v48 = vsel %vm1178_vm3, %v1162_v12, %v1194_v16  ;;  %v4328_v43 = vld [vmem:[%s5420_s1 + $0x58] sm:$0xff]  ;;  %1078 = vst.msk [vmem:[#allocation3 + $0xc0] sm:$0xff] %vm75_vm0, %v1062_v38  ;;  %v753_v12 = vmul.f32 %v4030_v47, %v3923_v25  ;;  %v1778_v20 = vld [vmem:[#allocation3 + $0x20] sm:$0xff]  ;;  %1393 = vst.msk [vmem:[#allocation3 + $0x158] sm:$0xff] %vm75_vm0, %v1377_v24 }
 0x1fb   :  { %1252 = vmax.xlane.f32.xlu1 %v4221_v40  ;;  %v879_v40 = vmul.f32 0.2, %v4131_v57  ;;  %v4286_v60 = vadd.f32 %v4021_v29, %v1432_v56  ;;  %v4296_v56 = vsel %vm49_vm2, %v1516_v59, -1e+30  ;;  %v1191_v59 = vmul.f32 0.2, %v4143_v5 }
 0x1fc   :  { %3152 = vmatpush3.bf16.msra.mxu0 %v3151_v9  ;;  %v3153_v9 = vpack.c.bf16 %v1793_v3, %v1792_v58  ;;  %v1065_v16 = vmul.f32 %v4030_v47, %v3925_v26  ;;  %v1779_v58 = vld [vmem:[#allocation3 + $0x28] sm:$0xff]  ;;  %v4353_v3 = vsel %vm55_vm12, %v1210_v48, -1e+30  ;;  %vm58_vm4 = vcmp.gt.f32.partialorder %v4328_v43, 0.0  ;;  %769 = vst.msk [vmem:[#allocation3 + $0x58] sm:$0xff] %vm75_vm0, %v753_v12  ;;  %v1780_v24 = vld [vmem:[#allocation3 + $0x30] sm:$0xff] }
 0x1fd   :  { %926 = vmax.xlane.f32.xlu0 %v4138_v32  ;;  %v895_v22 = vsel %vm863_vm15, %v4131_v57, %v879_v40  ;;  %v1374_v57 = vmul.f32 %v3927_v27, %v4026_v6  ;;  %v1686_v40 = vmul.f32 %v3931_v28, %v4026_v6  ;;  %v1506_v35 = vmul.f32 0.2, %v4286_v60  ;;  %5460 = vst [vmem:[#allocation27_spill] sm:$0xff] %v4353_v3 }
 0x1fe   :  { %v4335_v6 = vadd.f32 %v4021_v29, %v3889_v11  ;;  %vm1490_vm2 = vcmp.gt.f32.partialorder %v4286_v60, 0.0  ;;  %3154 = vmatprep.subr.bf16.mxu0 %v3153_v9  ;;  %v1689_v11 = vmul.f32 %v4030_v47, %v3931_v28  ;;  %v4357_v15 = vsel %vm52_vm11, %v895_v22, -1e+30  ;;  %1081 = vst.msk [vmem:[#allocation3 + $0xd8] sm:$0xff] %vm75_vm0, %v1065_v16 }
 0x1ff   :  { %v504_v36 = vpop.permute.xlu1 %503  ;;  %1564 = vmax.xlane.f32.xlu1 %v4269_v37  ;;  %1390 = vst.msk [vmem:[#allocation3 + $0x140] sm:$0xff] %vm75_vm0, %v1374_v57  ;;  %1702 = vst.msk [vmem:[#allocation3 + $0x1c0] sm:$0xff] %vm75_vm0, %v1686_v40  ;;  %v1207_v47 = vsel %vm1175_vm1, %v4143_v5, %v1191_v59  ;;  %v1064_v38 = vmul.f32 %v3925_v26, %v4032_v31  ;;  %v1376_v5 = vmul.f32 %v3927_v27, %v4032_v31 }
 0x200   :  { %v4322_v46 = vadd.f32 %v3947_v44, %v504_v36  ;;  %v752_v36 = vmul.f32 %v3923_v25, %v4032_v31  ;;  %5461 = vst [vmem:[#allocation28_spill] sm:$0xff] %v4357_v15  ;;  %3156 = vmatpush3.bf16.msra.mxu0 %v3155_v1  ;;  %1705 = vst.msk [vmem:[#allocation3 + $0x1d8] sm:$0xff] %vm75_vm0, %v1689_v11  ;;  %v1688_v22 = vmul.f32 %v3931_v28, %v4032_v31  ;;  %v1781_v11 = vld [vmem:[#allocation3 + $0x38] sm:$0xff] }
 0x201   :  { %1238 = vmax.xlane.f32.xlu0 %v4209_v51  ;;  %v1522_v59 = vsel %vm1490_vm2, %v4286_v60, %v1506_v35  ;;  %1080 = vst.msk [vmem:[#allocation3 + $0xd0] sm:$0xff] %vm75_vm0, %v1064_v38  ;;  %v3157_v48 = vpack.c.bf16 %v1795_v54, %v1794_v0  ;;  %v3159_v9 = vpack.c.bf16 %v1779_v58, %v1778_v20  ;;  %1392 = vst.msk [vmem:[#allocation3 + $0x150] sm:$0xff] %vm75_vm0, %v1376_v5  ;;  %v1797_v35 = vld [vmem:[#allocation3 + $0xb8] sm:$0xff]  ;;  %v4419_v58 = vld [vmem:[%s5420_s1 + $0x20] sm:$0xff] }
 0x202   :  { %v573_v57 = vmul.f32 0.2, %v4322_v46  ;;  %768 = vst.msk [vmem:[#allocation3 + $0x50] sm:$0xff] %vm75_vm0, %v752_v36  ;;  %vm557_vm5 = vcmp.gt.f32.partialorder %v4322_v46, 0.0  ;;  %v4386_v1 = vadd.f32 %v3947_v44, %v3895_v13  ;;  %v4390_v12 = vadd.f32 %v4021_v29, %v3873_v4  ;;  %1704 = vst.msk [vmem:[#allocation3 + $0x1d0] sm:$0xff] %vm75_vm0, %v1688_v22  ;;  %v1822_v5 = vld [vmem:[#allocation3 + $0x180] sm:$0xff] }
 0x203   :  { %626 = vmax.xlane.f32.xlu1 %v4312_v52  ;;  %v755_v31 = vmul.f32 %v4040_v50, %v3923_v25  ;;  %v1067_v60 = vmul.f32 %v4040_v50, %v3925_v26  ;;  %v4401_v13 = vsel %vm52_vm11, %v1207_v47, -1e+30  ;;  %vm1487_vm6 = vcmp.gt.f32.partialorder %v4335_v6, 0.0  ;;  %3158 = vmatprep.subr.bf16.mxu0 %v3157_v48 }
 0x204   :  { %v820_v23 = vpop.permute.xlu1 %819  ;;  %v1379_v4 = vmul.f32 %v4040_v50, %v3927_v27  ;;  %v1691_v54 = vmul.f32 %v4040_v50, %v3931_v28  ;;  %v4411_v0 = vsel %vm55_vm12, %v1522_v59, -1e+30  ;;  %v589_v20 = vsel %vm557_vm5, %v4322_v46, %v573_v57  ;;  %3160 = vmatpush3.bf16.msra.mxu0 %v3159_v9  ;;  %v1798_v9 = vld [vmem:[#allocation3 + $0xc0] sm:$0xff] }
 0x205   :  { %1550 = vmax.xlane.f32.xlu0 %v4296_v56  ;;  %v4369_v40 = vadd.f32 %v3949_v45, %v820_v23  ;;  %v1796_v23 = vld [vmem:[#allocation3 + $0xb0] sm:$0xff]  ;;  %5462 = vst [vmem:[#allocation29_spill] sm:$0xff] %v4411_v0  ;;  %771 = vst.msk [vmem:[#allocation3 + $0x68] sm:$0xff] %vm75_vm0, %v755_v31  ;;  %v754_v50 = vmul.f32 %v3923_v25, %v4049_v34  ;;  %v1066_v46 = vmul.f32 %v3925_v26, %v4049_v34  ;;  %v1799_v31 = vld [vmem:[#allocation3 + $0xc8] sm:$0xff] }
 0x206   :  { %1083 = vst.msk [vmem:[#allocation3 + $0xe8] sm:$0xff] %vm75_vm0, %v1067_v60  ;;  %1395 = vst.msk [vmem:[#allocation3 + $0x168] sm:$0xff] %vm75_vm0, %v1379_v4  ;;  %v1378_v38 = vmul.f32 %v3927_v27, %v4049_v34  ;;  %v1690_v57 = vmul.f32 %v3931_v28, %v4049_v34  ;;  %v1503_v22 = vmul.f32 0.2, %v4335_v6  ;;  %v3161_v59 = vpack.c.bf16 %v1797_v35, %v1796_v23  ;;  %v1823_v60 = vld [vmem:[#allocation3 + $0x188] sm:$0xff] }
 0x207   :  { %1250 = vmax.xlane.f32.xlu1 %v4353_v3  ;;  %v885_v36 = vmul.f32 0.2, %v4369_v40  ;;  %1707 = vst.msk [vmem:[#allocation3 + $0x1e8] sm:$0xff] %vm75_vm0, %v1691_v54  ;;  %vm869_vm7 = vcmp.gt.f32.partialorder %v4369_v40, 0.0  ;;  %770 = vst.msk [vmem:[#allocation3 + $0x60] sm:$0xff] %vm75_vm0, %v754_v50  ;;  %v3163_v48 = vpack.c.bf16 %v1781_v11, %v1780_v24  ;;  %vm51_vm8 = vcmp.gt.f32.partialorder %v4419_v58, 0.0 }
 0x208   :  { %1082 = vst.msk [vmem:[#allocation3 + $0xe0] sm:$0xff] %vm75_vm0, %v1066_v46  ;;  %1394 = vst.msk [vmem:[#allocation3 + $0x160] sm:$0xff] %vm75_vm0, %v1378_v38  ;;  %v757_v34 = vmul.f32 %v4054_v19, %v3923_v25  ;;  %v1069_v35 = vmul.f32 %v4054_v19, %v3925_v26  ;;  %v1693_v4 = vmul.f32 %v4054_v19, %v3931_v28  ;;  %v1782_v54 = vld [vmem:[#allocation3 + $0x40] sm:$0xff]  ;;  %v1783_v23 = vld [vmem:[#allocation3 + $0x48] sm:$0xff]  ;;  %v4455_v50 = vsel %vm58_vm4, %v589_v20, -1e+30 }
 0x209   :  { %v1132_v16 = vpop.permute.xlu1 %1131  ;;  %620 = vmax.xlane.f32.xlu0 %v4300_v53  ;;  %1706 = vst.msk [vmem:[#allocation3 + $0x1e0] sm:$0xff] %vm75_vm0, %v1690_v57  ;;  %v1801_v24 = vld [vmem:[#allocation3 + $0xd8] sm:$0xff]  ;;  %3162 = vmatprep.subr.bf16.mxu0 %v3161_v59  ;;  %v756_v46 = vmul.f32 %v3923_v25, %v4059_v39  ;;  %v1068_v38 = vmul.f32 %v3925_v26, %v4059_v39  ;;  %v1800_v3 = vld [vmem:[#allocation3 + $0xd0] sm:$0xff]  ;;  %vm550_vm10 = vcmp.gt.f32.partialorder %v4386_v1, 0.0  ;;  %vm1493_vm13 = vcmp.gt.f32.partialorder %v4390_v12, 0.0 }
 0x20a   :  { %v4426_v47 = vadd.f32 %v3989_v41, %v1132_v16  ;;  %v1381_v16 = vmul.f32 %v4054_v19, %v3927_v27  ;;  %v1380_v57 = vmul.f32 %v3927_v27, %v4059_v39  ;;  %v1806_v19 = vld [vmem:[#allocation3 + $0x100] sm:$0xff]  ;;  %v901_v20 = vsel %vm869_vm7, %v4369_v40, %v885_v36  ;;  %3164 = vmatpush3.bf16.msra.mxu0 %v3163_v48  ;;  %v1824_v27 = vld [vmem:[#allocation3 + $0x190] sm:$0xff]  ;;  %v1825_v59 = vld [vmem:[#allocation3 + $0x198] sm:$0xff] }
 0x20b   :  { %1562 = vmax.xlane.f32.xlu1 %v4411_v0  ;;  %v1807_v0 = vld [vmem:[#allocation3 + $0x108] sm:$0xff]  ;;  %773 = vst.msk [vmem:[#allocation3 + $0x78] sm:$0xff] %vm75_vm0, %v757_v34  ;;  %1085 = vst.msk [vmem:[#allocation3 + $0xf8] sm:$0xff] %vm75_vm0, %v1069_v35  ;;  %v1692_v25 = vmul.f32 %v3931_v28, %v4059_v39  ;;  %v3165_v26 = vpack.c.bf16 %v1799_v31, %v1798_v9  ;;  %v3167_v40 = vpack.c.bf16 %v1783_v23, %v1782_v54  ;;  %v1784_v34 = vld [vmem:[#allocation3 + $0x50] sm:$0xff] }
 0x20c   :  { %1397 = vst.msk [vmem:[#allocation3 + $0x178] sm:$0xff] %vm75_vm0, %v1381_v16  ;;  %1709 = vst.msk [vmem:[#allocation3 + $0x1f8] sm:$0xff] %vm75_vm0, %v1693_v4  ;;  %vm1181_vm9 = vcmp.gt.f32.partialorder %v4426_v47, 0.0  ;;  %v3169_v36 = vpack.c.bf16 %v1801_v24, %v1800_v3  ;;  %v3181_v48 = vpack.c.bf16 %v1823_v60, %v1822_v5  ;;  %v1785_v35 = vld [vmem:[#allocation3 + $0x58] sm:$0xff]  ;;  %v1519_v28 = vsel %vm1487_vm6, %v4335_v6, %v1503_v22  ;;  %v1808_v16 = vld [vmem:[#allocation3 + $0x110] sm:$0xff] }
 0x20d   :  { %932 = vmax.xlane.f32.xlu0 %v4357_v15  ;;  %v1197_v15 = vmul.f32 0.2, %v4426_v47  ;;  %772 = vst.msk [vmem:[#allocation3 + $0x70] sm:$0xff] %vm75_vm0, %v756_v46  ;;  %1084 = vst.msk [vmem:[#allocation3 + $0xf0] sm:$0xff] %vm75_vm0, %v1068_v38  ;;  %v566_v39 = vmul.f32 0.2, %v4386_v1  ;;  %v846_v9 = vadd.f32 %v3949_v45, %v3853_v61  ;;  %3166 = vmatprep.subr.bf16.mxu0 %v3165_v26 }
 0x20e   :  { %v499_v11 = vpop.permute.xlu1 %498  ;;  %1396 = vst.msk [vmem:[#allocation3 + $0x170] sm:$0xff] %vm75_vm0, %v1380_v57  ;;  %1708 = vst.msk [vmem:[#allocation3 + $0x1f0] sm:$0xff] %vm75_vm0, %v1692_v25  ;;  %v3183_v31 = vpack.c.bf16 %v1807_v0, %v1806_v19  ;;  %v1809_v3 = vld [vmem:[#allocation3 + $0x118] sm:$0xff]  ;;  %v4488_v5 = vsel %vm58_vm4, %v901_v20, -1e+30  ;;  %3182 = vmatprep.subr.bf16.mxu1 %v3181_v48  ;;  %v1803_v60 = vld [vmem:[#allocation3 + $0xe8] sm:$0xff]  ;;  %v3185_v6 = vpack.c.bf16 %v1825_v59, %v1824_v27  ;;  %3168 = vmatpush3.bf16.msra.mxu0 %v3167_v40 }
 0x20f   :  { %632 = vmax.xlane.f32.xlu1 %v4455_v50  ;;  %v1826_v22 = vld [vmem:[#allocation3 + $0x1a0] sm:$0xff]  ;;  %v1827_v4 = vld [vmem:[#allocation3 + $0x1a8] sm:$0xff]  ;;  %v4492_v54 = vadd.f32 %v3947_v44, %v499_v11  ;;  %v1213_v0 = vsel %vm1181_vm9, %v4426_v47, %v1197_v15  ;;  %v1509_v23 = vmul.f32 0.2, %v4390_v12  ;;  %v3171_v24 = vpack.c.bf16 %v1785_v35, %v1784_v34  ;;  %3170 = vmatprep.subr.bf16.mxu0 %v3169_v36  ;;  %v1828_v40 = vld [vmem:[#allocation3 + $0x1b0] sm:$0xff] }
 0x210   :  { %v4501_v46 = vsel %vm52_vm11, %v1519_v28, -1e+30  ;;  %v4506_v11 = vadd.f32 %v3989_v41, %v3859_v63  ;;  %3184 = vmatpush3.bf16.msra.mxu1 %v3183_v31  ;;  %v1802_v38 = vld [vmem:[#allocation3 + $0xe0] sm:$0xff]  ;;  %v1787_v19 = vld [vmem:[#allocation3 + $0x68] sm:$0xff]  ;;  %v3187_v15 = vpack.c.bf16 %v1809_v3, %v1808_v16  ;;  %v582_v62 = vsel %vm550_vm10, %v4386_v1, %v566_v39  ;;  %v1829_v36 = vld [vmem:[#allocation3 + $0x1b8] sm:$0xff] }
 0x211   :  { %1244 = vmax.xlane.f32.xlu0 %v4401_v13  ;;  %v1786_v57 = vld [vmem:[#allocation3 + $0x60] sm:$0xff]  ;;  %v878_v47 = vmul.f32 0.2, %v846_v9  ;;  %v3173_v20 = vpack.c.bf16 %v1803_v60, %v1802_v38  ;;  %3186 = vmatprep.subr.bf16.mxu1 %v3185_v6  ;;  %v3189_v25 = vpack.c.bf16 %v1827_v4, %v1826_v22  ;;  %v1811_v27 = vld [vmem:[#allocation3 + $0x128] sm:$0xff]  ;;  %v4514_v63 = vsel %vm58_vm4, %v1213_v0, -1e+30 }
 0x212   :  { %v1810_v26 = vld [vmem:[#allocation3 + $0x120] sm:$0xff]  ;;  %vm862_vm11 = vcmp.gt.f32.partialorder %v846_v9, 0.0  ;;  %v1805_v59 = vld [vmem:[#allocation3 + $0xf8] sm:$0xff]  ;;  %v572_v48 = vmul.f32 0.2, %v4492_v54  ;;  %v1525_v1 = vsel %vm1493_vm13, %v4390_v12, %v1509_v23  ;;  %v4525_v35 = vld [vmem:[%s5420_s1 + $0x50] sm:$0xff]  ;;  %3172 = vmatpush3.bf16.msra.mxu0 %v3171_v24  ;;  %v3175_v28 = vpack.c.bf16 %v1787_v19, %v1786_v57 }
 0x213   :  { %v816_v61 = vpop.permute.xlu1 %815  ;;  %944 = vmax.xlane.f32.xlu1 %v4488_v5  ;;  %v4529_v16 = vsel %vm51_vm8, %v582_v62, -1e+30  ;;  %vm556_vm14 = vcmp.gt.f32.partialorder %v4492_v54, 0.0  ;;  %3174 = vmatprep.subr.bf16.mxu0 %v3173_v20  ;;  %v1789_v12 = vld [vmem:[#allocation3 + $0x78] sm:$0xff]  ;;  %v3191_v6 = vpack.c.bf16 %v1811_v27, %v1810_v26  ;;  %v894_v22 = vsel %vm862_vm11, %v846_v9, %v878_v47  ;;  %v1812_v23 = vld [vmem:[#allocation3 + $0x130] sm:$0xff]  ;;  %v1830_v57 = vld [vmem:[#allocation3 + $0x1c0] sm:$0xff] }
 0x214   :  { %v852_v34 = vadd.f32 %v3949_v45, %v816_v61  ;;  %v1804_v39 = vld [vmem:[#allocation3 + $0xf0] sm:$0xff]  ;;  %3188 = vmatpush3.bf16.msra.mxu1 %v3187_v15  ;;  %v1190_v4 = vmul.f32 0.2, %v4506_v11  ;;  %v1470_v61 = vadd.f32 %v4021_v29, %v3899_v14  ;;  %v3193_v0 = vpack.c.bf16 %v1829_v36, %v1828_v40  ;;  %v1813_v24 = vld [vmem:[#allocation3 + $0x138] sm:$0xff]  ;;  %v1831_v19 = vld [vmem:[#allocation3 + $0x1c8] sm:$0xff] }
 0x215   :  { %1556 = vmax.xlane.f32.xlu0 %v4501_v46  ;;  %v3177_v3 = vpack.c.bf16 %v1805_v59, %v1804_v39  ;;  %v1788_v60 = vld [vmem:[#allocation3 + $0x70] sm:$0xff]  ;;  %3190 = vmatprep.subr.bf16.mxu1 %v3189_v25  ;;  %v4539_v38 = vsel %vm58_vm4, %v1525_v1, -1e+30  ;;  %vm57_vm15 = vcmp.gt.f32.partialorder %v4525_v35, 0.0  ;;  %vm1174_vm1 = vcmp.gt.f32.partialorder %v4506_v11, 0.0  ;;  %v1814_v59 = vld [vmem:[#allocation3 + $0x140] sm:$0xff] }
 0x216   :  { %v884_v9 = vmul.f32 0.2, %v852_v34  ;;  %v588_v14 = vsel %vm556_vm14, %v4492_v54, %v572_v48  ;;  %3176 = vmatpush3.bf16.msra.mxu0 %v3175_v28  ;;  %v3179_v62 = vpack.c.bf16 %v1789_v12, %v1788_v60  ;;  %v4550_v43 = vsel %vm51_vm8, %v894_v22, -1e+30  ;;  %v1815_v40 = vld [vmem:[#allocation3 + $0x148] sm:$0xff]  ;;  %v1832_v48 = vld [vmem:[#allocation3 + $0x1d0] sm:$0xff] }
 0x217   :  { %1256 = vmax.xlane.f32.xlu1 %v4514_v63  ;;  %vm868_vm3 = vcmp.gt.f32.partialorder %v852_v34, 0.0  ;;  %3178 = vmatprep.subr.bf16.mxu0 %v3177_v3  ;;  %v3195_v47 = vpack.c.bf16 %v1813_v24, %v1812_v23  ;;  %v1206_v25 = vsel %vm1174_vm1, %v4506_v11, %v1190_v4  ;;  %v1502_v26 = vmul.f32 0.2, %v1470_v61  ;;  %v1833_v1 = vld [vmem:[#allocation3 + $0x1d8] sm:$0xff]  ;;  %v1816_v22 = vld [vmem:[#allocation3 + $0x150] sm:$0xff]  ;;  %v1835_v24 = vld [vmem:[#allocation3 + $0x1e8] sm:$0xff] }
 0x218   :  { %v1128_v31 = vpop.permute.xlu1 %1127  ;;  %3192 = vmatpush3.bf16.msra.mxu1 %v3191_v6  ;;  %v537_v54 = vadd.f32 %v3947_v44, %v3905_v17  ;;  %v3197_v27 = vpack.c.bf16 %v1831_v19, %v1830_v57  ;;  %v4560_v36 = vsel %vm57_vm15, %v588_v14, -1e+30  ;;  %vm1486_vm2 = vcmp.gt.f32.partialorder %v1470_v61, 0.0  ;;  %v4573_v60 = vld [vmem:[%s5420_s1 + $0x38] sm:$0xff] }
 0x219   :  { %618 = vmax.xlane.f32.xlu0 %v4529_v16  ;;  %v1164_v15 = vadd.f32 %v3989_v41, %v1128_v31  ;;  %3194 = vmatprep.subr.bf16.mxu1 %v3193_v0  ;;  %v900_v11 = vsel %vm868_vm3, %v852_v34, %v884_v9  ;;  %v4567_v17 = vsel %vm51_vm8, %v1206_v25, -1e+30  ;;  %v3199_v31 = vpack.c.bf16 %v1815_v40, %v1814_v59  ;;  %v1817_v4 = vld [vmem:[#allocation3 + $0x158] sm:$0xff] }
 0x21a   :  { %3180 = vmatpush3.bf16.msra.mxu0 %v3179_v62  ;;  %v1518_v3 = vsel %vm1486_vm2, %v1470_v61, %v1502_v26  ;;  %v569_v12 = vmul.f32 0.2, %v537_v54  ;;  %v849_v34 = vadd.f32 %v3949_v45, %v3916_v21  ;;  %v3201_v6 = vpack.c.bf16 %v1833_v1, %v1832_v48  ;;  %v1834_v61 = vld [vmem:[#allocation3 + $0x1e0] sm:$0xff]  ;;  %v1837_v59 = vld [vmem:[#allocation3 + $0x1f8] sm:$0xff] }
 0x21b   :  { %1568 = vmax.xlane.f32.xlu1 %v4539_v38  ;;  %v1196_v28 = vmul.f32 0.2, %v1164_v15  ;;  %vm1180_vm4 = vcmp.gt.f32.partialorder %v1164_v15, 0.0  ;;  %v4579_v23 = vsel %vm57_vm15, %v900_v11, -1e+30  ;;  %vm553_vm5 = vcmp.gt.f32.partialorder %v537_v54, 0.0 }
 0x21c   :  { %3196 = vmatpush3.bf16.msra.mxu1 %v3195_v47  ;;  %v4586_v21 = vsel %vm51_vm8, %v1518_v3, -1e+30  ;;  %vm54_vm6 = vcmp.gt.f32.partialorder %v4573_v60, 0.0  ;;  %v3203_v14 = vpack.c.bf16 %v1817_v4, %v1816_v22  ;;  %v585_v62 = vsel %vm553_vm5, %v537_v54, %v569_v12  ;;  %v1818_v26 = vld [vmem:[#allocation3 + $0x160] sm:$0xff]  ;;  %v44_v4 = vld [vmem:[%s5420_s1 + $0x68] sm:$0xff] }
 0x21d   :  { %v1440_v20 = vpop.permute.xlu1 %1439  ;;  %930 = vmax.xlane.f32.xlu0 %v4550_v43  ;;  %3198 = vmatprep.subr.bf16.mxu1 %v3197_v27  ;;  %v1212_v9 = vsel %vm1180_vm4, %v1164_v15, %v1196_v28  ;;  %v881_v47 = vmul.f32 0.2, %v849_v34  ;;  %v3205_v25 = vpack.c.bf16 %v1835_v24, %v1834_v61  ;;  %v1819_v15 = vld [vmem:[#allocation3 + $0x168] sm:$0xff]  ;;  %vm865_vm8 = vcmp.gt.f32.partialorder %v849_v34, 0.0  ;;  %v1836_v27 = vld [vmem:[#allocation3 + $0x1f0] sm:$0xff] }
 0x21e   :  { %v1476_v39 = vadd.f32 %v4021_v29, %v1440_v20  ;;  %v1161_v20 = vadd.f32 %v3989_v41, %v3867_v2  ;;  %v4594_v58 = vsel %vm57_vm15, %v1212_v9, -1e+30  ;;  %v4601_v2 = vsel %vm54_vm6, %v585_v62, -1e+30 }
 0x21f   :  { %630 = vmax.xlane.f32.xlu1 %v4560_v36  ;;  %v3207_v28 = vpack.c.bf16 %v1819_v15, %v1818_v26  ;;  %v897_v11 = vsel %vm865_vm8, %v849_v34, %v881_v47  ;;  %v1473_v3 = vadd.f32 %v4021_v29, %v3936_v30  ;;  %v3209_v12 = vpack.c.bf16 %v1837_v59, %v1836_v27 }
 0x220   :  { %v1508_v57 = vmul.f32 0.2, %v1476_v39  ;;  %vm1492_vm7 = vcmp.gt.f32.partialorder %v1476_v39, 0.0  ;;  %3200 = vmatpush3.bf16.msra.mxu1 %v3199_v31  ;;  %v1193_v31 = vmul.f32 0.2, %v1161_v20  ;;  %vm1177_vm10 = vcmp.gt.f32.partialorder %v1161_v20, 0.0 }
 0x221   :  { %1242 = vmax.xlane.f32.xlu0 %v4567_v17  ;;  %3202 = vmatprep.subr.bf16.mxu1 %v3201_v6  ;;  %v1820_v6 = vld [vmem:[#allocation3 + $0x170] sm:$0xff]  ;;  %v1167_v30 = vadd.f32 %v3989_v41, %v3880_v8  ;;  %v4619_v24 = vsel %vm54_vm6, %v897_v11, -1e+30  ;;  %vm60_vm11 = vcmp.gt.f32.partialorder %v44_v4, 0.0  ;;  %vm1489_vm14 = vcmp.gt.f32.partialorder %v1473_v3, 0.0  ;;  %v5464_v11 = vld [vmem:[#allocation15_spill] sm:$0xff] }
 0x222   :  { %v514_v0 = vpop.permute.xlu1 %513  ;;  %v1524_v54 = vsel %vm1492_vm7, %v1476_v39, %v1508_v57  ;;  %v1821_v39 = vld [vmem:[#allocation3 + $0x178] sm:$0xff]  ;;  %v536_v57 = vadd.f32 %v3947_v44, %v3966_v7  ;;  %v1209_v9 = vsel %vm1177_vm10, %v1161_v20, %v1193_v31  ;;  %v5463_v7 = vld [vmem:[#allocation12_spill] sm:$0xff]  ;;  %v1160_v31 = vadd.f32 %v3989_v41, %v5464_v11  ;;  %v5466_v11 = vld [vmem:[#allocation7_spill] sm:$0xff] }
 0x223   :  { %v543_v19 = vadd.f32 %v3947_v44, %v514_v0  ;;  %942 = vmax.xlane.f32.xlu1 %v4579_v23  ;;  %v4608_v22 = vsel %vm57_vm15, %v1524_v54, -1e+30  ;;  %v3211_v35 = vpack.c.bf16 %v1821_v39, %v1820_v6  ;;  %v1199_v47 = vmul.f32 0.2, %v1167_v30 }
 0x224   :  { %3204 = vmatpush3.bf16.msra.mxu1 %v3203_v14  ;;  %v1505_v14 = vmul.f32 0.2, %v1473_v3  ;;  %vm1183_vm15 = vcmp.gt.f32.partialorder %v1167_v30, 0.0  ;;  %v848_v20 = vadd.f32 %v3949_v45, %v5463_v7  ;;  %v568_v27 = vmul.f32 0.2, %v536_v57 }
 0x225   :  { %1554 = vmax.xlane.f32.xlu0 %v4586_v21  ;;  %v575_v40 = vmul.f32 0.2, %v543_v19  ;;  %vm559_vm9 = vcmp.gt.f32.partialorder %v543_v19, 0.0  ;;  %3206 = vmatprep.subr.bf16.mxu1 %v3205_v25  ;;  %v4631_v25 = vsel %vm54_vm6, %v1209_v9, -1e+30  ;;  %vm552_vm1 = vcmp.gt.f32.partialorder %v536_v57, 0.0 }
 0x226   :  { %v1521_v15 = vsel %vm1489_vm14, %v1473_v3, %v1505_v14  ;;  %v584_v3 = vsel %vm552_vm1, %v536_v57, %v568_v27  ;;  %vm864_vm4 = vcmp.gt.f32.partialorder %v848_v20, 0.0  ;;  %v1192_v9 = vmul.f32 0.2, %v1160_v31 }
 0x227   :  { %v828_v48 = vpop.permute.xlu1 %827  ;;  %1254 = vmax.xlane.f32.xlu1 %v4594_v58  ;;  %v591_v34 = vsel %vm559_vm9, %v543_v19, %v575_v40  ;;  %v37_v40 = vld [vmem:[%s5420_s1 + $0x30] sm:$0xff]  ;;  %v850_v4 = vadd.f32 %v3949_v45, %v4123_v42 }
 0x228   :  { %v855_v1 = vadd.f32 %v3949_v45, %v828_v48  ;;  %3208 = vmatpush3.bf16.msra.mxu1 %v3207_v28  ;;  %v4625_v19 = vsel %vm60_vm11, %v591_v34, -1e+30  ;;  %v4646_v28 = vsel %vm54_vm6, %v1521_v15, -1e+30  ;;  %vm53_vm2 = vcmp.gt.f32.partialorder %v37_v40, 0.0 }
 0x229   :  { %624 = vmax.xlane.f32.xlu0 %v4601_v2  ;;  %3210 = vmatprep.subr.bf16.mxu1 %v3209_v12  ;;  %v880_v12 = vmul.f32 0.2, %v848_v20  ;;  %vm1176_vm6 = vcmp.gt.f32.partialorder %v1160_v31, 0.0 }
 0x22a   :  { %v887_v0 = vmul.f32 0.2, %v855_v1  ;;  %vm871_vm13 = vcmp.gt.f32.partialorder %v855_v1, 0.0 }
 0x22b   :  { %1566 = vmax.xlane.f32.xlu1 %v4608_v22  ;;  %v896_v57 = vsel %vm864_vm4, %v848_v20, %v880_v12  ;;  %v1208_v20 = vsel %vm1176_vm6, %v1160_v31, %v1192_v9  ;;  %v882_v31 = vmul.f32 0.2, %v850_v4 }
 0x22c   :  { %v1452_v61 = vpop.permute.xlu1 %1451  ;;  %v903_v62 = vsel %vm871_vm13, %v855_v1, %v887_v0  ;;  %3212 = vmatpush3.bf16.msra.mxu1 %v3211_v35  ;;  %v1215_v1 = vsel %vm1183_vm15, %v1167_v30, %v1199_v47  ;;  %v4657_v30 = vsel %vm53_vm2, %v584_v3, -1e+30  ;;  %v4671_v15 = vsel %vm53_vm2, %v896_v57, -1e+30 }
 0x22d   :  { %936 = vmax.xlane.f32.xlu0 %v4619_v24  ;;  %v1479_v8 = vadd.f32 %v4021_v29, %v1452_v61  ;;  %v4637_v59 = vsel %vm60_vm11, %v903_v62, -1e+30  ;;  %v4652_v39 = vsel %vm60_vm11, %v1215_v1, -1e+30  ;;  %v5465_v61 = vld [vmem:[#allocation17_spill] sm:$0xff]  ;;  %v43_v62 = vld [vmem:[%s5420_s1 + $0x60] sm:$0xff]  ;;  %v1478_v3 = vadd.f32 %v4021_v29, %v5466_v11 }
 0x22e   :  { %v1472_v35 = vadd.f32 %v4021_v29, %v5465_v61  ;;  %vm59_vm8 = vcmp.gt.f32.partialorder %v43_v62, 0.0  ;;  %v4683_v12 = vsel %vm53_vm2, %v1208_v20, -1e+30  ;;  %vm866_vm13 = vcmp.gt.f32.partialorder %v850_v4, 0.0 }
 0x22f   :  { %636 = vmax.xlane.f32.xlu1 %v4625_v19  ;;  %v1511_v48 = vmul.f32 0.2, %v1479_v8  ;;  %vm1495_vm3 = vcmp.gt.f32.partialorder %v1479_v8, 0.0  ;;  %v898_v9 = vsel %vm866_vm13, %v850_v4, %v882_v31  ;;  %vm2162_vm13 = vcmask 23552  }
 0x230   :  { %v1504_v27 = vmul.f32 0.2, %v1472_v35  ;;  %vm1488_vm9 = vcmp.gt.f32.partialorder %v1472_v35, 0.0  ;;  %v4704_v40 = vsel %vm55_vm12, %v898_v9, -1e+30 }
 0x231   :  { %v509_v26 = vpop.permute.xlu1 %508  ;;  %1248 = vmax.xlane.f32.xlu0 %v4631_v25  ;;  %v1527_v60 = vsel %vm1495_vm3, %v1479_v8, %v1511_v48 }
 0x232   :  { %v542_v54 = vadd.f32 %v3947_v44, %v509_v26  ;;  %v4663_v14 = vsel %vm60_vm11, %v1527_v60, -1e+30  ;;  %v1520_v42 = vsel %vm1488_vm9, %v1472_v35, %v1504_v27  ;;  %v1510_v60 = vmul.f32 0.2, %v1478_v3  ;;  %v46_v27 = vld [vmem:[%s5420_s1 + $0x78] sm:$0xff] }
 0x233   :  { %948 = vmax.xlane.f32.xlu1 %v4637_v59  ;;  %v4693_v57 = vsel %vm53_vm2, %v1520_v42, -1e+30  ;;  %vm1494_vm11 = vcmp.gt.f32.partialorder %v1478_v3, 0.0  ;;  %vm62_vm15 = vcmp.gt.f32.partialorder %v46_v27, 0.0  ;;  %vm2128_vm9 = vcmask 7168  }
 0x234   :  { %v574_v0 = vmul.f32 0.2, %v542_v54  ;;  %vm558_vm5 = vcmp.gt.f32.partialorder %v542_v54, 0.0 }
 0x235   :  { %1560 = vmax.xlane.f32.xlu0 %v4646_v28 }
 0x236   :  { %v824_v6 = vpop.permute.xlu1 %823  ;;  %v590_v7 = vsel %vm558_vm5, %v542_v54, %v574_v0 }
 0x237   :  { %v854_v34 = vadd.f32 %v3949_v45, %v824_v6  ;;  %1260 = vmax.xlane.f32.xlu1 %v4652_v39  ;;  %v4677_v48 = vsel %vm59_vm8, %v590_v7, -1e+30 }
 0x239   :  { %622 = vmax.xlane.f32.xlu0 %v4657_v30  ;;  %v886_v8 = vmul.f32 0.2, %v854_v34  ;;  %vm870_vm7 = vcmp.gt.f32.partialorder %v854_v34, 0.0 }
 0x23b   :  { %v1136_v47 = vpop.permute.xlu1 %1135  ;;  %1572 = vmax.xlane.f32.xlu1 %v4663_v14  ;;  %v902_v54 = vsel %vm870_vm7, %v854_v34, %v886_v8  ;;  %v5467_v34 = vld [vmem:[#allocation8_spill] sm:$0xff] }
 0x23c   :  { %v1166_v26 = vadd.f32 %v3989_v41, %v1136_v47  ;;  %v4687_v6 = vsel %vm59_vm8, %v902_v54, -1e+30  ;;  %v545_v61 = vadd.f32 %v3947_v44, %v5467_v34  ;;  %v1526_v47 = vsel %vm1494_vm11, %v1478_v3, %v1510_v60  ;;  %v5470_v34 = vld [vmem:[#allocation10_spill] sm:$0xff] }
 0x23d   :  { %934 = vmax.xlane.f32.xlu0 %v4671_v15  ;;  %v4711_v4 = vsel %vm59_vm8, %v1526_v47, -1e+30  ;;  %vm2243_vm11 = vcmask 31744  }
 0x23e   :  { %v1198_v1 = vmul.f32 0.2, %v1166_v26  ;;  %vm1182_vm10 = vcmp.gt.f32.partialorder %v1166_v26, 0.0  ;;  %v577_v7 = vmul.f32 0.2, %v545_v61  ;;  %vm561_vm14 = vcmp.gt.f32.partialorder %v545_v61, 0.0 }
 0x23f   :  { %634 = vmax.xlane.f32.xlu1 %v4677_v48  ;;  %v1148_v35 = vpop.permute.xlu1 %1147 }
 0x240   :  { %v1214_v0 = vsel %vm1182_vm10, %v1166_v26, %v1198_v1  ;;  %v5468_v26 = vld [vmem:[#allocation9_spill] sm:$0xff]  ;;  %v1169_v1 = vadd.f32 %v3989_v41, %v1148_v35  ;;  %v593_v54 = vsel %vm561_vm14, %v545_v61, %v577_v7  ;;  %v544_v61 = vadd.f32 %v3947_v44, %v5470_v34 }
 0x241   :  { %1246 = vmax.xlane.f32.xlu0 %v4683_v12  ;;  %v4697_v8 = vsel %vm59_vm8, %v1214_v0, -1e+30  ;;  %v857_v20 = vadd.f32 %v3949_v45, %v5468_v26  ;;  %v4716_v3 = vsel %vm62_vm15, %v593_v54, -1e+30  ;;  %v5472_v54 = vld [vmem:[#allocation13_spill] sm:$0xff]  ;;  %vm2292_vm8 = vcmask 1043456  }
 0x242   :  { %5469 = vst [vmem:[#allocation12_spill] sm:$0xff] %v4716_v3  ;;  %v1201_v42 = vmul.f32 0.2, %v1169_v1  ;;  %vm1185_vm1 = vcmp.gt.f32.partialorder %v1169_v1, 0.0  ;;  %v576_v26 = vmul.f32 0.2, %v544_v61 }
 0x243   :  { %946 = vmax.xlane.f32.xlu1 %v4687_v6  ;;  %v889_v11 = vmul.f32 0.2, %v857_v20  ;;  %vm873_vm12 = vcmp.gt.f32.partialorder %v857_v20, 0.0  ;;  %v45_v44 = vld [vmem:[%s5420_s1 + $0x70] sm:$0xff]  ;;  %vm560_vm2 = vcmp.gt.f32.partialorder %v544_v61, 0.0  ;;  %vm2145_vm10 = vcmask 15360  }
 0x244   :  { %v1460_v49 = vpop.permute.xlu1 %1459  ;;  %v1217_v35 = vsel %vm1185_vm1, %v1169_v1, %v1201_v42  ;;  %vm61_vm4 = vcmp.gt.f32.partialorder %v45_v44, 0.0  ;;  %v5480_v44 = vld [vmem:[#allocation22_spill] sm:$0xff] }
 0x245   :  { %1558 = vmax.xlane.f32.xlu0 %v4693_v57  ;;  %v1481_v31 = vadd.f32 %v4021_v29, %v1460_v49  ;;  %v905_v62 = vsel %vm873_vm12, %v857_v20, %v889_v11  ;;  %v4727_v7 = vsel %vm62_vm15, %v1217_v35, -1e+30  ;;  %v592_v35 = vsel %vm560_vm2, %v544_v61, %v576_v26  ;;  %v5475_v61 = vld [vmem:[#allocation16_spill] sm:$0xff] }
 0x246   :  { %v4721_v60 = vsel %vm62_vm15, %v905_v62, -1e+30  ;;  %5471 = vst [vmem:[#allocation15_spill] sm:$0xff] %v4727_v7 }
 0x247   :  { %1258 = vmax.xlane.f32.xlu1 %v4697_v8  ;;  %v1513_v9 = vmul.f32 0.2, %v1481_v31  ;;  %vm1497_vm3 = vcmp.gt.f32.partialorder %v1481_v31, 0.0 }
 0x249   :  { %938 = vmax.xlane.f32.xlu0 %v4704_v40  ;;  %v832_v0 = vpop.permute.xlu1 %831  ;;  %v1529_v49 = vsel %vm1497_vm3, %v1481_v31, %v1513_v9 }
 0x24a   :  { %v856_v20 = vadd.f32 %v3949_v45, %v832_v0  ;;  %v4736_v34 = vsel %vm62_vm15, %v1529_v49, -1e+30  ;;  %v5473_v0 = vld [vmem:[#allocation14_spill] sm:$0xff] }
 0x24b   :  { %1570 = vmax.xlane.f32.xlu1 %v4711_v4 }
 0x24c   :  { %vm872_vm5 = vcmp.gt.f32.partialorder %v856_v20, 0.0 }
 0x24e   :  { %v1144_v62 = vpop.permute.xlu1 %1143 }
 0x24f   :  { %640 = vmax.xlane.f32.xlu1 %v4716_v3  ;;  %v888_v3 = vmul.f32 0.2, %v856_v20  ;;  %v1168_v45 = vadd.f32 %v3989_v41, %v1144_v62 }
 0x251   :  { %v1200_v49 = vmul.f32 0.2, %v1168_v45  ;;  %v904_v41 = vsel %vm872_vm5, %v856_v20, %v888_v3  ;;  %vm1184_vm6 = vcmp.gt.f32.partialorder %v1168_v45, 0.0  ;;  %v5477_v20 = vld [vmem:[#allocation19_spill] sm:$0xff] }
 0x253   :  { %952 = vmax.xlane.f32.xlu1 %v4721_v60 }
 0x256   :  { %v611_v47 = vpop.xlane.xlu0 %610 }
 0x257   :  { %v642_v11 = vsub.f32 %v5472_v54, %v611_v47  ;;  %1264 = vmax.xlane.f32.xlu1 %v4727_v7  ;;  %v4742_v54 = vsel %vm61_vm4, %v592_v35, -1e+30 }
 0x259   :  { %v658_v1 = vmul.f32 1.442695, %v642_v11  ;;  %v5474_v11 = vld [vmem:[#allocation11_spill] sm:$0xff] }
 0x25a   :  { %v923_v42 = vpop.xlane.xlu0 %922  ;;  %v1480_v27 = vadd.f32 %v4021_v29, %v5474_v11 }
 0x25b   :  { %3281 = vpow2.f32 %v658_v1  ;;  %v954_v47 = vsub.f32 %v5473_v0, %v923_v42  ;;  %1576 = vmax.xlane.f32.xlu1 %v4736_v34  ;;  %v4749_v42 = vsel %vm61_vm4, %v904_v41, -1e+30  ;;  %v5476_v0 = vld [vmem:[#allocation18_spill] sm:$0xff] }
 0x25c   :  { %v1512_v29 = vmul.f32 0.2, %v1480_v27  ;;  %vm1496_vm7 = vcmp.gt.f32.partialorder %v1480_v27, 0.0 }
 0x25d   :  { %v970_v31 = vmul.f32 1.442695, %v954_v47  ;;  %v1216_v47 = vsel %vm1184_vm6, %v1168_v45, %v1200_v49  ;;  %v5478_v49 = vld [vmem:[#allocation20_spill] sm:$0xff] }
 0x25e   :  { %v613_v9 = vpop.xlane.xlu0 %612  ;;  %v4754_v3 = vsel %vm61_vm4, %v1216_v47, -1e+30 }
 0x25f   :  { %3283 = vpow2.f32 %v970_v31  ;;  %v643_v26 = vsub.f32 %v5475_v61, %v613_v9  ;;  %638 = vmax.xlane.f32.xlu1 %v4742_v54 }
 0x261   :  { %v660_v62 = vmul.f32 1.442695, %v643_v26  ;;  %v1528_v26 = vsel %vm1496_vm7, %v1480_v27, %v1512_v29  ;;  %v5479_v27 = vld [vmem:[#allocation21_spill] sm:$0xff] }
 0x262   :  { %v925_v1 = vpop.xlane.xlu0 %924  ;;  %v4759_v45 = vsel %vm61_vm4, %v1528_v26, -1e+30 }
 0x263   :  { %3285 = vpow2.f32 %v660_v62  ;;  %v955_v35 = vsub.f32 %v5476_v0, %v925_v1  ;;  %950 = vmax.xlane.f32.xlu1 %v4749_v42 }
 0x265   :  { %v3282_v31 = vpop.eup %3281  ;;  %v972_v11 = vmul.f32 1.442695, %v955_v35 }
 0x266   :  { %690 = vadd.xlane.f32.xlu0 %v3282_v31  ;;  %v1235_v9 = vpop.xlane.xlu0 %1234 }
 0x267   :  { %3287 = vpow2.f32 %v972_v11  ;;  %v1266_v61 = vsub.f32 %v5477_v20, %v1235_v9  ;;  %1262 = vmax.xlane.f32.xlu1 %v4754_v3 }
 0x269   :  { %v3284_v41 = vpop.eup %3283  ;;  %v1282_v62 = vmul.f32 1.442695, %v1266_v61 }
 0x26a   :  { %1002 = vadd.xlane.f32.xlu0 %v3284_v41  ;;  %v1237_v1 = vpop.xlane.xlu0 %1236  ;;  %1902 = vmatprep.mubr.f32.mxu0 %v3284_v41 }
 0x26b   :  { %3289 = vpow2.f32 %v1282_v62  ;;  %v1267_v0 = vsub.f32 %v5478_v49, %v1237_v1  ;;  %1574 = vmax.xlane.f32.xlu1 %v4759_v45  ;;  %1903 = vmatmul.mubr.f32.vlgmr.msra.gmra.mrb[16].mxu0 %v3282_v31  ;;  %v5481_v1 = vld [vmem:[#allocation23_spill] sm:$0xff] }
 0x26d   :  { %v3286_v35 = vpop.eup %3285  ;;  %v1284_v47 = vmul.f32 1.442695, %v1267_v0 }
 0x26e   :  { %692 = vadd.xlane.f32.xlu0 %v3286_v35  ;;  %v1547_v11 = vpop.xlane.xlu0 %1546 }
 0x26f   :  { %3291 = vpow2.f32 %v1284_v47  ;;  %v1578_v29 = vsub.f32 %v5479_v27, %v1547_v11 }
 0x271   :  { %v3288_v9 = vpop.eup %3287  ;;  %v1594_v20 = vmul.f32 1.442695, %v1578_v29 }
 0x272   :  { %1004 = vadd.xlane.f32.xlu0 %v3288_v9  ;;  %v1549_v61 = vpop.xlane.xlu0 %1548  ;;  %1907 = vmatprep.mubr.f32.mxu0 %v3288_v9 }
 0x273   :  { %3293 = vpow2.f32 %v1594_v20  ;;  %v1579_v26 = vsub.f32 %v5480_v44, %v1549_v61  ;;  %1908 = vmatmul.mubr.f32.gmra.mrb[18].mxu0 %v3286_v35 }
 0x275   :  { %v3290_v41 = vpop.eup %3289  ;;  %v1596_v62 = vmul.f32 1.442695, %v1579_v26 }
 0x276   :  { %1314 = vadd.xlane.f32.xlu0 %v3290_v41  ;;  %v617_v31 = vpop.xlane.xlu0 %616 }
 0x277   :  { %3295 = vpow2.f32 %v1596_v62  ;;  %v645_v49 = vsub.f32 %v5481_v1, %v617_v31  ;;  %v5482_v62 = vld [vmem:[#allocation25_spill] sm:$0xff] }
 0x279   :  { %v3292_v0 = vpop.eup %3291  ;;  %v664_v47 = vmul.f32 1.442695, %v645_v49 }
 0x27a   :  { %1316 = vadd.xlane.f32.xlu0 %v3292_v0  ;;  %v929_v11 = vpop.xlane.xlu0 %928 }
 0x27b   :  { %3297 = vpow2.f32 %v664_v47  ;;  %v957_v27 = vsub.f32 %v4104_v18, %v929_v11 }
 0x27d   :  { %v3294_v29 = vpop.eup %3293  ;;  %v976_v9 = vmul.f32 1.442695, %v957_v27 }
 0x27e   :  { %1626 = vadd.xlane.f32.xlu0 %v3294_v29  ;;  %2047 = vmatprep.mubr.f32.mxu1 %v3294_v29  ;;  %v1241_v20 = vpop.xlane.xlu0 %1240 }
 0x27f   :  { %3299 = vpow2.f32 %v976_v9  ;;  %v1269_v35 = vsub.f32 %v4109_v55, %v1241_v20  ;;  %2048 = vmatmul.mubr.f32.vlgmr.msra.gmra.mrb[16].mxu1 %v3290_v41  ;;  %v5483_v9 = vld [vmem:[#allocation24_spill] sm:$0xff] }
 0x280   :  { %v629_v61 = vpop.xlane.xlu1 %628 }
 0x281   :  { %v3296_v44 = vpop.eup %3295  ;;  %v1288_v26 = vmul.f32 1.442695, %v1269_v35  ;;  %v651_v31 = vsub.f32 %v5482_v62, %v629_v61 }
 0x282   :  { %1628 = vadd.xlane.f32.xlu0 %v3296_v44  ;;  %v1553_v1 = vpop.xlane.xlu0 %1552  ;;  %2052 = vmatprep.mubr.f32.mxu1 %v3296_v44 }
 0x283   :  { %3301 = vpow2.f32 %v1288_v26  ;;  %v676_v49 = vmul.f32 1.442695, %v651_v31  ;;  %v1581_v18 = vsub.f32 %v4112_v10, %v1553_v1  ;;  %2053 = vmatmul.mubr.f32.gmra.mrb[18].mxu1 %v3292_v0  ;;  %v5484_v10 = vld [vmem:[#allocation26_spill] sm:$0xff] }
 0x284   :  { %v941_v47 = vpop.xlane.xlu1 %940 }
 0x285   :  { %v4770_v11 = vpop.eup %3297  ;;  %3303 = vpow2.f32 %v676_v49  ;;  %v1600_v27 = vmul.f32 1.442695, %v1581_v18  ;;  %v963_v55 = vsub.f32 %v4193_v33, %v941_v47 }
 0x286   :  { %696 = vadd.xlane.f32.xlu0 %v4770_v11  ;;  %v615_v41 = vpop.xlane.xlu0 %614 }
 0x287   :  { %3305 = vpow2.f32 %v1600_v27  ;;  %v988_v29 = vmul.f32 1.442695, %v963_v55  ;;  %v644_v20 = vsub.f32 %v5483_v9, %v615_v41 }
 0x288   :  { %v1253_v35 = vpop.xlane.xlu1 %1252 }
 0x289   :  { %v3300_v61 = vpop.eup %3299  ;;  %3307 = vpow2.f32 %v988_v29  ;;  %v662_v44 = vmul.f32 1.442695, %v644_v20  ;;  %v1275_v0 = vsub.f32 %v5484_v10, %v1253_v35 }
 0x28a   :  { %1008 = vadd.xlane.f32.xlu0 %v3300_v61  ;;  %v927_v26 = vpop.xlane.xlu0 %926 }
 0x28b   :  { %3309 = vpow2.f32 %v662_v44  ;;  %v1300_v62 = vmul.f32 1.442695, %v1275_v0  ;;  %v956_v31 = vsub.f32 %v4138_v32, %v927_v26 }
 0x28c   :  { %v1565_v33 = vpop.xlane.xlu1 %1564 }
 0x28d   :  { %v4777_v1 = vpop.eup %3301  ;;  %3311 = vpow2.f32 %v1300_v62  ;;  %v974_v49 = vmul.f32 1.442695, %v956_v31  ;;  %v1587_v18 = vsub.f32 %v4269_v37, %v1565_v33 }
 0x28e   :  { %1320 = vadd.xlane.f32.xlu0 %v4777_v1  ;;  %v1239_v47 = vpop.xlane.xlu0 %1238 }
 0x28f   :  { %v4781_v27 = vpop.eup %3303  ;;  %3313 = vpow2.f32 %v974_v49  ;;  %v1612_v55 = vmul.f32 1.442695, %v1587_v18  ;;  %v1268_v41 = vsub.f32 %v4209_v51, %v1239_v47 }
 0x290   :  { %708 = vadd.xlane.f32.xlu1 %v4781_v27  ;;  %v627_v29 = vpop.xlane.xlu1 %626 }
 0x291   :  { %v3306_v32 = vpop.eup %3305  ;;  %3315 = vpow2.f32 %v1612_v55  ;;  %v1286_v9 = vmul.f32 1.442695, %v1268_v41  ;;  %v650_v20 = vsub.f32 %v4312_v52, %v627_v29  ;;  %v5485_v55 = vld [vmem:[#allocation28_spill] sm:$0xff] }
 0x292   :  { %1632 = vadd.xlane.f32.xlu0 %v3306_v32  ;;  %v1551_v35 = vpop.xlane.xlu0 %1550 }
 0x293   :  { %v4786_v37 = vpop.eup %3307  ;;  %3317 = vpow2.f32 %v1286_v9  ;;  %v674_v44 = vmul.f32 1.442695, %v650_v20  ;;  %v1580_v10 = vsub.f32 %v4296_v56, %v1551_v35 }
 0x294   :  { %1020 = vadd.xlane.f32.xlu1 %v4786_v37  ;;  %v4790_v0 = vpop.xlane.xlu1 %1250 }
 0x295   :  { %v3310_v51 = vpop.eup %3309  ;;  %3319 = vpow2.f32 %v674_v44  ;;  %v1598_v26 = vmul.f32 1.442695, %v1580_v10 }
 0x296   :  { %694 = vadd.xlane.f32.xlu0 %v3310_v51  ;;  %v621_v62 = vpop.xlane.xlu0 %620 }
 0x297   :  { %v4792_v31 = vpop.eup %3311  ;;  %3321 = vpow2.f32 %v1598_v26  ;;  %v647_v52 = vsub.f32 %v4300_v53, %v621_v62 }
 0x298   :  { %1332 = vadd.xlane.f32.xlu1 %v4792_v31  ;;  %v4796_v33 = vpop.xlane.xlu1 %1562 }
 0x299   :  { %v3314_v49 = vpop.eup %3313  ;;  %v668_v56 = vmul.f32 1.442695, %v647_v52 }
 0x29a   :  { %1006 = vadd.xlane.f32.xlu0 %v3314_v49  ;;  %v933_v18 = vpop.xlane.xlu0 %932  ;;  %1912 = vmatprep.mubr.f32.mxu0 %v3314_v49 }
 0x29b   :  { %v4798_v47 = vpop.eup %3315  ;;  %3323 = vpow2.f32 %v668_v56  ;;  %v959_v41 = vsub.f32 %v5485_v55, %v933_v18  ;;  %1913 = vmatmul.mubr.f32.gmra.mrb[20].mxu0 %v3310_v51 }
 0x29c   :  { %1644 = vadd.xlane.f32.xlu1 %v4798_v47  ;;  %v4802_v29 = vpop.xlane.xlu1 %632  ;;  %1917 = vmatprep.mubr.f32.mxu0 %v3300_v61 }
 0x29d   :  { %v3318_v53 = vpop.eup %3317  ;;  %v980_v9 = vmul.f32 1.442695, %v959_v41 }
 0x29e   :  { %1318 = vadd.xlane.f32.xlu0 %v3318_v53  ;;  %v1245_v20 = vpop.xlane.xlu0 %1244 }
 0x29f   :  { %v4804_v35 = vpop.eup %3319  ;;  %3325 = vpow2.f32 %v980_v9  ;;  %v1271_v44 = vsub.f32 %v4401_v13, %v1245_v20  ;;  %1918 = vmatmul.mubr.f32.gmra.mrb[22].mxu0 %v4770_v11 }
 0x2a0   :  { %706 = vadd.xlane.f32.xlu1 %v4804_v35  ;;  %v4809_v10 = vpop.xlane.xlu1 %944 }
 0x2a1   :  { %v3322_v51 = vpop.eup %3321  ;;  %v1292_v26 = vmul.f32 1.442695, %v1271_v44 }
 0x2a2   :  { %1630 = vadd.xlane.f32.xlu0 %v3322_v51  ;;  %v1557_v62 = vpop.xlane.xlu0 %1556  ;;  %2057 = vmatprep.mubr.f32.mxu1 %v3322_v51 }
 0x2a3   :  { %3327 = vpow2.f32 %v1292_v26  ;;  %v1583_v61 = vsub.f32 %v4501_v46, %v1557_v62  ;;  %2058 = vmatmul.mubr.f32.gmra.mrb[20].mxu1 %v3318_v53  ;;  %v3473_v62 = vld [vmem:[%s5421_s2 + $0x40] sm:$0xf] }
 0x2a4   :  { %v4812_v52 = vpop.xlane.xlu1 %1256  ;;  %2062 = vmatprep.mubr.f32.mxu1 %v3306_v32  ;;  %3107 = vmatprep.subr.msk.mxu0 %vm2292_vm8, %v3473_v62 }
 0x2a5   :  { %v3324_v49 = vpop.eup %3323  ;;  %v1604_v13 = vmul.f32 1.442695, %v1583_v61  ;;  %3213 = vmatprep.subr.msk.mxu1 %vm2292_vm8, %v3473_v62  ;;  %3108 = vmatpush3.msk.msra.mxu0 %vm2292_vm8, %v3473_v62 }
 0x2a6   :  { %700 = vadd.xlane.f32.xlu0 %v3324_v49  ;;  %v619_v11 = vpop.xlane.xlu0 %618  ;;  %3214 = vmatpush3.msk.msra.mxu1 %vm2292_vm8, %v3473_v62 }
 0x2a7   :  { %3329 = vpow2.f32 %v1604_v13  ;;  %v646_v56 = vsub.f32 %v4529_v16, %v619_v11  ;;  %2063 = vmatmul.mubr.f32.gmra.mrb[22].mxu1 %v4777_v1 }
 0x2a8   :  { %v4816_v18 = vpop.xlane.xlu1 %1568 }
 0x2a9   :  { %v3326_v55 = vpop.eup %3325  ;;  %v666_v41 = vmul.f32 1.442695, %v646_v56 }
 0x2aa   :  { %1012 = vadd.xlane.f32.xlu0 %v3326_v55  ;;  %v931_v9 = vpop.xlane.xlu0 %930 }
 0x2ab   :  { %3331 = vpow2.f32 %v666_v41  ;;  %v958_v46 = vsub.f32 %v4550_v43, %v931_v9 }
 0x2ac   :  { %v4819_v53 = vpop.xlane.xlu1 %630 }
 0x2ad   :  { %v3328_v32 = vpop.eup %3327  ;;  %v978_v20 = vmul.f32 1.442695, %v958_v46 }
 0x2ae   :  { %1324 = vadd.xlane.f32.xlu0 %v3328_v32  ;;  %v1243_v44 = vpop.xlane.xlu0 %1242 }
 0x2af   :  { %3333 = vpow2.f32 %v978_v20  ;;  %v1270_v16 = vsub.f32 %v4567_v17, %v1243_v44 }
 0x2b0   :  { %v4822_v51 = vpop.xlane.xlu1 %942 }
 0x2b1   :  { %v3330_v1 = vpop.eup %3329  ;;  %v1290_v26 = vmul.f32 1.442695, %v1270_v16 }
 0x2b2   :  { %1636 = vadd.xlane.f32.xlu0 %v3330_v1  ;;  %v1555_v43 = vpop.xlane.xlu0 %1554 }
 0x2b3   :  { %3335 = vpow2.f32 %v1290_v26  ;;  %v1582_v61 = vsub.f32 %v4586_v21, %v1555_v43 }
 0x2b4   :  { %v4828_v13 = vpop.xlane.xlu1 %1254 }
 0x2b5   :  { %v3332_v17 = vpop.eup %3331  ;;  %v1602_v11 = vmul.f32 1.442695, %v1582_v61 }
 0x2b6   :  { %698 = vadd.xlane.f32.xlu0 %v3332_v17  ;;  %v625_v56 = vpop.xlane.xlu0 %624 }
 0x2b7   :  { %3337 = vpow2.f32 %v1602_v11  ;;  %v649_v41 = vsub.f32 %v4601_v2, %v625_v56 }
 0x2b8   :  { %v4831_v9 = vpop.xlane.xlu1 %1566 }
 0x2b9   :  { %v3334_v46 = vpop.eup %3333  ;;  %v672_v20 = vmul.f32 1.442695, %v649_v41 }
 0x2ba   :  { %1010 = vadd.xlane.f32.xlu0 %v3334_v46  ;;  %v937_v44 = vpop.xlane.xlu0 %936  ;;  %1922 = vmatprep.mubr.f32.mxu0 %v3334_v46 }
 0x2bb   :  { %3339 = vpow2.f32 %v672_v20  ;;  %v961_v21 = vsub.f32 %v4619_v24, %v937_v44  ;;  %1923 = vmatmul.mubr.f32.gmra.mrb[24].mxu0 %v3332_v17 }
 0x2bc   :  { %v4834_v16 = vpop.xlane.xlu1 %636  ;;  %1927 = vmatprep.mubr.f32.mxu0 %v3326_v55 }
 0x2bd   :  { %v3336_v26 = vpop.eup %3335  ;;  %v984_v62 = vmul.f32 1.442695, %v961_v21 }
 0x2be   :  { %1322 = vadd.xlane.f32.xlu0 %v3336_v26  ;;  %v1249_v43 = vpop.xlane.xlu0 %1248 }
 0x2bf   :  { %3341 = vpow2.f32 %v984_v62  ;;  %v1273_v2 = vsub.f32 %v4631_v25, %v1249_v43  ;;  %1928 = vmatmul.mubr.f32.gmra.mrb[26].mxu0 %v3324_v49 }
 0x2c0   :  { %v4837_v61 = vpop.xlane.xlu1 %948 }
 0x2c1   :  { %v3338_v11 = vpop.eup %3337  ;;  %v1296_v56 = vmul.f32 1.442695, %v1273_v2 }
 0x2c2   :  { %1634 = vadd.xlane.f32.xlu0 %v3338_v11  ;;  %v1561_v41 = vpop.xlane.xlu0 %1560  ;;  %2067 = vmatprep.mubr.f32.mxu1 %v3338_v11 }
 0x2c3   :  { %3343 = vpow2.f32 %v1296_v56  ;;  %2068 = vmatmul.mubr.f32.gmra.mrb[24].mxu1 %v3336_v26  ;;  %v1585_v2 = vsub.f32 %v4646_v28, %v1561_v41 }
 0x2c4   :  { %v4839_v24 = vpop.xlane.xlu1 %1260  ;;  %2072 = vmatprep.mubr.f32.mxu1 %v3330_v1 }
 0x2c5   :  { %v3340_v55 = vpop.eup %3339 }
 0x2c6   :  { %704 = vadd.xlane.f32.xlu0 %v3340_v55  ;;  %v623_v17 = vpop.xlane.xlu0 %622 }
 0x2c7   :  { %v648_v46 = vsub.f32 %v4657_v30, %v623_v17  ;;  %2073 = vmatmul.mubr.f32.gmra.mrb[26].mxu1 %v3328_v32 }
 0x2c8   :  { %v4842_v25 = vpop.xlane.xlu1 %1572 }
 0x2c9   :  { %v3342_v49 = vpop.eup %3341  ;;  %v670_v20 = vmul.f32 1.442695, %v648_v46 }
 0x2ca   :  { %1016 = vadd.xlane.f32.xlu0 %v3342_v49  ;;  %v935_v44 = vpop.xlane.xlu0 %934 }
 0x2cb   :  { %3345 = vpow2.f32 %v670_v20  ;;  %v960_v21 = vsub.f32 %v4671_v15, %v935_v44  ;;  %v5486_v20 = vld [vmem:[#allocation29_spill] sm:$0xff] }
 0x2cc   :  { %v4845_v62 = vpop.xlane.xlu1 %634  ;;  %v1586_v44 = vsub.f32 %v5486_v20, %v4796_v33 }
 0x2cd   :  { %v4847_v26 = vpop.eup %3343  ;;  %v982_v1 = vmul.f32 1.442695, %v960_v21  ;;  %v1608_v21 = vmul.f32 1.442695, %v1585_v2  ;;  %v1588_v2 = vsub.f32 %v4608_v22, %v4831_v9  ;;  %v1589_v22 = vsub.f32 %v4539_v38, %v4816_v18 }
 0x2ce   :  { %1328 = vadd.xlane.f32.xlu0 %v4847_v26  ;;  %v1247_v43 = vpop.xlane.xlu0 %1246 }
 0x2cf   :  { %3347 = vpow2.f32 %v982_v1  ;;  %v1272_v30 = vsub.f32 %v4683_v12, %v1247_v43  ;;  %v5487_v12 = vld [vmem:[#allocation27_spill] sm:$0xff]  ;;  %v1614_v9 = vmul.f32 1.442695, %v1588_v2 }
 0x2d0   :  { %v4851_v32 = vpop.xlane.xlu1 %946  ;;  %v1274_v43 = vsub.f32 %v5487_v12, %v4790_v0  ;;  %v652_v0 = vsub.f32 %v4560_v36, %v4819_v53  ;;  %v1276_v36 = vsub.f32 %v4594_v58, %v4828_v13  ;;  %v654_v13 = vsub.f32 %v4677_v48, %v4845_v62 }
 0x2d1   :  { %v1294_v11 = vmul.f32 1.442695, %v1272_v30  ;;  %v655_v48 = vsub.f32 %v4625_v19, %v4834_v16 }
 0x2d2   :  { %v1559_v56 = vpop.xlane.xlu0 %1558  ;;  %v1298_v33 = vmul.f32 1.442695, %v1274_v43  ;;  %v1302_v58 = vmul.f32 1.442695, %v1276_v36  ;;  %v682_v62 = vmul.f32 1.442695, %v654_v13 }
 0x2d3   :  { %3349 = vpow2.f32 %v1294_v11  ;;  %v1584_v15 = vsub.f32 %v4693_v57, %v1559_v56  ;;  %v1610_v57 = vmul.f32 1.442695, %v1586_v44  ;;  %v964_v56 = vsub.f32 %v4579_v23, %v4822_v51 }
 0x2d4   :  { %v4855_v17 = vpop.xlane.xlu1 %1258  ;;  %v653_v51 = vsub.f32 %v4455_v50, %v4802_v29  ;;  %v684_v16 = vmul.f32 1.442695, %v655_v48 }
 0x2d5   :  { %v3346_v46 = vpop.eup %3345  ;;  %v1606_v7 = vmul.f32 1.442695, %v1584_v15  ;;  %v965_v15 = vsub.f32 %v4488_v5, %v4809_v10  ;;  %v990_v23 = vmul.f32 1.442695, %v964_v56  ;;  %v966_v5 = vsub.f32 %v4687_v6, %v4851_v32 }
 0x2d6   :  { %702 = vadd.xlane.f32.xlu0 %v3346_v46  ;;  %v939_v1 = vpop.xlane.xlu0 %938  ;;  %v680_v29 = vmul.f32 1.442695, %v653_v51  ;;  %v1277_v10 = vsub.f32 %v4514_v63, %v4812_v52  ;;  %v967_v32 = vsub.f32 %v4637_v59, %v4837_v61 }
 0x2d7   :  { %3351 = vpow2.f32 %v1606_v7  ;;  %v962_v28 = vsub.f32 %v4704_v40, %v939_v1  ;;  %v992_v20 = vmul.f32 1.442695, %v965_v15  ;;  %v994_v63 = vmul.f32 1.442695, %v966_v5 }
 0x2d8   :  { %v4862_v41 = vpop.xlane.xlu1 %1570  ;;  %3353 = vpow2.f32 %v1608_v21  ;;  %v1304_v44 = vmul.f32 1.442695, %v1277_v10  ;;  %v1591_v21 = vsub.f32 %v4663_v14, %v4842_v25  ;;  %v996_v19 = vmul.f32 1.442695, %v967_v32 }
 0x2d9   :  { %v3348_v30 = vpop.eup %3347  ;;  %v986_v11 = vmul.f32 1.442695, %v962_v28  ;;  %v1590_v6 = vsub.f32 %v4711_v4, %v4862_v41  ;;  %v1278_v4 = vsub.f32 %v4697_v8, %v4855_v17  ;;  %v5488_v41 = vld [vmem:[#allocation12_spill] sm:$0xff] }
 0x2da   :  { %1014 = vadd.xlane.f32.xlu0 %v3348_v30  ;;  %1932 = vmatprep.mubr.f32.mxu0 %v3348_v30  ;;  %v1620_v14 = vmul.f32 1.442695, %v1591_v21 }
 0x2db   :  { %3355 = vpow2.f32 %v986_v11  ;;  %1933 = vmatmul.mubr.f32.gmra.mrb[28].mxu0 %v3346_v46  ;;  %v678_v46 = vmul.f32 1.442695, %v652_v0  ;;  %v1618_v1 = vmul.f32 1.442695, %v1590_v6 }
 0x2dc   :  { %v4868_v7 = vpop.xlane.xlu1 %640  ;;  %1937 = vmatprep.mubr.f32.mxu0 %v3342_v49  ;;  %3357 = vpow2.f32 %v1610_v57 }
 0x2dd   :  { %v3350_v40 = vpop.eup %3349  ;;  %3359 = vpow2.f32 %v1298_v33 }
 0x2de   :  { %1326 = vadd.xlane.f32.xlu0 %v3350_v40  ;;  %3361 = vpow2.f32 %v990_v23 }
 0x2df   :  { %1938 = vmatmul.mubr.f32.gmra.mrb[30].mxu0 %v3340_v55  ;;  %3363 = vpow2.f32 %v678_v46  ;;  %v1616_v55 = vmul.f32 1.442695, %v1589_v22  ;;  %v5489_v22 = vld [vmem:[#allocation15_spill] sm:$0xff] }
 0x2e0   :  { %v4878_v53 = vpop.xlane.xlu1 %952  ;;  %3365 = vpow2.f32 %v1614_v9 }
 0x2e1   :  { %v3352_v49 = vpop.eup %3351  ;;  %3367 = vpow2.f32 %v992_v20 }
 0x2e2   :  { %1638 = vadd.xlane.f32.xlu0 %v3352_v49  ;;  %2077 = vmatprep.mubr.f32.mxu1 %v3352_v49  ;;  %v3354_v50 = vpop.eup %3353  ;;  %3369 = vpow2.f32 %v680_v29 }
 0x2e3   :  { %2078 = vmatmul.mubr.f32.gmra.mrb[28].mxu1 %v3350_v40  ;;  %3371 = vpow2.f32 %v1302_v58 }
 0x2e4   :  { %v4888_v38 = vpop.xlane.xlu1 %1264  ;;  %2082 = vmatprep.mubr.f32.mxu1 %v3354_v50  ;;  %3373 = vpow2.f32 %v1616_v55 }
 0x2e5   :  { %v3356_v18 = vpop.eup %3355  ;;  %3375 = vpow2.f32 %v994_v63 }
 0x2e6   :  { %1640 = vadd.xlane.f32.xlu0 %v3354_v50  ;;  %1018 = vadd.xlane.f32.xlu1 %v3356_v18  ;;  %v3358_v52 = vpop.eup %3357  ;;  %3377 = vpow2.f32 %v1304_v44 }
 0x2e7   :  { %1942 = vmatprep.mubr.f32.mxu0 %v3356_v18  ;;  %2083 = vmatmul.mubr.f32.gmra.mrb[30].mxu1 %v4847_v26  ;;  %v3360_v61 = vpop.eup %3359  ;;  %3379 = vpow2.f32 %v682_v62  ;;  %v1306_v26 = vmul.f32 1.442695, %v1278_v4 }
 0x2e8   :  { %1943 = vmatmul.mubr.f32.gmra.mrb[32].mxu0 %v4804_v35  ;;  %v4900_v59 = vpop.xlane.xlu1 %1576  ;;  %2087 = vmatprep.mubr.f32.mxu1 %v3358_v52  ;;  %v4905_v8 = vpop.eup %3361  ;;  %v1279_v35 = vsub.f32 %v4652_v39, %v4839_v24  ;;  %3381 = vpow2.f32 %v1618_v1  ;;  %v969_v39 = vsub.f32 %v4721_v60, %v4878_v53  ;;  %v657_v60 = vsub.f32 %v5488_v41, %v4868_v7 }
 0x2e9   :  { %1947 = vmatprep.mubr.f32.mxu0 %v4786_v37  ;;  %v4912_v37 = vpop.eup %3363  ;;  %3383 = vpow2.f32 %v996_v19  ;;  %v1593_v23 = vsub.f32 %v4736_v34, %v4900_v59  ;;  %v1281_v34 = vsub.f32 %v5489_v22, %v4888_v38 }
 0x2ea   :  { %1330 = vadd.xlane.f32.xlu1 %v3360_v61  ;;  %v4915_v12 = vpop.eup %3365  ;;  %3385 = vpow2.f32 %v684_v16  ;;  %v1000_v57 = vmul.f32 1.442695, %v969_v39  ;;  %v688_v40 = vmul.f32 1.442695, %v657_v60 }
 0x2eb   :  { %2088 = vmatmul.mubr.f32.gmra.mrb[32].mxu1 %v3360_v61  ;;  %3387 = vpow2.f32 %v1306_v26  ;;  %v1624_v5 = vmul.f32 1.442695, %v1593_v23  ;;  %v1312_v10 = vmul.f32 1.442695, %v1281_v34 }
 0x2ec   :  { %1948 = vmatmul.mubr.f32.gmra.mrb[34].mxu0 %v4781_v27  ;;  %v639_v17 = vpop.xlane.xlu1 %638  ;;  %2092 = vmatprep.mubr.f32.mxu1 %v4798_v47  ;;  %v3368_v27 = vpop.eup %3367  ;;  %v1308_v47 = vmul.f32 1.442695, %v1279_v35  ;;  %3389 = vpow2.f32 %v1620_v14 }
 0x2ed   :  { %1952 = vmatprep.mubr.f32.mxu0 %v4905_v8  ;;  %v656_v25 = vsub.f32 %v4742_v54, %v639_v17  ;;  %v3370_v43 = vpop.eup %3369 }
 0x2ee   :  { %1642 = vadd.xlane.f32.xlu1 %v3358_v52  ;;  %v4923_v28 = vpop.eup %3371  ;;  %3391 = vpow2.f32 %v1308_v47 }
 0x2ef   :  { %2093 = vmatmul.mubr.f32.gmra.mrb[34].mxu1 %v4792_v31  ;;  %v686_v30 = vmul.f32 1.442695, %v656_v25  ;;  %v3374_v31 = vpop.eup %3373 }
 0x2f0   :  { %1953 = vmatmul.mubr.f32.gmra.mrb[36].mxu0 %v4912_v37  ;;  %v951_v24 = vpop.xlane.xlu1 %950  ;;  %2097 = vmatprep.mubr.f32.mxu1 %v4915_v12  ;;  %v4930_v33 = vpop.eup %3375 }
 0x2f1   :  { %v968_v54 = vsub.f32 %v4749_v42, %v951_v24  ;;  %1957 = vmatprep.mubr.f32.mxu0 %v3368_v27  ;;  %v3378_v0 = vpop.eup %3377 }
 0x2f2   :  { %712 = vadd.xlane.f32.xlu1 %v3370_v43  ;;  %v4933_v7 = vpop.eup %3379 }
 0x2f3   :  { %v998_v11 = vmul.f32 1.442695, %v968_v54  ;;  %v4927_v56 = vpop.xlane.xlu0 %690  ;;  %2098 = vmatmul.mubr.f32.gmra.mrb[36].mxu1 %v4923_v28  ;;  %v4936_v15 = vpop.eup %3381 }
 0x2f4   :  { %1958 = vmatmul.mubr.f32.gmra.mrb[38].mxu0 %v3370_v43  ;;  %v1263_v42 = vpop.xlane.xlu1 %1262  ;;  %2102 = vmatprep.mubr.f32.mxu1 %v3374_v31  ;;  %v4940_v46 = vpop.eup %3383 }
 0x2f5   :  { %3393 = vpow2.f32 %v998_v11  ;;  %1962 = vmatprep.mubr.f32.mxu0 %v4930_v33  ;;  %v1280_v2 = vsub.f32 %v4754_v3, %v1263_v42  ;;  %v3386_v53 = vpop.eup %3385 }
 0x2f6   :  { %3395 = vpow2.f32 %v686_v30  ;;  %1024 = vadd.xlane.f32.xlu1 %v3368_v27  ;;  %v4946_v3 = vpop.eup %3387 }
 0x2f7   :  { %3397 = vpow2.f32 %v1000_v57  ;;  %v1003_v51 = vpop.xlane.xlu0 %1002  ;;  %2103 = vmatmul.mubr.f32.gmra.mrb[38].mxu1 %v3378_v0  ;;  %v1310_v9 = vmul.f32 1.442695, %v1280_v2  ;;  %v4950_v20 = vpop.eup %3389 }
 0x2f8   :  { %1963 = vmatmul.mubr.f32.gmra.mrb[40].mxu0 %v4933_v7  ;;  %v1575_v36 = vpop.xlane.xlu1 %1574  ;;  %2107 = vmatprep.mubr.f32.mxu1 %v4936_v15  ;;  %3399 = vpow2.f32 %v688_v40  ;;  %v2129_v48 = vsel %vm2128_vm9, %v4927_v56, %v1003_v51 }
 0x2f9   :  { %v1592_v49 = vsub.f32 %v4759_v45, %v1575_v36  ;;  %1967 = vmatprep.mubr.f32.mxu0 %v4940_v46  ;;  %v3392_v45 = vpop.eup %3391 }
 0x2fa   :  { %1336 = vadd.xlane.f32.xlu1 %v3378_v0 }
 0x2fb   :  { %v1622_v50 = vmul.f32 1.442695, %v1592_v49  ;;  %v693_v29 = vpop.xlane.xlu0 %692  ;;  %2108 = vmatmul.mubr.f32.gmra.mrb[40].mxu1 %v4946_v3 }
 0x2fc   :  { %1968 = vmatmul.mubr.f32.gmra.mrb[42].mxu0 %v3386_v53  ;;  %2112 = vmatprep.mubr.f32.mxu1 %v4950_v20 }
 0x2fd   :  { %3401 = vpow2.f32 %v1622_v50 }
 0x2fe   :  { %3403 = vpow2.f32 %v1310_v9  ;;  %1648 = vadd.xlane.f32.xlu1 %v3374_v31 }
 0x2ff   :  { %v4954_v58 = vpop.eup %3393  ;;  %3405 = vpow2.f32 %v1624_v5  ;;  %v1005_v13 = vpop.xlane.xlu0 %1004  ;;  %2113 = vmatmul.mubr.f32.gmra.mrb[42].mxu1 %v3392_v45 }
 0x300   :  { %v4956_v38 = vpop.eup %3395  ;;  %1972 = vmatprep.mubr.f32.mxu0 %v4954_v58  ;;  %3407 = vpow2.f32 %v1312_v10  ;;  %v2130_v21 = vsel %vm2128_vm9, %v693_v29, %v1005_v13 }
 0x301   :  { %v4959_v18 = vpop.eup %3397  ;;  %1973 = vmatmul.mubr.f32.gmra.mrb[44].mxu0 %v4956_v38 }
 0x302   :  { %710 = vadd.xlane.f32.xlu1 %v4912_v37  ;;  %1977 = vmatprep.mubr.f32.mxu0 %v4959_v18  ;;  %v3400_v6 = vpop.eup %3399 }
 0x303   :  { %v1315_v55 = vpop.xlane.xlu0 %1314 }
 0x304   :  { %v2146_v62 = vsel %vm2145_vm10, %v2129_v48, %v1315_v55 }
 0x305   :  { %1978 = vmatmul.mubr.f32.gmra.mrb[46].mxu0 %v3400_v6 }
 0x306   :  { %1022 = vadd.xlane.f32.xlu1 %v4905_v8 }
 0x307   :  { %v4965_v32 = vpop.eup %3401  ;;  %v1317_v63 = vpop.xlane.xlu0 %1316 }
 0x308   :  { %v4967_v52 = vpop.eup %3403  ;;  %2117 = vmatprep.mubr.f32.mxu1 %v4965_v32  ;;  %v2147_v1 = vsel %vm2145_vm10, %v2130_v21, %v1317_v63 }
 0x309   :  { %v4970_v44 = vpop.eup %3405  ;;  %2118 = vmatmul.mubr.f32.gmra.mrb[44].mxu1 %v4967_v52 }
 0x30a   :  { %1334 = vadd.xlane.f32.xlu1 %v4923_v28  ;;  %2122 = vmatprep.mubr.f32.mxu1 %v4970_v44  ;;  %v3408_v59 = vpop.eup %3407 }
 0x30b   :  { %v1627_v4 = vpop.xlane.xlu0 %1626 }
 0x30c   :  { %v2163_v61 = vsel %vm2162_vm13, %v2146_v62, %v1627_v4 }
 0x30d   :  { %3409 = vrcp.f32 %v2163_v61  ;;  %2123 = vmatmul.mubr.f32.gmra.mrb[46].mxu1 %v3408_v59 }
 0x30e   :  { %1646 = vadd.xlane.f32.xlu1 %v4915_v12 }
 0x30f   :  { %v1629_v19 = vpop.xlane.xlu0 %1628 }
 0x310   :  { %v2164_v16 = vsel %vm2162_vm13, %v2147_v1, %v1629_v19 }
 0x311   :  { %3411 = vrcp.f32 %v2164_v16 }
 0x312   :  { %716 = vadd.xlane.f32.xlu1 %v3386_v53 }
 0x313   :  { %v697_v8 = vpop.xlane.xlu0 %696 }
 0x316   :  { %1028 = vadd.xlane.f32.xlu1 %v4940_v46 }
 0x317   :  { %v3410_v35 = vpop.eup %3409  ;;  %v1009_v26 = vpop.xlane.xlu0 %1008 }
 0x318   :  { %v2195_v17 = vmul.f32 %v3410_v35, %v2163_v61  ;;  %v2132_v54 = vsel %vm2128_vm9, %v697_v8, %v1009_v26 }
 0x31a   :  { %v2211_v14 = vsub.f32 2.0, %v2195_v17  ;;  %1340 = vadd.xlane.f32.xlu1 %v3392_v45 }
 0x31b   :  { %v3412_v37 = vpop.eup %3411  ;;  %v1321_v25 = vpop.xlane.xlu0 %1320 }
 0x31c   :  { %v2227_v39 = vmul.f32 %v3410_v35, %v2211_v14  ;;  %v2196_v12 = vmul.f32 %v3412_v37, %v2164_v16  ;;  %v2149_v41 = vsel %vm2145_vm10, %v2132_v54, %v1321_v25 }
 0x31d   :  { %v709_v4 = vpop.xlane.xlu1 %708 }
 0x31e   :  { %v2212_v27 = vsub.f32 2.0, %v2196_v12  ;;  %1652 = vadd.xlane.f32.xlu1 %v4950_v20  ;;  %3109 = vmatprep.mubr.msk.f32.mxu0 %vm2243_vm11, %v2227_v39 }
 0x31f   :  { %v1633_v47 = vpop.xlane.xlu0 %1632 }
 0x320   :  { %v2228_v24 = vmul.f32 %v3412_v37, %v2212_v27  ;;  %v2166_v60 = vsel %vm2162_vm13, %v2149_v41, %v1633_v47 }
 0x321   :  { %3413 = vrcp.f32 %v2166_v60  ;;  %v1021_v8 = vpop.xlane.xlu1 %1020 }
 0x322   :  { %714 = vadd.xlane.f32.xlu1 %v4933_v7  ;;  %3110 = vmatmul.mubr.msk.f32.vlgmr.msra.gmra.mrb[48].mxu0 %vm2243_vm11, %v2228_v24 }
 0x323   :  { %v695_v43 = vpop.xlane.xlu0 %694 }
 0x325   :  { %v1333_v39 = vpop.xlane.xlu1 %1332 }
 0x326   :  { %1026 = vadd.xlane.f32.xlu1 %v4930_v33 }
 0x327   :  { %v1007_v28 = vpop.xlane.xlu0 %1006 }
 0x328   :  { %v2131_v31 = vsel %vm2128_vm9, %v695_v43, %v1007_v28 }
 0x329   :  { %v1645_v47 = vpop.xlane.xlu1 %1644 }
 0x32a   :  { %1338 = vadd.xlane.f32.xlu1 %v4946_v3 }
 0x32b   :  { %v1319_v30 = vpop.xlane.xlu0 %1318  ;;  %v3414_v42 = vpop.eup %3413 }
 0x32c   :  { %v2148_v57 = vsel %vm2145_vm10, %v2131_v31, %v1319_v30  ;;  %v2198_v7 = vmul.f32 %v3414_v42, %v2166_v60 }
 0x32d   :  { %v707_v43 = vpop.xlane.xlu1 %706 }
 0x32e   :  { %1650 = vadd.xlane.f32.xlu1 %v4936_v15  ;;  %v2214_v51 = vsub.f32 2.0, %v2198_v7 }
 0x32f   :  { %v1631_v11 = vpop.xlane.xlu0 %1630 }
 0x330   :  { %v2165_v56 = vsel %vm2162_vm13, %v2148_v57, %v1631_v11  ;;  %v2230_v22 = vmul.f32 %v3414_v42, %v2214_v51 }
 0x331   :  { %3415 = vrcp.f32 %v2165_v56 }
 0x332   :  { %720 = vadd.xlane.f32.xlu1 %v3400_v6 }
 0x333   :  { %v701_v33 = vpop.xlane.xlu0 %700 }
 0x336   :  { %1032 = vadd.xlane.f32.xlu1 %v4959_v18 }
 0x337   :  { %v1013_v0 = vpop.xlane.xlu0 %1012 }
 0x338   :  { %v2134_v20 = vsel %vm2128_vm9, %v701_v33, %v1013_v0  ;;  %v2138_v33 = vsel %vm2128_vm9, %v709_v4, %v1021_v8 }
 0x33a   :  { %1344 = vadd.xlane.f32.xlu1 %v3408_v59 }
 0x33b   :  { %v3416_v40 = vpop.eup %3415  ;;  %v1325_v2 = vpop.xlane.xlu0 %1324 }
 0x33c   :  { %v2197_v23 = vmul.f32 %v3416_v40, %v2165_v56  ;;  %v2151_v29 = vsel %vm2145_vm10, %v2134_v20, %v1325_v2 }
 0x33e   :  { %v2213_v46 = vsub.f32 2.0, %v2197_v23  ;;  %718 = vadd.xlane.f32.xlu1 %v4956_v38  ;;  %v2898_v15 = vpop.f32.mrb[16].mxu0 }
 0x33f   :  { %v1637_v36 = vpop.xlane.xlu0 %1636  ;;  %v2899_v53 = vpop.f32.mrb[17].mxu0 }
 0x340   :  { %v2229_v49 = vmul.f32 %v3416_v40, %v2213_v46  ;;  %v2900_v3 = vadd.f32 %v2899_v53, %v2898_v15  ;;  %v2168_v10 = vsel %vm2162_vm13, %v2151_v29, %v1637_v36  ;;  %v2155_v40 = vsel %vm2145_vm10, %v2138_v33, %v1333_v39 }
 0x341   :  { %3417 = vrcp.f32 %v2168_v10  ;;  %v2172_v51 = vsel %vm2162_vm13, %v2155_v40, %v1645_v47 }
 0x342   :  { %1030 = vadd.xlane.f32.xlu1 %v4954_v58  ;;  %3112 = vmatprep.mubr.msk.f32.mxu0 %vm2243_vm11, %v2229_v49 }
 0x343   :  { %v699_v34 = vpop.xlane.xlu0 %698  ;;  %3113 = vmatmul.mubr.msk.f32.gmra.mrb[50].mxu0 %vm2243_vm11, %v2230_v22 }
 0x346   :  { %1342 = vadd.xlane.f32.xlu1 %v4967_v52  ;;  %v2901_v9 = vpop.f32.mrb[18].mxu0 }
 0x347   :  { %v1011_v5 = vpop.xlane.xlu0 %1010  ;;  %v2902_v50 = vpop.f32.mrb[19].mxu0 }
 0x348   :  { %v2903_v45 = vadd.f32 %v2902_v50, %v2901_v9  ;;  %v2133_v13 = vsel %vm2128_vm9, %v699_v34, %v1011_v5 }
 0x34a   :  { %1654 = vadd.xlane.f32.xlu1 %v4965_v32 }
 0x34b   :  { %v1323_v58 = vpop.xlane.xlu0 %1322  ;;  %v3418_v62 = vpop.eup %3417 }
 0x34c   :  { %v2150_v38 = vsel %vm2145_vm10, %v2133_v13, %v1323_v58  ;;  %v2200_v1 = vmul.f32 %v3418_v62, %v2168_v10 }
 0x34e   :  { %1656 = vadd.xlane.f32.xlu1 %v4970_v44  ;;  %v2216_v26 = vsub.f32 2.0, %v2200_v1 }
 0x34f   :  { %v1635_v18 = vpop.xlane.xlu0 %1634 }
 0x350   :  { %v2167_v55 = vsel %vm2162_vm13, %v2150_v38, %v1635_v18  ;;  %v2232_v25 = vmul.f32 %v3418_v62, %v2216_v26 }
 0x351   :  { %3419 = vrcp.f32 %v2167_v55 }
 0x352   :  { %v2978_v6 = vpop.f32.mrb[16].mxu1 }
 0x353   :  { %v705_v63 = vpop.xlane.xlu0 %704  ;;  %v2979_v52 = vpop.f32.mrb[17].mxu1 }
 0x354   :  { %v2980_v48 = vadd.f32 %v2979_v52, %v2978_v6 }
 0x356   :  { %v2981_v59 = vpop.f32.mrb[18].mxu1  ;;  %v5011_v32 = vadd.f32 %v2980_v48, %v2900_v3 }
 0x357   :  { %v2982_v61 = vpop.f32.mrb[19].mxu1  ;;  %v1017_v19 = vpop.xlane.xlu0 %1016 }
 0x358   :  { %v2983_v21 = vadd.f32 %v2982_v61, %v2981_v59  ;;  %v2136_v11 = vsel %vm2128_vm9, %v705_v63, %v1017_v19 }
 0x35a   :  { %v5013_v44 = vadd.f32 %v2983_v21, %v2903_v45 }
 0x35b   :  { %v3420_v16 = vpop.eup %3419  ;;  %v1329_v14 = vpop.xlane.xlu0 %1328 }
 0x35c   :  { %v2199_v35 = vmul.f32 %v3420_v16, %v2167_v55  ;;  %v2153_v42 = vsel %vm2145_vm10, %v2136_v11, %v1329_v14 }
 0x35e   :  { %v2215_v17 = vsub.f32 2.0, %v2199_v35 }
 0x360   :  { %v2231_v37 = vmul.f32 %v3420_v16, %v2215_v17 }
 0x362   :  { %3115 = vmatprep.mubr.msk.f32.mxu0 %vm2243_vm11, %v2231_v37 }
 0x363   :  { %v703_v12 = vpop.xlane.xlu0 %702  ;;  %3116 = vmatmul.mubr.msk.f32.gmra.mrb[52].mxu0 %vm2243_vm11, %v2232_v25 }
 0x367   :  { %v1015_v27 = vpop.xlane.xlu0 %1014 }
 0x368   :  { %v2135_v54 = vsel %vm2128_vm9, %v703_v12, %v1015_v27 }
 0x36b   :  { %v1327_v24 = vpop.xlane.xlu0 %1326 }
 0x36c   :  { %v2152_v41 = vsel %vm2145_vm10, %v2135_v54, %v1327_v24 }
 0x36e   :  { %v2904_v28 = vpop.f32.mrb[20].mxu0 }
 0x36f   :  { %v1639_v60 = vpop.xlane.xlu0 %1638  ;;  %v2905_v30 = vpop.f32.mrb[21].mxu0 }
 0x370   :  { %v2169_v31 = vsel %vm2162_vm13, %v2152_v41, %v1639_v60  ;;  %v2906_v57 = vadd.f32 %v2905_v30, %v2904_v28 }
 0x371   :  { %3421 = vrcp.f32 %v2169_v31 }
 0x372   :  { %v2907_v56 = vpop.f32.mrb[22].mxu0 }
 0x373   :  { %v1019_v0 = vpop.xlane.xlu1 %1018  ;;  %v1641_v7 = vpop.xlane.xlu0 %1640 }
 0x374   :  { %v2170_v2 = vsel %vm2162_vm13, %v2153_v42, %v1641_v7  ;;  %v2908_v23 = vpop.f32.mrb[23].mxu0  ;;  %v2137_v3 = vsel %vm2128_vm9, %v707_v43, %v1019_v0 }
 0x375   :  { %3423 = vrcp.f32 %v2170_v2  ;;  %v2909_v46 = vadd.f32 %v2908_v23, %v2907_v56 }
 0x376   :  { %v2984_v15 = vpop.f32.mrb[20].mxu1  ;;  %3425 = vrcp.f32 %v2172_v51 }
 0x377   :  { %v1331_v36 = vpop.xlane.xlu1 %1330  ;;  %v2985_v53 = vpop.f32.mrb[21].mxu1 }
 0x378   :  { %v2986_v49 = vadd.f32 %v2985_v53, %v2984_v15  ;;  %v2154_v20 = vsel %vm2145_vm10, %v2137_v3, %v1331_v36 }
 0x37a   :  { %v2987_v22 = vpop.f32.mrb[22].mxu1  ;;  %v5027_v34 = vadd.f32 %v2986_v49, %v2906_v57 }
 0x37b   :  { %v3422_v9 = vpop.eup %3421  ;;  %v1643_v5 = vpop.xlane.xlu1 %1642 }
 0x37c   :  { %v2988_v50 = vpop.f32.mrb[23].mxu1  ;;  %v2201_v29 = vmul.f32 %v3422_v9, %v2169_v31  ;;  %v2171_v45 = vsel %vm2162_vm13, %v2154_v20, %v1643_v5 }
 0x37d   :  { %v2989_v10 = vadd.f32 %v2988_v50, %v2987_v22  ;;  %3427 = vrcp.f32 %v2171_v45 }
 0x37e   :  { %v2217_v58 = vsub.f32 2.0, %v2201_v29 }
 0x37f   :  { %v5031_v13 = vadd.f32 %v2989_v10, %v2909_v46  ;;  %v3424_v38 = vpop.eup %3423  ;;  %v713_v18 = vpop.xlane.xlu1 %712 }
 0x380   :  { %v2233_v55 = vmul.f32 %v3422_v9, %v2217_v58  ;;  %v2202_v6 = vmul.f32 %v3424_v38, %v2170_v2  ;;  %v3426_v63 = vpop.eup %3425 }
 0x381   :  { %v2204_v4 = vmul.f32 %v3426_v63, %v2172_v51 }
 0x382   :  { %v2218_v52 = vsub.f32 2.0, %v2202_v6  ;;  %3118 = vmatprep.mubr.msk.f32.mxu0 %vm2243_vm11, %v2233_v55 }
 0x383   :  { %v1025_v48 = vpop.xlane.xlu1 %1024  ;;  %v2220_v1 = vsub.f32 2.0, %v2204_v4 }
 0x384   :  { %v2234_v62 = vmul.f32 %v3424_v38, %v2218_v52  ;;  %v2140_v39 = vsel %vm2128_vm9, %v713_v18, %v1025_v48 }
 0x385   :  { %v2236_v35 = vmul.f32 %v3426_v63, %v2220_v1 }
 0x386   :  { %3119 = vmatmul.mubr.msk.f32.gmra.mrb[54].mxu0 %vm2243_vm11, %v2234_v62 }
 0x387   :  { %v3428_v59 = vpop.eup %3427  ;;  %v1337_v61 = vpop.xlane.xlu1 %1336 }
 0x388   :  { %v2203_v21 = vmul.f32 %v3428_v59, %v2171_v45  ;;  %v2157_v47 = vsel %vm2145_vm10, %v2140_v39, %v1337_v61 }
 0x38a   :  { %v2219_v19 = vsub.f32 2.0, %v2203_v21 }
 0x38b   :  { %v1649_v16 = vpop.xlane.xlu1 %1648 }
 0x38c   :  { %v2235_v8 = vmul.f32 %v3428_v59, %v2219_v19  ;;  %v2174_v43 = vsel %vm2162_vm13, %v2157_v47, %v1649_v16 }
 0x38d   :  { %3429 = vrcp.f32 %v2174_v43 }
 0x38e   :  { %v2910_v26 = vpop.f32.mrb[24].mxu0  ;;  %3121 = vmatprep.mubr.msk.f32.mxu1 %vm2243_vm11, %v2235_v8 }
 0x38f   :  { %v711_v17 = vpop.xlane.xlu1 %710  ;;  %v2911_v14 = vpop.f32.mrb[25].mxu0  ;;  %3122 = vmatmul.mubr.msk.f32.vlgmr.msra.gmra.mrb[48].mxu1 %vm2243_vm11, %v2236_v35 }
 0x390   :  { %v2912_v37 = vadd.f32 %v2911_v14, %v2910_v26 }
 0x392   :  { %v2913_v25 = vpop.f32.mrb[26].mxu0 }
 0x393   :  { %v1023_v12 = vpop.xlane.xlu1 %1022  ;;  %v2914_v27 = vpop.f32.mrb[27].mxu0 }
 0x394   :  { %v2915_v24 = vadd.f32 %v2914_v27, %v2913_v25  ;;  %v2139_v30 = vsel %vm2128_vm9, %v711_v17, %v1023_v12 }
 0x396   :  { %v2990_v54 = vpop.f32.mrb[24].mxu1 }
 0x397   :  { %v1335_v28 = vpop.xlane.xlu1 %1334  ;;  %v2991_v41 = vpop.f32.mrb[25].mxu1 }
 0x398   :  { %v2992_v60 = vadd.f32 %v2991_v41, %v2990_v54  ;;  %v2156_v11 = vsel %vm2145_vm10, %v2139_v30, %v1335_v28  ;;  %v3430_v2 = vpop.eup %3429 }
 0x399   :  { %v2206_v51 = vmul.f32 %v3430_v2, %v2174_v43 }
 0x39a   :  { %v2993_v31 = vpop.f32.mrb[26].mxu1  ;;  %v5041_v57 = vadd.f32 %v2992_v60, %v2912_v37 }
 0x39b   :  { %v1647_v56 = vpop.xlane.xlu1 %1646  ;;  %v2994_v33 = vpop.f32.mrb[27].mxu1  ;;  %v2222_v53 = vsub.f32 2.0, %v2206_v51 }
 0x39c   :  { %v2173_v42 = vsel %vm2162_vm13, %v2156_v11, %v1647_v56  ;;  %v2995_v0 = vadd.f32 %v2994_v33, %v2993_v31 }
 0x39d   :  { %3431 = vrcp.f32 %v2173_v42  ;;  %v2238_v9 = vmul.f32 %v3430_v2, %v2222_v53 }
 0x39e   :  { %v5045_v7 = vadd.f32 %v2995_v0, %v2915_v24 }
 0x39f   :  { %v717_v40 = vpop.xlane.xlu1 %716 }
 0x3a3   :  { %v1029_v23 = vpop.xlane.xlu1 %1028 }
 0x3a4   :  { %v2142_v10 = vsel %vm2128_vm9, %v717_v40, %v1029_v23 }
 0x3a7   :  { %v3432_v46 = vpop.eup %3431  ;;  %v1341_v15 = vpop.xlane.xlu1 %1340 }
 0x3a8   :  { %v2205_v36 = vmul.f32 %v3432_v46, %v2173_v42  ;;  %v2159_v18 = vsel %vm2145_vm10, %v2142_v10, %v1341_v15 }
 0x3aa   :  { %v2221_v49 = vsub.f32 2.0, %v2205_v36 }
 0x3ab   :  { %v1653_v3 = vpop.xlane.xlu1 %1652 }
 0x3ac   :  { %v2237_v22 = vmul.f32 %v3432_v46, %v2221_v49  ;;  %v2176_v6 = vsel %vm2162_vm13, %v2159_v18, %v1653_v3 }
 0x3ad   :  { %3433 = vrcp.f32 %v2176_v6 }
 0x3ae   :  { %v2916_v20 = vpop.f32.mrb[28].mxu0  ;;  %3124 = vmatprep.mubr.msk.f32.mxu1 %vm2243_vm11, %v2237_v22 }
 0x3af   :  { %v715_v5 = vpop.xlane.xlu1 %714  ;;  %v2917_v50 = vpop.f32.mrb[29].mxu0  ;;  %3125 = vmatmul.mubr.msk.f32.gmra.mrb[50].mxu1 %vm2243_vm11, %v2238_v9 }
 0x3b0   :  { %v2918_v29 = vadd.f32 %v2917_v50, %v2916_v20 }
 0x3b2   :  { %v2919_v45 = vpop.f32.mrb[30].mxu0 }
 0x3b3   :  { %v1027_v58 = vpop.xlane.xlu1 %1026  ;;  %v2920_v38 = vpop.f32.mrb[31].mxu0 }
 0x3b4   :  { %v2921_v55 = vadd.f32 %v2920_v38, %v2919_v45  ;;  %v2141_v4 = vsel %vm2128_vm9, %v715_v5, %v1027_v58 }
 0x3b6   :  { %v2996_v63 = vpop.f32.mrb[28].mxu1 }
 0x3b7   :  { %v1339_v52 = vpop.xlane.xlu1 %1338  ;;  %v2997_v48 = vpop.f32.mrb[29].mxu1 }
 0x3b8   :  { %v2998_v62 = vadd.f32 %v2997_v48, %v2996_v63  ;;  %v2158_v21 = vsel %vm2145_vm10, %v2141_v4, %v1339_v52  ;;  %v3434_v43 = vpop.eup %3433 }
 0x3b9   :  { %v2208_v11 = vmul.f32 %v3434_v43, %v2176_v6 }
 0x3ba   :  { %v2999_v59 = vpop.f32.mrb[30].mxu1  ;;  %v5053_v61 = vadd.f32 %v2998_v62, %v2918_v29 }
 0x3bb   :  { %v2922_v1 = vpop.f32.mrb[32].mxu0  ;;  %v1651_v19 = vpop.xlane.xlu1 %1650  ;;  %v2224_v36 = vsub.f32 2.0, %v2208_v11 }
 0x3bc   :  { %v2175_v16 = vsel %vm2162_vm13, %v2158_v21, %v1651_v19  ;;  %v2923_v8 = vpop.f32.mrb[33].mxu0  ;;  %v3000_v35 = vpop.f32.mrb[31].mxu1 }
 0x3bd   :  { %3435 = vrcp.f32 %v2175_v16  ;;  %v2924_v26 = vadd.f32 %v2923_v8, %v2922_v1  ;;  %v3001_v17 = vadd.f32 %v3000_v35, %v2999_v59  ;;  %v2240_v10 = vmul.f32 %v3434_v43, %v2224_v36 }
 0x3be   :  { %v3002_v14 = vpop.f32.mrb[32].mxu1 }
 0x3bf   :  { %v2925_v37 = vpop.f32.mrb[34].mxu0  ;;  %v5057_v25 = vpop.xlane.xlu1 %720  ;;  %v5059_v39 = vadd.f32 %v3001_v17, %v2921_v55 }
 0x3c0   :  { %v2926_v12 = vpop.f32.mrb[35].mxu0  ;;  %v3003_v27 = vpop.f32.mrb[33].mxu1 }
 0x3c1   :  { %v2927_v47 = vadd.f32 %v2926_v12, %v2925_v37  ;;  %v3004_v24 = vadd.f32 %v3003_v27, %v3002_v14 }
 0x3c2   :  { %v3005_v54 = vpop.f32.mrb[34].mxu1 }
 0x3c3   :  { %v2928_v28 = vpop.f32.mrb[36].mxu0  ;;  %v1033_v41 = vpop.xlane.xlu1 %1032  ;;  %v5061_v60 = vadd.f32 %v3004_v24, %v2924_v26 }
 0x3c4   :  { %v2929_v30 = vpop.f32.mrb[37].mxu0  ;;  %v3006_v31 = vpop.f32.mrb[35].mxu1  ;;  %v2144_v43 = vsel %vm2128_vm9, %v5057_v25, %v1033_v41 }
 0x3c5   :  { %v2930_v56 = vadd.f32 %v2929_v30, %v2928_v28  ;;  %v3007_v33 = vadd.f32 %v3006_v31, %v3005_v54 }
 0x3c6   :  { %v3008_v42 = vpop.f32.mrb[36].mxu1 }
 0x3c7   :  { %v3436_v0 = vpop.eup %3435  ;;  %v2931_v40 = vpop.f32.mrb[38].mxu0  ;;  %v5063_v23 = vadd.f32 %v3007_v33, %v2927_v47 }
 0x3c8   :  { %v1345_v2 = vpop.xlane.xlu1 %1344  ;;  %v2207_v51 = vmul.f32 %v3436_v0, %v2175_v16  ;;  %v2932_v46 = vpop.f32.mrb[39].mxu0 }
 0x3c9   :  { %v3009_v15 = vpop.f32.mrb[37].mxu1  ;;  %v2933_v53 = vadd.f32 %v2932_v46, %v2931_v40  ;;  %v2161_v28 = vsel %vm2145_vm10, %v2144_v43, %v1345_v2  ;;  %v3479_v43 = vld [vmem:[%s5419_s0 + $0x20] sm:$0xff] }
 0x3ca   :  { %v3010_v49 = vadd.f32 %v3009_v15, %v3008_v42  ;;  %v2223_v3 = vsub.f32 2.0, %v2207_v51  ;;  %v3011_v22 = vpop.f32.mrb[38].mxu1 }
 0x3cb   :  { %v2934_v9 = vpop.f32.mrb[40].mxu0  ;;  %v3012_v45 = vpop.f32.mrb[39].mxu1 }
 0x3cc   :  { %v719_v20 = vpop.xlane.xlu1 %718  ;;  %v5065_v5 = vadd.f32 %v3010_v49, %v2930_v56  ;;  %v2239_v50 = vmul.f32 %v3436_v0, %v2223_v3  ;;  %v2935_v29 = vpop.f32.mrb[41].mxu0  ;;  %v3013_v38 = vadd.f32 %v3012_v45, %v3011_v22  ;;  %v5091_v22 = vld [vmem:[%s5421_s2 + $0x44] ss:$0 sm:$0xff] }
 0x3cd   :  { %v2936_v58 = vadd.f32 %v2935_v29, %v2934_v9 }
 0x3ce   :  { %v3014_v18 = vpop.f32.mrb[40].mxu1  ;;  %3127 = vmatprep.mubr.msk.f32.mxu1 %vm2243_vm11, %v2239_v50  ;;  %v5069_v63 = vadd.f32 %v3013_v38, %v2933_v53 }
 0x3cf   :  { %v2937_v55 = vpop.f32.mrb[42].mxu0  ;;  %3128 = vmatmul.mubr.msk.f32.gmra.mrb[52].mxu1 %vm2243_vm11, %v2240_v10  ;;  %v3015_v48 = vpop.f32.mrb[41].mxu1 }
 0x3d0   :  { %v1031_v6 = vpop.xlane.xlu1 %1030  ;;  %v2938_v52 = vpop.f32.mrb[43].mxu0  ;;  %v3016_v4 = vadd.f32 %v3015_v48, %v3014_v18  ;;  %v3475_v18 = vld [vmem:[%s5419_s0] sm:$0xff] }
 0x3d1   :  { %v2939_v62 = vadd.f32 %v2938_v52, %v2937_v55  ;;  %v2143_v26 = vsel %vm2128_vm9, %v719_v20, %v1031_v6 }
 0x3d2   :  { %v3017_v59 = vpop.f32.mrb[42].mxu1  ;;  %v5071_v19 = vadd.f32 %v3016_v4, %v2936_v58  ;;  %v3474_v58 = vld [vmem:[%s5419_s0 + $0x8] sm:$0xff] }
 0x3d3   :  { %v3018_v1 = vpop.f32.mrb[43].mxu1 }
 0x3d4   :  { %v1343_v21 = vpop.xlane.xlu1 %1342  ;;  %v3019_v16 = vadd.f32 %v3018_v1, %v3017_v59  ;;  %v2940_v8 = vpop.f32.mrb[44].mxu0 }
 0x3d5   :  { %v2941_v35 = vpop.f32.mrb[45].mxu0  ;;  %v2160_v37 = vsel %vm2145_vm10, %v2143_v26, %v1343_v21  ;;  %v3476_v21 = vld [vmem:[%s5419_s0 + $0x18] sm:$0xff] }
 0x3d6   :  { %v2942_v17 = vadd.f32 %v2941_v35, %v2940_v8  ;;  %v5074_v14 = vadd.f32 %v3019_v16, %v2939_v62  ;;  %v3477_v16 = vld [vmem:[%s5419_s0 + $0x10] sm:$0xff] }
 0x3d8   :  { %v1655_v12 = vpop.xlane.xlu1 %1654  ;;  %v2943_v47 = vpop.f32.mrb[46].mxu0 }
 0x3d9   :  { %v2177_v27 = vsel %vm2162_vm13, %v2160_v37, %v1655_v12  ;;  %v2944_v24 = vpop.f32.mrb[47].mxu0 }
 0x3da   :  { %3437 = vrcp.f32 %v2177_v27  ;;  %v2945_v54 = vadd.f32 %v2944_v24, %v2943_v47  ;;  %v3478_v47 = vld [vmem:[%s5419_s0 + $0x28] sm:$0xff] }
 0x3dc   :  { %v1657_v30 = vpop.xlane.xlu1 %1656  ;;  %v3020_v11 = vpop.f32.mrb[44].mxu1 }
 0x3dd   :  { %v2178_v31 = vsel %vm2162_vm13, %v2161_v28, %v1657_v30  ;;  %v3021_v56 = vpop.f32.mrb[45].mxu1 }
 0x3de   :  { %3439 = vrcp.f32 %v2178_v31  ;;  %v3022_v33 = vadd.f32 %v3021_v56, %v3020_v11 }
 0x3e0   :  { %v3023_v42 = vpop.f32.mrb[46].mxu1  ;;  %v5082_v0 = vadd.f32 %v3022_v33, %v2942_v17 }
 0x3e1   :  { %v3024_v40 = vpop.f32.mrb[47].mxu1 }
 0x3e2   :  { %v3025_v51 = vadd.f32 %v3024_v40, %v3023_v42  ;;  %v3480_v42 = vld [vmem:[%s5419_s0 + $0x38] sm:$0xff] }
 0x3e4   :  { %v3438_v46 = vpop.eup %3437  ;;  %v5084_v36 = vadd.f32 %v3025_v51, %v2945_v54  ;;  %v3481_v51 = vld [vmem:[%s5419_s0 + $0x30] sm:$0xff] }
 0x3e5   :  { %v2209_v15 = vmul.f32 %v3438_v46, %v2177_v27 }
 0x3e7   :  { %v2225_v25 = vsub.f32 2.0, %v2209_v15 }
 0x3e8   :  { %v3440_v41 = vpop.eup %3439 }
 0x3e9   :  { %v2241_v53 = vmul.f32 %v3438_v46, %v2225_v25  ;;  %v2210_v2 = vmul.f32 %v3440_v41, %v2178_v31 }
 0x3eb   :  { %v2226_v49 = vsub.f32 2.0, %v2210_v2  ;;  %3130 = vmatprep.mubr.msk.f32.mxu1 %vm2243_vm11, %v2241_v53 }
 0x3ed   :  { %v2242_v3 = vmul.f32 %v3440_v41, %v2226_v49 }
 0x3ef   :  { %3131 = vmatmul.mubr.msk.f32.gmra.mrb[54].mxu1 %vm2243_vm11, %v2242_v3  ;;  %v3482_v3 = vld [vmem:[%s5419_s0 + $0x48] sm:$0xff] }
 0x3f5   :  { %v3111_v9 = vpop.f32.mrb[48].mxu0 }
 0x3f6   :  { %v2442_v20 = vmul.f32 %v3111_v9, %v5013_v44  ;;  %v2362_v50 = vpop.f32.mrb[49].mxu0 }
 0x3f7   :  { %v2441_v29 = vmul.f32 %v2362_v50, %v5011_v32 }
 0x3f8   :  { %v2462_v45 = vadd.f32 %v5091_v22, %v2442_v20  ;;  %v3483_v20 = vld [vmem:[%s5419_s0 + $0x40] sm:$0xff] }
 0x3f9   :  { %v2461_v10 = vadd.f32 %v5091_v22, %v2441_v29 }
 0x3fa   :  { %v5100_v38 = vadd.f32 %v3474_v58, %v2462_v45 }
 0x3fb   :  { %v5105_v55 = vadd.f32 %v3475_v18, %v2461_v10 }
 0x3fc   :  { %v2496_v44 = vsel %vm75_vm0, %v5100_v38, 0.0 }
 0x3fd   :  { %2497 = vadd.xlane.f32.xlu1 %v2496_v44  ;;  %v2493_v32 = vsel %vm75_vm0, %v5105_v55, 0.0 }
 0x3fe   :  { %2494 = vadd.xlane.f32.xlu0 %v2493_v32  ;;  %v3484_v32 = vld [vmem:[%s5419_s0 + $0x58] sm:$0xff] }
 0x416   :  { %v3114_v6 = vpop.f32.mrb[50].mxu0 }
 0x417   :  { %v2444_v52 = vmul.f32 %v3114_v6, %v5031_v13  ;;  %v2372_v48 = vpop.f32.mrb[51].mxu0 }
 0x418   :  { %v2443_v62 = vmul.f32 %v2372_v48, %v5027_v34 }
 0x419   :  { %v2464_v4 = vadd.f32 %v5091_v22, %v2444_v52  ;;  %v3485_v52 = vld [vmem:[%s5419_s0 + $0x50] sm:$0xff] }
 0x41a   :  { %v2463_v59 = vadd.f32 %v5091_v22, %v2443_v62 }
 0x41b   :  { %v5118_v1 = vadd.f32 %v3476_v21, %v2464_v4 }
 0x41c   :  { %v5123_v8 = vadd.f32 %v3477_v16, %v2463_v59 }
 0x41d   :  { %v2502_v13 = vsel %vm75_vm0, %v5118_v1, 0.0 }
 0x41e   :  { %2503 = vadd.xlane.f32.xlu1 %v2502_v13  ;;  %v2499_v34 = vsel %vm75_vm0, %v5123_v8, 0.0 }
 0x41f   :  { %2500 = vadd.xlane.f32.xlu0 %v2499_v34  ;;  %v3486_v34 = vld [vmem:[%s5419_s0 + $0x68] sm:$0xff] }
 0x436   :  { %v3117_v35 = vpop.f32.mrb[52].mxu0 }
 0x437   :  { %v2446_v26 = vmul.f32 %v3117_v35, %v5045_v7  ;;  %v2382_v17 = vpop.f32.mrb[53].mxu0 }
 0x438   :  { %v2445_v37 = vmul.f32 %v2382_v17, %v5041_v57 }
 0x439   :  { %v2466_v12 = vadd.f32 %v5091_v22, %v2446_v26  ;;  %v3487_v26 = vld [vmem:[%s5419_s0 + $0x60] sm:$0xff] }
 0x43a   :  { %v2465_v27 = vadd.f32 %v5091_v22, %v2445_v37 }
 0x43b   :  { %v5136_v24 = vadd.f32 %v3478_v47, %v2466_v12 }
 0x43c   :  { %v5141_v54 = vadd.f32 %v3479_v43, %v2465_v27 }
 0x43d   :  { %v2508_v7 = vsel %vm75_vm0, %v5136_v24, 0.0 }
 0x43e   :  { %2509 = vadd.xlane.f32.xlu1 %v2508_v7  ;;  %v2505_v57 = vsel %vm75_vm0, %v5141_v54, 0.0 }
 0x43f   :  { %2506 = vadd.xlane.f32.xlu0 %v2505_v57 }
 0x459   :  { %v3120_v28 = vpop.f32.mrb[54].mxu0 }
 0x45a   :  { %v2448_v30 = vmul.f32 %v3120_v28, %v5059_v39  ;;  %v2392_v31 = vpop.f32.mrb[55].mxu0 }
 0x45b   :  { %v2447_v11 = vmul.f32 %v2392_v31, %v5053_v61 }
 0x45c   :  { %v2468_v56 = vadd.f32 %v5091_v22, %v2448_v30 }
 0x45d   :  { %v2467_v33 = vadd.f32 %v5091_v22, %v2447_v11 }
 0x45e   :  { %v5154_v40 = vadd.f32 %v3480_v42, %v2468_v56 }
 0x45f   :  { %v5159_v46 = vadd.f32 %v3481_v51, %v2467_v33 }
 0x460   :  { %v2514_v39 = vsel %vm75_vm0, %v5154_v40, 0.0 }
 0x461   :  { %2515 = vadd.xlane.f32.xlu1 %v2514_v39  ;;  %v2511_v61 = vsel %vm75_vm0, %v5159_v46, 0.0 }
 0x462   :  { %v3123_v15 = vpop.f32.mrb[48].mxu1  ;;  %2512 = vadd.xlane.f32.xlu0 %v2511_v61  ;;  %v3488_v61 = vld [vmem:[%s5419_s0 + $0x78] sm:$0xff] }
 0x463   :  { %v2450_v25 = vmul.f32 %v3123_v15, %v5063_v23  ;;  %v2402_v41 = vpop.f32.mrb[49].mxu1 }
 0x464   :  { %v2449_v53 = vmul.f32 %v2402_v41, %v5061_v60 }
 0x465   :  { %v2470_v2 = vadd.f32 %v5091_v22, %v2450_v25 }
 0x466   :  { %v2469_v49 = vadd.f32 %v5091_v22, %v2449_v53 }
 0x467   :  { %v5172_v9 = vadd.f32 %v3482_v3, %v2470_v2 }
 0x468   :  { %v5177_v50 = vadd.f32 %v3483_v20, %v2469_v49 }
 0x469   :  { %v2520_v23 = vsel %vm75_vm0, %v5172_v9, 0.0 }
 0x46a   :  { %2521 = vadd.xlane.f32.xlu1 %v2520_v23  ;;  %v2517_v60 = vsel %vm75_vm0, %v5177_v50, 0.0 }
 0x46b   :  { %2518 = vadd.xlane.f32.xlu0 %v2517_v60 }
 0x482   :  { %v3126_v29 = vpop.f32.mrb[50].mxu1 }
 0x483   :  { %v2452_v45 = vmul.f32 %v3126_v29, %v5069_v63  ;;  %v2412_v10 = vpop.f32.mrb[51].mxu1 }
 0x484   :  { %v2451_v58 = vmul.f32 %v2412_v10, %v5065_v5 }
 0x485   :  { %v2472_v18 = vadd.f32 %v5091_v22, %v2452_v45 }
 0x486   :  { %v2471_v44 = vadd.f32 %v5091_v22, %v2451_v58 }
 0x487   :  { %v5190_v6 = vadd.f32 %v3484_v32, %v2472_v18 }
 0x488   :  { %v5195_v48 = vadd.f32 %v3485_v52, %v2471_v44 }
 0x489   :  { %v2526_v63 = vsel %vm75_vm0, %v5190_v6, 0.0 }
 0x48a   :  { %2527 = vadd.xlane.f32.xlu1 %v2526_v63  ;;  %v2523_v5 = vsel %vm75_vm0, %v5195_v48, 0.0  ;;  %v2498_v37 = vpop.xlane.xlu1 %2497 }
 0x48b   :  { %2524 = vadd.xlane.f32.xlu0 %v2523_v5  ;;  %v2495_v12 = vpop.xlane.xlu0 %2494  ;;  %v2543_v27 = vmul.f32 0.03125, %v2498_v37 }
 0x48c   :  { %v2542_v47 = vmul.f32 0.03125, %v2495_v12 }
 0x48d   :  { %v5222_v11 = vsub.f32 %v5100_v38, %v2543_v27 }
 0x48e   :  { %v5226_v42 = vsub.f32 %v5105_v55, %v2542_v47 }
 0x490   :  { %v2574_v53 = vmul.f32 %v5226_v42, %v5226_v42 }
 0x4a2   :  { %v3129_v62 = vpop.f32.mrb[52].mxu1 }
 0x4a3   :  { %v2454_v4 = vmul.f32 %v3129_v62, %v5074_v14  ;;  %v2422_v59 = vpop.f32.mrb[53].mxu1 }
 0x4a4   :  { %v2453_v21 = vmul.f32 %v2422_v59, %v5071_v19 }
 0x4a5   :  { %v2474_v16 = vadd.f32 %v5091_v22, %v2454_v4 }
 0x4a6   :  { %v2473_v13 = vadd.f32 %v5091_v22, %v2453_v21 }
 0x4a7   :  { %v5208_v35 = vadd.f32 %v3486_v34, %v2474_v16 }
 0x4a8   :  { %v5213_v17 = vadd.f32 %v3487_v26, %v2473_v13 }
 0x4a9   :  { %v2532_v14 = vsel %vm75_vm0, %v5208_v35, 0.0 }
 0x4aa   :  { %2533 = vadd.xlane.f32.xlu1 %v2532_v14  ;;  %v2529_v19 = vsel %vm75_vm0, %v5213_v17, 0.0 }
 0x4ab   :  { %2530 = vadd.xlane.f32.xlu0 %v2529_v19  ;;  %v2504_v43 = vpop.xlane.xlu1 %2503 }
 0x4ac   :  { %v2501_v57 = vpop.xlane.xlu0 %2500  ;;  %v2545_v56 = vmul.f32 0.03125, %v2504_v43 }
 0x4ad   :  { %v2544_v51 = vmul.f32 0.03125, %v2501_v57 }
 0x4ae   :  { %v5240_v15 = vsub.f32 %v5118_v1, %v2545_v56 }
 0x4af   :  { %v5247_v25 = vsub.f32 %v5123_v8, %v2544_v51  ;;  %v2590_v8 = vsel %vm75_vm0, %v2574_v53, 0.0 }
 0x4b0   :  { %v2577_v20 = vmul.f32 %v5240_v15, %v5240_v15 }
 0x4b1   :  { %v2576_v60 = vmul.f32 %v5247_v25, %v5247_v25 }
 0x4b2   :  { %v2599_v10 = vsel %vm75_vm0, %v2577_v20, 0.0 }
 0x4b3   :  { %v2596_v18 = vsel %vm75_vm0, %v2576_v60, 0.0 }
 0x4c2   :  { %v3132_v7 = vpop.f32.mrb[54].mxu1 }
 0x4c3   :  { %v2456_v28 = vmul.f32 %v3132_v7, %v5084_v36  ;;  %v2432_v30 = vpop.f32.mrb[55].mxu1 }
 0x4c4   :  { %v2455_v31 = vmul.f32 %v2432_v30, %v5082_v0  ;;  %v3489_v0 = vld [vmem:[%s5419_s0 + $0x70] sm:$0xff] }
 0x4c5   :  { %v2476_v33 = vadd.f32 %v5091_v22, %v2456_v28 }
 0x4c6   :  { %v2475_v39 = vadd.f32 %v5091_v22, %v2455_v31  ;;  %v2575_v22 = vmul.f32 %v5222_v11, %v5222_v11 }
 0x4c7   :  { %v5232_v36 = vadd.f32 %v3488_v61, %v2476_v33 }
 0x4c8   :  { %v5237_v38 = vadd.f32 %v3489_v0, %v2475_v39  ;;  %v2593_v3 = vsel %vm75_vm0, %v2575_v22, 0.0 }
 0x4c9   :  { %v2538_v55 = vsel %vm75_vm0, %v5232_v36, 0.0 }
 0x4ca   :  { %2539 = vadd.xlane.f32.xlu1 %v2538_v55  ;;  %v2535_v41 = vsel %vm75_vm0, %v5237_v38, 0.0 }
 0x4cb   :  { %2536 = vadd.xlane.f32.xlu0 %v2535_v41  ;;  %v2510_v2 = vpop.xlane.xlu1 %2509 }
 0x4cc   :  { %v2547_v1 = vmul.f32 0.03125, %v2510_v2  ;;  %v2507_v49 = vpop.xlane.xlu0 %2506 }
 0x4cd   :  { %v2546_v23 = vmul.f32 0.03125, %v2507_v49 }
 0x4ce   :  { %2594 = vadd.xlane.f32.xlu1 %v2593_v3  ;;  %v5260_v29 = vsub.f32 %v5136_v24, %v2547_v1 }
 0x4cf   :  { %2591 = vadd.xlane.f32.xlu0 %v2590_v8  ;;  %v5263_v45 = vsub.f32 %v5141_v54, %v2546_v23 }
 0x4d0   :  { %v2579_v58 = vmul.f32 %v5260_v29, %v5260_v29 }
 0x4d1   :  { %v2578_v44 = vmul.f32 %v5263_v45, %v5263_v45 }
 0x4d2   :  { %2600 = vadd.xlane.f32.xlu1 %v2599_v10  ;;  %v2605_v32 = vsel %vm75_vm0, %v2579_v58, 0.0 }
 0x4d3   :  { %2597 = vadd.xlane.f32.xlu0 %v2596_v18  ;;  %v2602_v24 = vsel %vm75_vm0, %v2578_v44, 0.0 }
 0x4d6   :  { %2606 = vadd.xlane.f32.xlu1 %v2605_v32 }
 0x4d7   :  { %2603 = vadd.xlane.f32.xlu0 %v2602_v24 }
 0x4ee   :  { %v2516_v54 = vpop.xlane.xlu1 %2515 }
 0x4ef   :  { %v2549_v52 = vmul.f32 0.03125, %v2516_v54  ;;  %v2513_v63 = vpop.xlane.xlu0 %2512 }
 0x4f0   :  { %v2548_v5 = vmul.f32 0.03125, %v2513_v63 }
 0x4f1   :  { %v5274_v62 = vsub.f32 %v5154_v40, %v2549_v52 }
 0x4f2   :  { %v5277_v4 = vsub.f32 %v5159_v46, %v2548_v5 }
 0x4f3   :  { %v2581_v59 = vmul.f32 %v5274_v62, %v5274_v62 }
 0x4f4   :  { %v2580_v21 = vmul.f32 %v5277_v4, %v5277_v4 }
 0x4f5   :  { %v2611_v16 = vsel %vm75_vm0, %v2581_v59, 0.0 }
 0x4f6   :  { %2612 = vadd.xlane.f32.xlu1 %v2611_v16  ;;  %v2608_v13 = vsel %vm75_vm0, %v2580_v21, 0.0 }
 0x4f7   :  { %v2522_v34 = vpop.xlane.xlu1 %2521  ;;  %2609 = vadd.xlane.f32.xlu0 %v2608_v13 }
 0x4f8   :  { %v2551_v26 = vmul.f32 0.03125, %v2522_v34  ;;  %v2519_v14 = vpop.xlane.xlu0 %2518 }
 0x4f9   :  { %v2550_v40 = vmul.f32 0.03125, %v2519_v14 }
 0x4fa   :  { %v5286_v19 = vsub.f32 %v5172_v9, %v2551_v26 }
 0x4fb   :  { %v5289_v46 = vsub.f32 %v5177_v50, %v2550_v40  ;;  %v5336_v40 = vld [vmem:[%s5421_s2 + $0x45] ss:$0 sm:$0xff] }
 0x4fc   :  { %v2583_v37 = vmul.f32 %v5286_v19, %v5286_v19 }
 0x4fd   :  { %v2582_v12 = vmul.f32 %v5289_v46, %v5289_v46 }
 0x4fe   :  { %v2617_v27 = vsel %vm75_vm0, %v2583_v37, 0.0 }
 0x4ff   :  { %2618 = vadd.xlane.f32.xlu1 %v2617_v27  ;;  %v2614_v47 = vsel %vm75_vm0, %v2582_v12, 0.0  ;;  %v5342_v27 = vld [vmem:[%s5421_s2 + $0x46] ss:$0 sm:$0xff]  ;;  %s3518_s2 = smov [#allocation4]  }
 0x500   :  { %2615 = vadd.xlane.f32.xlu0 %v2614_v47  ;;  %s2763_s23 = sshll.u32 %s3518_s2, 4  ;;  %s2764_s23 = int_to_ptr.vmem [resolvable:$true] %s2763_s23 }
 0x501   :  { %s3490_s24 = scalar_lea.vmem %s2764_s23, 2048  ;;  %p3495_p1 = scmp.lt.s32.totalorder %s2764_s23, %s2764_s23 }
 0x502   :  { %p3491_p0 = scmp.ne.s32.totalorder %s2764_s23, %s3490_s24  ;;  %p3496_p2 = scmp.lt.s32.totalorder %s3490_s24, %s3490_s24 }
 0x504   :  { %p3497_p3 = por %p3496_p2, %p3495_p1 }
 0x506   :  { %p3498_p4 = pnand %p3497_p3, %p3491_p0 }
 0x517   :  { %v2528_v43 = vpop.xlane.xlu1 %2527 }
 0x518   :  { %v2553_v7 = vmul.f32 0.03125, %v2528_v43  ;;  %v2525_v57 = vpop.xlane.xlu0 %2524 }
 0x519   :  { %v2552_v9 = vmul.f32 0.03125, %v2525_v57 }
 0x51a   :  { %v5298_v28 = vsub.f32 %v5190_v6, %v2553_v7 }
 0x51b   :  { %v5301_v50 = vsub.f32 %v5195_v48, %v2552_v9 }
 0x51c   :  { %v2585_v30 = vmul.f32 %v5298_v28, %v5298_v28 }
 0x51d   :  { %v2584_v31 = vmul.f32 %v5301_v50, %v5301_v50 }
 0x51e   :  { %v2623_v56 = vsel %vm75_vm0, %v2585_v30, 0.0 }
 0x51f   :  { %2624 = vadd.xlane.f32.xlu1 %v2623_v56  ;;  %v2620_v33 = vsel %vm75_vm0, %v2584_v31, 0.0 }
 0x520   :  { %2621 = vadd.xlane.f32.xlu0 %v2620_v33 }
 0x537   :  { %v2534_v51 = vpop.xlane.xlu1 %2533 }
 0x538   :  { %v2555_v39 = vmul.f32 0.03125, %v2534_v51  ;;  %v2531_v61 = vpop.xlane.xlu0 %2530 }
 0x539   :  { %v2554_v6 = vmul.f32 0.03125, %v2531_v61 }
 0x53a   :  { %v5310_v0 = vsub.f32 %v5208_v35, %v2555_v39 }
 0x53b   :  { %v5313_v48 = vsub.f32 %v5213_v17, %v2554_v6 }
 0x53c   :  { %v2587_v55 = vmul.f32 %v5310_v0, %v5310_v0 }
 0x53d   :  { %v2586_v22 = vmul.f32 %v5313_v48, %v5313_v48 }
 0x53e   :  { %v2629_v41 = vsel %vm75_vm0, %v2587_v55, 0.0 }
 0x53f   :  { %2630 = vadd.xlane.f32.xlu1 %v2629_v41  ;;  %v2626_v53 = vsel %vm75_vm0, %v2586_v22, 0.0 }
 0x540   :  { %2627 = vadd.xlane.f32.xlu0 %v2626_v53 }
 0x557   :  { %v2540_v2 = vpop.xlane.xlu1 %2539 }
 0x558   :  { %v2557_v1 = vmul.f32 0.03125, %v2540_v2  ;;  %v2537_v49 = vpop.xlane.xlu0 %2536 }
 0x559   :  { %v2556_v35 = vmul.f32 0.03125, %v2537_v49 }
 0x55a   :  { %v5322_v3 = vsub.f32 %v5232_v36, %v2557_v1 }
 0x55b   :  { %v5325_v17 = vsub.f32 %v5237_v38, %v2556_v35  ;;  %v2595_v20 = vpop.xlane.xlu1 %2594 }
 0x55c   :  { %v2639_v23 = vmul.f32 0.03125, %v2595_v20  ;;  %v2592_v8 = vpop.xlane.xlu0 %2591  ;;  %v2589_v60 = vmul.f32 %v5322_v3, %v5322_v3 }
 0x55d   :  { %v2638_v10 = vmul.f32 0.03125, %v2592_v8  ;;  %v2588_v58 = vmul.f32 %v5325_v17, %v5325_v17 }
 0x55e   :  { %v2655_v18 = vadd.f32 1e-05, %v2639_v23  ;;  %v2635_v44 = vsel %vm75_vm0, %v2589_v60, 0.0 }
 0x55f   :  { %v2654_v32 = vadd.f32 1e-05, %v2638_v10  ;;  %2636 = vadd.xlane.f32.xlu1 %v2635_v44  ;;  %v2601_v36 = vpop.xlane.xlu1 %2600  ;;  %v2632_v24 = vsel %vm75_vm0, %v2588_v58, 0.0 }
 0x560   :  { %3441 = vrsqrt.f32 %v2655_v18  ;;  %v2641_v38 = vmul.f32 0.03125, %v2601_v36  ;;  %2633 = vadd.xlane.f32.xlu0 %v2632_v24  ;;  %v2598_v54 = vpop.xlane.xlu0 %2597 }
 0x561   :  { %3443 = vrsqrt.f32 %v2654_v32  ;;  %v2640_v52 = vmul.f32 0.03125, %v2598_v54 }
 0x562   :  { %v2657_v63 = vadd.f32 1e-05, %v2641_v38 }
 0x563   :  { %v2656_v5 = vadd.f32 1e-05, %v2640_v52  ;;  %v2607_v59 = vpop.xlane.xlu1 %2606 }
 0x564   :  { %3445 = vrsqrt.f32 %v2657_v63  ;;  %v2643_v21 = vmul.f32 0.03125, %v2607_v59  ;;  %v2604_v16 = vpop.xlane.xlu0 %2603 }
 0x565   :  { %3447 = vrsqrt.f32 %v2656_v5  ;;  %v2642_v13 = vmul.f32 0.03125, %v2604_v16 }
 0x566   :  { %v2659_v34 = vadd.f32 1e-05, %v2643_v21 }
 0x567   :  { %v2658_v26 = vadd.f32 1e-05, %v2642_v13 }
 0x568   :  { %3449 = vrsqrt.f32 %v2659_v34 }
 0x569   :  { %3451 = vrsqrt.f32 %v2658_v26 }
 0x56a   :  { %v3442_v14 = vpop.eup %3441 }
 0x56b   :  { %v3444_v37 = vpop.eup %3443  ;;  %v2687_v12 = vmul.f32 %v3442_v14, %v5222_v11 }
 0x56c   :  { %v2686_v47 = vmul.f32 %v3444_v37, %v5226_v42 }
 0x56d   :  { %v2707_v43 = vmul.f32 %v5336_v40, %v2687_v12 }
 0x56e   :  { %v3446_v7 = vpop.eup %3445  ;;  %v2706_v57 = vmul.f32 %v5336_v40, %v2686_v47 }
 0x56f   :  { %v3448_v9 = vpop.eup %3447  ;;  %v2727_v30 = vadd.f32 %v5342_v27, %v2707_v43  ;;  %v2689_v31 = vmul.f32 %v3446_v7, %v5240_v15 }
 0x570   :  { %v2726_v56 = vadd.f32 %v5342_v27, %v2706_v57  ;;  %v2688_v11 = vmul.f32 %v3448_v9, %v5247_v25 }
 0x571   :  { %2743 = vst.msk [vmem:[#allocation4 + $0x8] sm:$0xff] %vm75_vm0, %v2727_v30  ;;  %v2709_v33 = vmul.f32 %v5336_v40, %v2689_v31 }
 0x572   :  { %v3450_v51 = vpop.eup %3449  ;;  %2742 = vst.msk [vmem:[#allocation4] sm:$0xff] %vm75_vm0, %v2726_v56  ;;  %v2708_v42 = vmul.f32 %v5336_v40, %v2688_v11 }
 0x573   :  { %v3452_v39 = vpop.eup %3451  ;;  %v2729_v61 = vadd.f32 %v5342_v27, %v2709_v33  ;;  %v2691_v6 = vmul.f32 %v3450_v51, %v5260_v29 }
 0x574   :  { %v2728_v15 = vadd.f32 %v5342_v27, %v2708_v42  ;;  %v2690_v55 = vmul.f32 %v3452_v39, %v5263_v45 }
 0x575   :  { %2745 = vst.msk [vmem:[#allocation4 + $0x18] sm:$0xff] %vm75_vm0, %v2729_v61  ;;  %v2711_v25 = vmul.f32 %v5336_v40, %v2691_v6 }
 0x576   :  { %2744 = vst.msk [vmem:[#allocation4 + $0x10] sm:$0xff] %vm75_vm0, %v2728_v15  ;;  %v2710_v22 = vmul.f32 %v5336_v40, %v2690_v55 }
 0x577   :  { %v2731_v41 = vadd.f32 %v5342_v27, %v2711_v25 }
 0x578   :  { %v2730_v53 = vadd.f32 %v5342_v27, %v2710_v22 }
 0x579   :  { %2747 = vst.msk [vmem:[#allocation4 + $0x28] sm:$0xff] %vm75_vm0, %v2731_v41 }
 0x57a   :  { %2746 = vst.msk [vmem:[#allocation4 + $0x20] sm:$0xff] %vm75_vm0, %v2730_v53 }
 0x583   :  { %v2613_v29 = vpop.xlane.xlu1 %2612 }
 0x584   :  { %v2645_v2 = vmul.f32 0.03125, %v2613_v29  ;;  %v2610_v1 = vpop.xlane.xlu0 %2609 }
 0x585   :  { %v2644_v45 = vmul.f32 0.03125, %v2610_v1 }
 0x586   :  { %v2661_v49 = vadd.f32 1e-05, %v2645_v2 }
 0x587   :  { %v2660_v35 = vadd.f32 1e-05, %v2644_v45 }
 0x588   :  { %3453 = vrsqrt.f32 %v2661_v49 }
 0x589   :  { %3455 = vrsqrt.f32 %v2660_v35 }
 0x58c   :  { %v2619_v20 = vpop.xlane.xlu1 %2618 }
 0x58d   :  { %v2647_v23 = vmul.f32 0.03125, %v2619_v20  ;;  %v2616_v8 = vpop.xlane.xlu0 %2615 }
 0x58e   :  { %v2646_v60 = vmul.f32 0.03125, %v2616_v8 }
 0x58f   :  { %v2663_v10 = vadd.f32 1e-05, %v2647_v23 }
 0x590   :  { %v2662_v58 = vadd.f32 1e-05, %v2646_v60 }
 0x591   :  { %3457 = vrsqrt.f32 %v2663_v10 }
 0x592   :  { %v3454_v18 = vpop.eup %3453  ;;  %3459 = vrsqrt.f32 %v2662_v58 }
 0x593   :  { %v3456_v44 = vpop.eup %3455  ;;  %v2693_v32 = vmul.f32 %v3454_v18, %v5274_v62 }
 0x594   :  { %v2692_v36 = vmul.f32 %v3456_v44, %v5277_v4 }
 0x595   :  { %v2713_v24 = vmul.f32 %v5336_v40, %v2693_v32 }
 0x596   :  { %v2712_v38 = vmul.f32 %v5336_v40, %v2692_v36 }
 0x597   :  { %v2733_v54 = vadd.f32 %v5342_v27, %v2713_v24 }
 0x598   :  { %v2732_v52 = vadd.f32 %v5342_v27, %v2712_v38 }
 0x599   :  { %2749 = vst.msk [vmem:[#allocation4 + $0x38] sm:$0xff] %vm75_vm0, %v2733_v54 }
 0x59a   :  { %2748 = vst.msk [vmem:[#allocation4 + $0x30] sm:$0xff] %vm75_vm0, %v2732_v52 }
 0x59b   :  { %v3458_v63 = vpop.eup %3457 }
 0x59c   :  { %v3460_v5 = vpop.eup %3459  ;;  %v2695_v59 = vmul.f32 %v3458_v63, %v5286_v19 }
 0x59d   :  { %v2694_v62 = vmul.f32 %v3460_v5, %v5289_v46 }
 0x59e   :  { %v2715_v4 = vmul.f32 %v5336_v40, %v2695_v59 }
 0x59f   :  { %v2714_v21 = vmul.f32 %v5336_v40, %v2694_v62 }
 0x5a0   :  { %v2735_v16 = vadd.f32 %v5342_v27, %v2715_v4 }
 0x5a1   :  { %v2734_v13 = vadd.f32 %v5342_v27, %v2714_v21 }
 0x5a2   :  { %2751 = vst.msk [vmem:[#allocation4 + $0x48] sm:$0xff] %vm75_vm0, %v2735_v16 }
 0x5a3   :  { %2750 = vst.msk [vmem:[#allocation4 + $0x40] sm:$0xff] %vm75_vm0, %v2734_v13 }
 0x5ac   :  { %v2625_v34 = vpop.xlane.xlu1 %2624 }
 0x5ad   :  { %v2649_v26 = vmul.f32 0.03125, %v2625_v34  ;;  %v2622_v14 = vpop.xlane.xlu0 %2621 }
 0x5ae   :  { %v2648_v37 = vmul.f32 0.03125, %v2622_v14 }
 0x5af   :  { %v2665_v12 = vadd.f32 1e-05, %v2649_v26 }
 0x5b0   :  { %v2664_v19 = vadd.f32 1e-05, %v2648_v37 }
 0x5b1   :  { %3461 = vrsqrt.f32 %v2665_v12 }
 0x5b2   :  { %3463 = vrsqrt.f32 %v2664_v19 }
 0x5bb   :  { %v3462_v46 = vpop.eup %3461 }
 0x5bc   :  { %v3464_v47 = vpop.eup %3463  ;;  %v2697_v43 = vmul.f32 %v3462_v46, %v5298_v28 }
 0x5bd   :  { %v2696_v7 = vmul.f32 %v3464_v47, %v5301_v50 }
 0x5be   :  { %v2717_v57 = vmul.f32 %v5336_v40, %v2697_v43 }
 0x5bf   :  { %v2716_v9 = vmul.f32 %v5336_v40, %v2696_v7 }
 0x5c0   :  { %v2737_v30 = vadd.f32 %v5342_v27, %v2717_v57 }
 0x5c1   :  { %v2736_v31 = vadd.f32 %v5342_v27, %v2716_v9 }
 0x5c2   :  { %2753 = vst.msk [vmem:[#allocation4 + $0x58] sm:$0xff] %vm75_vm0, %v2737_v30 }
 0x5c3   :  { %2752 = vst.msk [vmem:[#allocation4 + $0x50] sm:$0xff] %vm75_vm0, %v2736_v31 }
 0x5cc   :  { %v2631_v56 = vpop.xlane.xlu1 %2630 }
 0x5cd   :  { %v2651_v11 = vmul.f32 0.03125, %v2631_v56  ;;  %v2628_v33 = vpop.xlane.xlu0 %2627 }
 0x5ce   :  { %v2650_v51 = vmul.f32 0.03125, %v2628_v33 }
 0x5cf   :  { %v2667_v42 = vadd.f32 1e-05, %v2651_v11 }
 0x5d0   :  { %v2666_v28 = vadd.f32 1e-05, %v2650_v51 }
 0x5d1   :  { %3465 = vrsqrt.f32 %v2667_v42 }
 0x5d2   :  { %3467 = vrsqrt.f32 %v2666_v28 }
 0x5db   :  { %v3466_v50 = vpop.eup %3465 }
 0x5dc   :  { %v3468_v39 = vpop.eup %3467  ;;  %v2699_v61 = vmul.f32 %v3466_v50, %v5310_v0 }
 0x5dd   :  { %v2698_v6 = vmul.f32 %v3468_v39, %v5313_v48 }
 0x5de   :  { %v2719_v15 = vmul.f32 %v5336_v40, %v2699_v61 }
 0x5df   :  { %v2718_v55 = vmul.f32 %v5336_v40, %v2698_v6 }
 0x5e0   :  { %v2739_v25 = vadd.f32 %v5342_v27, %v2719_v15 }
 0x5e1   :  { %v2738_v22 = vadd.f32 %v5342_v27, %v2718_v55 }
 0x5e2   :  { %2755 = vst.msk [vmem:[#allocation4 + $0x68] sm:$0xff] %vm75_vm0, %v2739_v25 }
 0x5e3   :  { %2754 = vst.msk [vmem:[#allocation4 + $0x60] sm:$0xff] %vm75_vm0, %v2738_v22 }
 0x5ec   :  { %v2637_v41 = vpop.xlane.xlu1 %2636 }
 0x5ed   :  { %v2653_v53 = vmul.f32 0.03125, %v2637_v41  ;;  %v2634_v29 = vpop.xlane.xlu0 %2633 }
 0x5ee   :  { %v2652_v2 = vmul.f32 0.03125, %v2634_v29 }
 0x5ef   :  { %v2669_v1 = vadd.f32 1e-05, %v2653_v53 }
 0x5f0   :  { %v2668_v0 = vadd.f32 1e-05, %v2652_v2 }
 0x5f1   :  { %3469 = vrsqrt.f32 %v2669_v1 }
 0x5f2   :  { %3471 = vrsqrt.f32 %v2668_v0 }
 0x5fb   :  { %v3470_v48 = vpop.eup %3469 }
 0x5fc   :  { %v3472_v45 = vpop.eup %3471  ;;  %v2701_v49 = vmul.f32 %v3470_v48, %v5322_v3 }
 0x5fd   :  { %v2700_v35 = vmul.f32 %v3472_v45, %v5325_v17 }
 0x5fe   :  { %v2721_v20 = vmul.f32 %v5336_v40, %v2701_v49 }
 0x5ff   :  { %v2720_v23 = vmul.f32 %v5336_v40, %v2700_v35 }
 0x600   :  { %v2741_v8 = vadd.f32 %v5342_v27, %v2721_v20 }
 0x601   :  { %v2740_v60 = vadd.f32 %v5342_v27, %v2720_v23 }
 0x602   :  { %2757 = vst.msk [vmem:[#allocation4 + $0x78] sm:$0xff] %vm75_vm0, %v2741_v8 }
 0x603   :  { %2756 = vst.msk [vmem:[#allocation4 + $0x70] sm:$0xff] %vm75_vm0, %v2740_v60 }
 0x604   :  { %3501 = shalt.err (!%p3498_p4)
}
 0x605   :  { %s3502_s27 = scalar_lea.hbm %s5422_s3, 2048 }
 0x606   :  { %p3503_p5 = scmp.ne.s32.totalorder %s5422_s3, %s3502_s27  ;;  %p3506_p6 = scmp.lt.u32.totalorder %s3502_s27, %s5422_s3 }
 0x608   :  { %p3508_p7 = pnand %p3506_p6, %p3503_p5 }
 0x60a   :  { %3511 = shalt.err (!%p3508_p7)
}
 0x60b   :  { %s3519_s5 = smov 128   ;;  %s3520_s6 = smov 8  }
 0x60c   :  { %2769 = dma.vmem_to_hbm [thread:$0]  %s2764_s23, 2048, %s5422_s3, [#allocation5], %s3519_s5, %s3519_s5, %s3520_s6  }
 0x60d   :  { %3512 = dma.done.wait [#allocation5], 2048  }
 0x60e   :  { %3513 = vsyncadd [#allocation5], 4294965248 }
 0x60f   :  { %2773 = vsyncpa [#allocation5], 1 }

</bundles_post_ra>
